<compile_context>
chip_gen: v5e
topology: v5e:2x2
jax: 0.10.0
libtpu: 0.0.40
codegen_flags: <defaults>
</compile_context>

<pallas_src>
import functools
import math

import jax
import jax.numpy as jnp
from jax.experimental import pallas as pl
from jax.experimental.pallas import tpu as pltpu

LRELU_SLOPE = 0.1
LANE = 128
HALO = 16   # sublane-aligned halo; must satisfy HALO >= sum(d + 1 for d in dilations)


def _lrelu(v):
    return jnp.where(v > 0, v, LRELU_SLOPE * v)


def _resblock_kernel(x_ref, hl_ref, w1_ref, b1_ref, w2_ref, b2_ref, o_ref,
                     win_ref, act_ref, *, dilations, valid_last):
    """Fused 3-pair ResBlock1 on one (batch, time-tile) block.

    x_ref  : (1, tile_t, C)     residual input tile (f32)
    hl_ref : (1, 1, 2*HALO, C)  +/-HALO rows of x around this tile (zeros at seq ends)
    w*_ref : (P, 3*C, C)        tap-major folded conv weights, compute dtype
    b*_ref : (P, 1, C)          biases, f32
    o_ref  : (1, tile_t, C)
    win_ref: (tile_t+2*HALO, C) f32 scratch holding the running residual (x)
    act_ref: (tile_t+2*HALO, C) compute-dtype scratch for conv inputs (lrelu'd)
    """
    tile_t = x_ref.shape[1]
    ch = x_ref.shape[2]
    cdtype = act_ref.dtype
    i = pl.program_id(1)
    last = pl.num_programs(1) - 1

    # Cumulative margins: margins[p] rows on each side are needed as input of pair p.
    margins = [0]
    for d in reversed(dilations):
        margins.append(margins[-1] + d + 1)
    margins = margins[::-1]
    npairs = len(dilations)

    # ---- assemble the residual window: [left halo | x tile | right halo] ----------
    # Halo rows beyond the true sequence (and T-padding rows inside the tile) are
    # zero, so the "residual is zero outside [0, T)" invariant holds at load time.
    win_ref[0:HALO, :] = hl_ref[0, 0, 0:HALO, :]
    win_ref[HALO:HALO + tile_t, :] = x_ref[0, :, :]
    win_ref[HALO + tile_t:, :] = hl_ref[0, 0, HALO:, :]

    for p, d in enumerate(dilations):
        m_in, m_out = margins[p], margins[p + 1]
        n_out = tile_t + 2 * m_out          # rows of this pair's residual update
        n_mid = n_out + 2                   # conv1-output / conv2-input rows
        base_out = HALO - m_out             # window row of first residual-update row
        base_mid = base_out - 1             # window row of first conv1-output row
        rbnd = HALO + tile_t + valid_last   # true-seq boundary row as seen by tile last-1

        # -- conv1 input: leaky_relu(residual), cast once into the compute scratch.
        # OOB rows of win are zero and lrelu(0) == 0, so they stay zero.
        lo, hi = HALO - m_in, HALO + tile_t + m_in
        act_ref[lo:hi, :] = _lrelu(win_ref[lo:hi, :]).astype(cdtype)

        # -- conv1 (kernel 3, dilation d) folded into one (n_mid, 3C) x (3C, C) matmul.
        lhs1 = jnp.concatenate(
            [act_ref[base_mid + (k - 1) * d: base_mid + (k - 1) * d + n_mid, :]
             for k in range(3)], axis=1)
        h = jnp.dot(lhs1, w1_ref[p], preferred_element_type=jnp.float32)
        h = _lrelu(h + b1_ref[p])

        # -- conv2's input goes through the compute scratch (single f32->bf16 cast).
        act_ref[base_mid:base_mid + n_mid, :] = h.astype(cdtype)

        # conv2 zero-pads at the *true* sequence boundaries: zero the rows of its
        # input whose absolute position is outside [0, T).  Static slices, boundary
        # tiles only.
        @pl.when(i == 0)
        def _():
            act_ref[base_mid:HALO, :] = jnp.zeros((m_out + 1, ch), cdtype)

        @pl.when(i == last)
        def _():
            act_ref[HALO + valid_last:base_mid + n_mid, :] = jnp.zeros(
                (base_mid + n_mid - HALO - valid_last, ch), cdtype)

        if rbnd < base_mid + n_mid:  # short last tile: boundary crosses into tile last-1
            @pl.when(i == last - 1)
            def _():
                act_ref[rbnd:base_mid + n_mid, :] = jnp.zeros(
                    (base_mid + n_mid - rbnd, ch), cdtype)

        # -- conv2 (kernel 3, dilation 1) folded into one (n_out, 3C) x (3C, C) matmul.
        lhs2 = jnp.concatenate(
            [act_ref[base_out - 1 + k: base_out - 1 + k + n_out, :] for k in range(3)],
            axis=1)
        y = jnp.dot(lhs2, w2_ref[p], preferred_element_type=jnp.float32) + b2_ref[p]

        # -- residual add (f32).
        win_ref[base_out:base_out + n_out, :] = (
            win_ref[base_out:base_out + n_out, :] + y)

        # -- restore the "residual is zero outside [0, T)" invariant for the next pair.
        if p + 1 < npairs:
            @pl.when(i == 0)
            def _():
                win_ref[base_out:HALO, :] = jnp.zeros((m_out, ch), jnp.float32)

            @pl.when(i == last)
            def _():
                win_ref[HALO + valid_last:base_out + n_out, :] = jnp.zeros(
                    (tile_t + m_out - valid_last, ch), jnp.float32)

            if rbnd < base_out + n_out:
                @pl.when(i == last - 1)
                def _():
                    win_ref[rbnd:base_out + n_out, :] = jnp.zeros(
                        (base_out + n_out - rbnd, ch), jnp.float32)

    o_ref[0, :, :] = win_ref[HALO:HALO + tile_t, :].astype(o_ref.dtype)


def _round_up(n, m):
    return ((n + m - 1) // m) * m


def _pick_tile_t(T, max_tile):
    t = _round_up(T, 8)
    return t if t <= max_tile else max_tile


def _build_halos(x_btc, tile_t):
    """[B, n_t, 2*HALO, C]: rows [i*tile_t-HALO, i*tile_t) and [(i+1)*tile_t, +HALO)."""
    B, T, C = x_btc.shape
    n_t = T // tile_t
    z = jnp.zeros((B, 1, HALO, C), x_btc.dtype)
    if n_t == 1:
        return jnp.concatenate([z, z], axis=2)
    xr = x_btc.reshape(B, n_t, tile_t, C)
    lefts = jnp.concatenate([z, xr[:, :-1, tile_t - HALO:, :]], axis=1)
    rights = jnp.concatenate([xr[:, 1:, :HALO, :], z], axis=1)
    return jnp.concatenate([lefts, rights], axis=2)


def _prep_w(w, Cp, cdtype):
    """PyTorch [C_out, C_in, K=3] -> tap-major folded [3*Cp, Cp], cast to compute dtype."""
    C_out, C_in, K = w.shape
    w = jnp.asarray(w, jnp.float32)
    if Cp != C_out or Cp != C_in:
        w = jnp.pad(w, ((0, Cp - C_out), (0, Cp - C_in), (0, 0)))
    w = jnp.transpose(w, (2, 1, 0)).reshape(K * Cp, Cp)   # rows = (tap, c_in)
    return w.astype(cdtype)


def _prep_b(b, Cp):
    b = jnp.asarray(b, jnp.float32)
    if b.shape[0] != Cp:
        b = jnp.pad(b, ((0, Cp - b.shape[0]),))
    return b.reshape(1, Cp)


@functools.partial(jax.jit,
                   static_argnames=("dilations", "tile_t", "compute_dtype", "max_tile"))
def resblock1_forward(x, params, *, dilations=(1, 3, 5), tile_t=None,
                      compute_dtype=jnp.bfloat16, max_tile=1024):
    """ResBlock1.forward.  x: [B, C, T] (PyTorch Conv1d layout).

    params: tuple of 3 tuples (w1, b1, w2, b2); PyTorch shapes w*: [C, C, 3], b*: [C].
            Effective weights (weight_norm / spectral_norm already folded in).
    """
    B, C, T = x.shape
    assert len(params) == len(dilations)
    assert HALO % 8 == 0 and sum(d + 1 for d in dilations) <= HALO

    x = x.astype(jnp.float32)

    # Pad channels to the 128-lane width: lane-dense stores, MXU-aligned K/N.
    Cp = max(LANE, _round_up(C, LANE))

    # Bounded time tiles; pad T up to a tile multiple (true boundary handled in-kernel).
    if tile_t is None or tile_t % 8 != 0 or tile_t < HALO:
        tile_t = _pick_tile_t(T, max_tile)
    T_pad = _round_up(T, tile_t)
    n_t = T_pad // tile_t
    valid_last = T - (n_t - 1) * tile_t   # true rows in the last tile (static)

    x_btc = jnp.transpose(x, (0, 2, 1))   # [B, T, C]
    if Cp != C or T_pad != T:
        x_btc = jnp.pad(x_btc, ((0, 0), (0, T_pad - T), (0, Cp - C)))
    halos = _build_halos(x_btc, tile_t)

    # Host-side weight prep: fold taps, pad channels, cast to compute dtype, stack pairs.
    w1s = jnp.stack([_prep_w(p[0], Cp, compute_dtype) for p in params])   # (P, 3Cp, Cp)
    b1s = jnp.stack([_prep_b(p[1], Cp) for p in params])                  # (P, 1, Cp)
    w2s = jnp.stack([_prep_w(p[2], Cp, compute_dtype) for p in params])
    b2s = jnp.stack([_prep_b(p[3], Cp) for p in params])

    # VMEM budget for the chosen tile (double-buffered tiles, weight stacks, scratches,
    # im2col/accumulator temporaries) with headroom; cap below v7x's 64 MiB physical.
    W = tile_t + 2 * HALO
    csz = jnp.dtype(compute_dtype).itemsize
    P = len(dilations)
    need = (2 * 2 * 4 * tile_t * Cp                      # x-in + out tiles, 2 buffers, f32
            + 2 * 4 * 2 * HALO * Cp                      # halo tiles
            + 2 * 2 * P * (3 * Cp * Cp * csz + 4 * Cp)   # weight/bias stacks
            + (4 + csz) * W * Cp                         # win + act scratches
            + W * (3 * csz + 12) * Cp)                   # im2col lhs + f32 temporaries
    vmem_limit = int(min(need + (16 << 20), 48 << 20))

    kernel = functools.partial(_resblock_kernel, dilations=tuple(dilations),
                               valid_last=int(valid_last))
    out = pl.pallas_call(
        kernel,
        out_shape=jax.ShapeDtypeStruct((B, T_pad, Cp), x_btc.dtype),
        grid_spec=pltpu.PrefetchScalarGridSpec(
            num_scalar_prefetch=0,
            grid=(B, n_t),
            in_specs=[
                pl.BlockSpec((1, tile_t, Cp), lambda b, i: (b, i, 0)),          # x tile
                pl.BlockSpec((1, 1, 2 * HALO, Cp), lambda b, i: (b, i, 0, 0)),  # halos
                # weights/biases: constant block index -> resident across the grid.
                pl.BlockSpec((P, 3 * Cp, Cp), lambda b, i: (0, 0, 0)),
                pl.BlockSpec((P, 1, Cp), lambda b, i: (0, 0, 0)),
                pl.BlockSpec((P, 3 * Cp, Cp), lambda b, i: (0, 0, 0)),
                pl.BlockSpec((P, 1, Cp), lambda b, i: (0, 0, 0)),
            ],
            out_specs=pl.BlockSpec((1, tile_t, Cp), lambda b, i: (b, i, 0)),
            scratch_shapes=[pltpu.VMEM((W, Cp), jnp.float32),
                            pltpu.VMEM((W, Cp), compute_dtype)],
        ),
        compiler_params=pltpu.CompilerParams(
            dimension_semantics=("parallel", "parallel"),
            vmem_limit_bytes=vmem_limit,
        ),
    )(x_btc, halos, w1s, b1s, w2s, b2s)

    out = out[:, :T, :C]                      # drop T/C padding
    return jnp.transpose(out, (0, 2, 1))      # back to [B, C, T]


# ---------------------------- pure-JAX reference ---------------------------------
def _conv1d_ref(x, w, b, dilation):
    pad = (w.shape[-1] * dilation - dilation) // 2
    y = jax.lax.conv_general_dilated(
        x, w, window_strides=(1,), padding=[(pad, pad)],
        rhs_dilation=(dilation,), dimension_numbers=("NCH", "OIH", "NCH"),
        precision=jax.lax.Precision.HIGHEST)
    return y + b[None, :, None]


def resblock1_ref(x, params, dilations=(1, 3, 5)):
    for d, (w1, b1, w2, b2) in zip(dilations, params):
        xt = jnp.where(x > 0, x, LRELU_SLOPE * x)
        xt = _conv1d_ref(xt, w1, b1, d)
        xt = jnp.where(xt > 0, xt, LRELU_SLOPE * xt)
        xt = _conv1d_ref(xt, w2, b2, 1)
        x = xt + x
    return x


if __name__ == "__main__":
    K, dilations = 3, (1, 3, 5)

    def make_params(keys, C):
        # init_weights-style N(0, 0.01) weights, PyTorch-default uniform biases.
        bound = 1.0 / math.sqrt(C * K)
        ps = []
        for p in range(3):
            kw1, kb1, kw2, kb2 = keys[4 * p: 4 * p + 4]
            ps.append((
                0.01 * jax.random.normal(kw1, (C, C, K), jnp.float32),
                jax.random.uniform(kb1, (C,), jnp.float32, -bound, bound),
                0.01 * jax.random.normal(kw2, (C, C, K), jnp.float32),
                jax.random.uniform(kb2, (C,), jnp.float32, -bound, bound),
            ))
        return tuple(ps)

    # Case 1: lane-aligned channels, multi-tile grid (2, 4); bf16 and f32 MXU paths.
    B, C, T = 2, 128, 256
    keys = jax.random.split(jax.random.PRNGKey(0), 13)
    x = jax.random.normal(keys[0], (B, C, T), dtype=jnp.float32)
    params = make_params(keys[1:13], C)

    out_bf16 = resblock1_forward(x, params, dilations=dilations, tile_t=64)
    out_f32 = resblock1_forward(x, params, dilations=dilations, tile_t=64,
                                compute_dtype=jnp.float32)
    out_bf16, out_f32 = jax.block_until_ready((out_bf16, out_f32))
    ref = resblock1_ref(x, params, dilations)
    assert out_bf16.shape == (B, C, T)
    assert jnp.allclose(out_f32, ref, atol=2e-2, rtol=2e-2), "f32 path mismatch"
    assert jnp.allclose(out_bf16, ref, atol=2e-2, rtol=2e-2), "bf16 path mismatch"

    # Case 2: C < 128 (channel padding) and T not a tile multiple (short last tile,
    # exercises the T-padding boundary masking including the second-to-last tile).
    B2, C2, T2 = 2, 64, 196
    keys2 = jax.random.split(jax.random.PRNGKey(1), 13)
    x2 = jax.random.normal(keys2[0], (B2, C2, T2), dtype=jnp.float32)
    params2 = make_params(keys2[1:13], C2)
    out2 = jax.block_until_ready(
        resblock1_forward(x2, params2, dilations=dilations, tile_t=64))
    ref2 = resblock1_ref(x2, params2, dilations)
    assert out2.shape == (B2, C2, T2)
    assert jnp.allclose(out2, ref2, atol=2e-2, rtol=2e-2), "padded-shape path mismatch"

    print("KERNEL_OK")
</pallas_src>

<mosaic_0001>
module attributes {stable_mosaic.version = 11 : i64} {
  func.func @_resblock_kernel(%arg0: i32, %arg1: i32, %arg2: memref<1x64x128xf32, #tpu.memory_space<vmem>>, %arg3: memref<1x1x32x128xf32, #tpu.memory_space<vmem>>, %arg4: memref<3x384x128xbf16, #tpu.memory_space<vmem>>, %arg5: memref<3x1x128xf32, #tpu.memory_space<vmem>>, %arg6: memref<3x384x128xbf16, #tpu.memory_space<vmem>>, %arg7: memref<3x1x128xf32, #tpu.memory_space<vmem>>, %arg8: memref<1x64x128xf32, #tpu.memory_space<vmem>>, %arg9: memref<96x128xf32, #tpu.memory_space<vmem>>, %arg10: memref<96x128xbf16, #tpu.memory_space<vmem>>) attributes {dimension_semantics = [#tpu.dimension_semantics<parallel>, #tpu.dimension_semantics<parallel>], iteration_bounds = array<i64: 2, 4>, scalar_prefetch = 0 : i64, scratch_operands = 2 : i64, tpu.core_type = #tpu.core_type<tc>, window_params = [{transform_indices = @transform_0, window_bounds = array<i64: 1, 64, 128>}, {transform_indices = @transform_1, window_bounds = array<i64: 1, 1, 32, 128>}, {pipeline_mode = #tpu.pipeline_mode<synchronous>, transform_indices = @transform_2, window_bounds = array<i64: 3, 384, 128>}, {pipeline_mode = #tpu.pipeline_mode<synchronous>, transform_indices = @transform_3, window_bounds = array<i64: 3, 1, 128>}, {pipeline_mode = #tpu.pipeline_mode<synchronous>, transform_indices = @transform_4, window_bounds = array<i64: 3, 384, 128>}, {pipeline_mode = #tpu.pipeline_mode<synchronous>, transform_indices = @transform_5, window_bounds = array<i64: 3, 1, 128>}, {transform_indices = @transform_6, window_bounds = array<i64: 1, 64, 128>}]} {
    %c0 = arith.constant 0 : index
    %c0_0 = arith.constant 0 : index
    %c0_1 = arith.constant 0 : index
    %c0_2 = arith.constant 0 : index
    %0 = vector.load %arg3[%c0, %c0_0, %c0_1, %c0_2] : memref<1x1x32x128xf32, #tpu.memory_space<vmem>>, vector<1x1x16x128xf32>
    %1 = vector.shape_cast %0 : vector<1x1x16x128xf32> to vector<16x128xf32>
    %c0_3 = arith.constant 0 : index
    %c0_4 = arith.constant 0 : index
    %2 = vector.load %arg9[%c0_3, %c0_4] : memref<96x128xf32, #tpu.memory_space<vmem>>, vector<16x128xf32>
    tpu.vector_store %arg9[%c0_3, %c0_4], %1 {strides = array<i32>} : memref<96x128xf32, #tpu.memory_space<vmem>>, vector<16x128xf32>,
    %c0_5 = arith.constant 0 : index
    %c0_6 = arith.constant 0 : index
    %c0_7 = arith.constant 0 : index
    %3 = vector.load %arg2[%c0_5, %c0_6, %c0_7] : memref<1x64x128xf32, #tpu.memory_space<vmem>>, vector<1x64x128xf32>
    %4 = vector.shape_cast %3 : vector<1x64x128xf32> to vector<64x128xf32>
    %c16 = arith.constant 16 : index
    %c0_8 = arith.constant 0 : index
    %5 = vector.load %arg9[%c16, %c0_8] : memref<96x128xf32, #tpu.memory_space<vmem>>, vector<64x128xf32>
    tpu.vector_store %arg9[%c16, %c0_8], %4 {strides = array<i32>} : memref<96x128xf32, #tpu.memory_space<vmem>>, vector<64x128xf32>,
    %c0_9 = arith.constant 0 : index
    %c0_10 = arith.constant 0 : index
    %c16_11 = arith.constant 16 : index
    %c0_12 = arith.constant 0 : index
    %6 = vector.load %arg3[%c0_9, %c0_10, %c16_11, %c0_12] : memref<1x1x32x128xf32, #tpu.memory_space<vmem>>, vector<1x1x16x128xf32>
    %7 = vector.shape_cast %6 : vector<1x1x16x128xf32> to vector<16x128xf32>
    %c80 = arith.constant 80 : index
    %c0_13 = arith.constant 0 : index
    %8 = vector.load %arg9[%c80, %c0_13] : memref<96x128xf32, #tpu.memory_space<vmem>>, vector<16x128xf32>
    tpu.vector_store %arg9[%c80, %c0_13], %7 {strides = array<i32>} : memref<96x128xf32, #tpu.memory_space<vmem>>, vector<16x128xf32>,
    %c4 = arith.constant 4 : index
    %c0_14 = arith.constant 0 : index
    %9 = vector.load %arg9[%c4, %c0_14] : memref<96x128xf32, #tpu.memory_space<vmem>>, vector<88x128xf32>
    %cst = arith.constant 0.000000e+00 : f32
    %10 = vector.broadcast %cst : f32 to vector<88x128xf32>
    %11 = arith.cmpf ogt, %9, %10 : vector<88x128xf32>
    %cst_15 = arith.constant 1.000000e-01 : f32
    %12 = vector.broadcast %cst_15 : f32 to vector<88x128xf32>
    %13 = arith.mulf %12, %9 : vector<88x128xf32>
    %14 = arith.select %11, %9, %13 : vector<88x128xi1>, vector<88x128xf32>
    %15 = arith.truncf %14 : vector<88x128xf32> to vector<88x128xbf16>
    %c4_16 = arith.constant 4 : index
    %c0_17 = arith.constant 0 : index
    %16 = vector.load %arg10[%c4_16, %c0_17] : memref<96x128xbf16, #tpu.memory_space<vmem>>, vector<88x128xbf16>
    tpu.vector_store %arg10[%c4_16, %c0_17], %15 {strides = array<i32>} : memref<96x128xbf16, #tpu.memory_space<vmem>>, vector<88x128xbf16>,
    %c4_18 = arith.constant 4 : index
    %c0_19 = arith.constant 0 : index
    %17 = vector.load %arg10[%c4_18, %c0_19] : memref<96x128xbf16, #tpu.memory_space<vmem>>, vector<86x128xbf16>
    %c5 = arith.constant 5 : index
    %c0_20 = arith.constant 0 : index
    %18 = vector.load %arg10[%c5, %c0_20] : memref<96x128xbf16, #tpu.memory_space<vmem>>, vector<86x128xbf16>
    %c6 = arith.constant 6 : index
    %c0_21 = arith.constant 0 : index
    %19 = vector.load %arg10[%c6, %c0_21] : memref<96x128xbf16, #tpu.memory_space<vmem>>, vector<86x128xbf16>
    %20 = tpu.concatenate %17, %18, %19 in 1 : vector<86x128xbf16>, vector<86x128xbf16>, vector<86x128xbf16> -> vector<86x384xbf16>
    %c0_22 = arith.constant 0 : index
    %c0_23 = arith.constant 0 : index
    %c0_24 = arith.constant 0 : index
    %21 = vector.load %arg4[%c0_22, %c0_23, %c0_24] : memref<3x384x128xbf16, #tpu.memory_space<vmem>>, vector<1x384x128xbf16>
    %22 = vector.shape_cast %21 : vector<1x384x128xbf16> to vector<384x128xbf16>
    %cst_25 = arith.constant dense<0.000000e+00> : vector<86x128xf32>
    %23 = tpu.matmul %20, %22, %cst_25 {dimension_numbers = #tpu.dot_dimension_numbers<[1], [0], [0], [1], [0, 0, 1, 1], [], []>} : vector<86x384xbf16>, vector<384x128xbf16>, vector<86x128xf32> -> vector<86x128xf32>
    %c0_26 = arith.constant 0 : index
    %c0_27 = arith.constant 0 : index
    %c0_28 = arith.constant 0 : index
    %24 = vector.load %arg5[%c0_26, %c0_27, %c0_28] : memref<3x1x128xf32, #tpu.memory_space<vmem>>, vector<1x1x128xf32>
    %25 = vector.shape_cast %24 : vector<1x1x128xf32> to vector<1x128xf32>
    %26 = vector.broadcast %25 : vector<1x128xf32> to vector<86x128xf32>
    %27 = arith.addf %23, %26 : vector<86x128xf32>
    %cst_29 = arith.constant 0.000000e+00 : f32
    %28 = vector.broadcast %cst_29 : f32 to vector<86x128xf32>
    %29 = arith.cmpf ogt, %27, %28 : vector<86x128xf32>
    %cst_30 = arith.constant 1.000000e-01 : f32
    %30 = vector.broadcast %cst_30 : f32 to vector<86x128xf32>
    %31 = arith.mulf %30, %27 : vector<86x128xf32>
    %32 = arith.select %29, %27, %31 : vector<86x128xi1>, vector<86x128xf32>
    %33 = arith.truncf %32 : vector<86x128xf32> to vector<86x128xbf16>
    %c5_31 = arith.constant 5 : index
    %c0_32 = arith.constant 0 : index
    %34 = vector.load %arg10[%c5_31, %c0_32] : memref<96x128xbf16, #tpu.memory_space<vmem>>, vector<86x128xbf16>
    tpu.vector_store %arg10[%c5_31, %c0_32], %33 {strides = array<i32>} : memref<96x128xbf16, #tpu.memory_space<vmem>>, vector<86x128xbf16>,
    %c0_i32 = arith.constant 0 : i32
    %35 = arith.cmpi eq, %arg1, %c0_i32 : i32
    %36 = arith.extui %35 : i1 to i32
    %c0_i32_33 = arith.constant 0 : i32
    %37 = arith.cmpi ne, %36, %c0_i32_33 : i32
    scf.if %37 {
      %cst_143 = arith.constant 0.000000e+00 : bf16
      %163 = vector.broadcast %cst_143 : bf16 to vector<11x128xbf16>
      %c5_144 = arith.constant 5 : index
      %c0_145 = arith.constant 0 : index
      %164 = vector.load %arg10[%c5_144, %c0_145] : memref<96x128xbf16, #tpu.memory_space<vmem>>, vector<11x128xbf16>
      tpu.vector_store %arg10[%c5_144, %c0_145], %163 {strides = array<i32>} : memref<96x128xbf16, #tpu.memory_space<vmem>>, vector<11x128xbf16>,
    } else {
    }
    %c3_i32 = arith.constant 3 : i32
    %38 = arith.cmpi eq, %arg1, %c3_i32 : i32
    %39 = arith.extui %38 : i1 to i32
    %c0_i32_34 = arith.constant 0 : i32
    %40 = arith.cmpi ne, %39, %c0_i32_34 : i32
    scf.if %40 {
      %cst_143 = arith.constant 0.000000e+00 : bf16
      %163 = vector.broadcast %cst_143 : bf16 to vector<11x128xbf16>
      %c80_144 = arith.constant 80 : index
      %c0_145 = arith.constant 0 : index
      %164 = vector.load %arg10[%c80_144, %c0_145] : memref<96x128xbf16, #tpu.memory_space<vmem>>, vector<11x128xbf16>
      tpu.vector_store %arg10[%c80_144, %c0_145], %163 {strides = array<i32>} : memref<96x128xbf16, #tpu.memory_space<vmem>>, vector<11x128xbf16>,
    } else {
    }
    %c5_35 = arith.constant 5 : index
    %c0_36 = arith.constant 0 : index
    %41 = vector.load %arg10[%c5_35, %c0_36] : memref<96x128xbf16, #tpu.memory_space<vmem>>, vector<84x128xbf16>
    %c6_37 = arith.constant 6 : index
    %c0_38 = arith.constant 0 : index
    %42 = vector.load %arg10[%c6_37, %c0_38] : memref<96x128xbf16, #tpu.memory_space<vmem>>, vector<84x128xbf16>
    %c7 = arith.constant 7 : index
    %c0_39 = arith.constant 0 : index
    %43 = vector.load %arg10[%c7, %c0_39] : memref<96x128xbf16, #tpu.memory_space<vmem>>, vector<84x128xbf16>
    %44 = tpu.concatenate %41, %42, %43 in 1 : vector<84x128xbf16>, vector<84x128xbf16>, vector<84x128xbf16> -> vector<84x384xbf16>
    %c0_40 = arith.constant 0 : index
    %c0_41 = arith.constant 0 : index
    %c0_42 = arith.constant 0 : index
    %45 = vector.load %arg6[%c0_40, %c0_41, %c0_42] : memref<3x384x128xbf16, #tpu.memory_space<vmem>>, vector<1x384x128xbf16>
    %46 = vector.shape_cast %45 : vector<1x384x128xbf16> to vector<384x128xbf16>
    %cst_43 = arith.constant dense<0.000000e+00> : vector<84x128xf32>
    %47 = tpu.matmul %44, %46, %cst_43 {dimension_numbers = #tpu.dot_dimension_numbers<[1], [0], [0], [1], [0, 0, 1, 1], [], []>} : vector<84x384xbf16>, vector<384x128xbf16>, vector<84x128xf32> -> vector<84x128xf32>
    %c0_44 = arith.constant 0 : index
    %c0_45 = arith.constant 0 : index
    %c0_46 = arith.constant 0 : index
    %48 = vector.load %arg7[%c0_44, %c0_45, %c0_46] : memref<3x1x128xf32, #tpu.memory_space<vmem>>, vector<1x1x128xf32>
    %49 = vector.shape_cast %48 : vector<1x1x128xf32> to vector<1x128xf32>
    %50 = vector.broadcast %49 : vector<1x128xf32> to vector<84x128xf32>
    %51 = arith.addf %47, %50 : vector<84x128xf32>
    %c6_47 = arith.constant 6 : index
    %c0_48 = arith.constant 0 : index
    %52 = vector.load %arg9[%c6_47, %c0_48] : memref<96x128xf32, #tpu.memory_space<vmem>>, vector<84x128xf32>
    %53 = arith.addf %52, %51 : vector<84x128xf32>
    %c6_49 = arith.constant 6 : index
    %c0_50 = arith.constant 0 : index
    %54 = vector.load %arg9[%c6_49, %c0_50] : memref<96x128xf32, #tpu.memory_space<vmem>>, vector<84x128xf32>
    tpu.vector_store %arg9[%c6_49, %c0_50], %53 {strides = array<i32>} : memref<96x128xf32, #tpu.memory_space<vmem>>, vector<84x128xf32>,
    %c0_i32_51 = arith.constant 0 : i32
    %55 = arith.cmpi eq, %arg1, %c0_i32_51 : i32
    %56 = arith.extui %55 : i1 to i32
    %c0_i32_52 = arith.constant 0 : i32
    %57 = arith.cmpi ne, %56, %c0_i32_52 : i32
    scf.if %57 {
      %cst_143 = arith.constant 0.000000e+00 : f32
      %163 = vector.broadcast %cst_143 : f32 to vector<10x128xf32>
      %c6_144 = arith.constant 6 : index
      %c0_145 = arith.constant 0 : index
      %164 = vector.load %arg9[%c6_144, %c0_145] : memref<96x128xf32, #tpu.memory_space<vmem>>, vector<10x128xf32>
      tpu.vector_store %arg9[%c6_144, %c0_145], %163 {strides = array<i32>} : memref<96x128xf32, #tpu.memory_space<vmem>>, vector<10x128xf32>,
    } else {
    }
    %c3_i32_53 = arith.constant 3 : i32
    %58 = arith.cmpi eq, %arg1, %c3_i32_53 : i32
    %59 = arith.extui %58 : i1 to i32
    %c0_i32_54 = arith.constant 0 : i32
    %60 = arith.cmpi ne, %59, %c0_i32_54 : i32
    scf.if %60 {
      %cst_143 = arith.constant 0.000000e+00 : f32
      %163 = vector.broadcast %cst_143 : f32 to vector<10x128xf32>
      %c80_144 = arith.constant 80 : index
      %c0_145 = arith.constant 0 : index
      %164 = vector.load %arg9[%c80_144, %c0_145] : memref<96x128xf32, #tpu.memory_space<vmem>>, vector<10x128xf32>
      tpu.vector_store %arg9[%c80_144, %c0_145], %163 {strides = array<i32>} : memref<96x128xf32, #tpu.memory_space<vmem>>, vector<10x128xf32>,
    } else {
    }
    %c6_55 = arith.constant 6 : index
    %c0_56 = arith.constant 0 : index
    %61 = vector.load %arg9[%c6_55, %c0_56] : memref<96x128xf32, #tpu.memory_space<vmem>>, vector<84x128xf32>
    %cst_57 = arith.constant 0.000000e+00 : f32
    %62 = vector.broadcast %cst_57 : f32 to vector<84x128xf32>
    %63 = arith.cmpf ogt, %61, %62 : vector<84x128xf32>
    %cst_58 = arith.constant 1.000000e-01 : f32
    %64 = vector.broadcast %cst_58 : f32 to vector<84x128xf32>
    %65 = arith.mulf %64, %61 : vector<84x128xf32>
    %66 = arith.select %63, %61, %65 : vector<84x128xi1>, vector<84x128xf32>
    %67 = arith.truncf %66 : vector<84x128xf32> to vector<84x128xbf16>
    %c6_59 = arith.constant 6 : index
    %c0_60 = arith.constant 0 : index
    %68 = vector.load %arg10[%c6_59, %c0_60] : memref<96x128xbf16, #tpu.memory_space<vmem>>, vector<84x128xbf16>
    tpu.vector_store %arg10[%c6_59, %c0_60], %67 {strides = array<i32>} : memref<96x128xbf16, #tpu.memory_space<vmem>>, vector<84x128xbf16>,
    %c6_61 = arith.constant 6 : index
    %c0_62 = arith.constant 0 : index
    %69 = vector.load %arg10[%c6_61, %c0_62] : memref<96x128xbf16, #tpu.memory_space<vmem>>, vector<78x128xbf16>
    %c9 = arith.constant 9 : index
    %c0_63 = arith.constant 0 : index
    %70 = vector.load %arg10[%c9, %c0_63] : memref<96x128xbf16, #tpu.memory_space<vmem>>, vector<78x128xbf16>
    %c12 = arith.constant 12 : index
    %c0_64 = arith.constant 0 : index
    %71 = vector.load %arg10[%c12, %c0_64] : memref<96x128xbf16, #tpu.memory_space<vmem>>, vector<78x128xbf16>
    %72 = tpu.concatenate %69, %70, %71 in 1 : vector<78x128xbf16>, vector<78x128xbf16>, vector<78x128xbf16> -> vector<78x384xbf16>
    %c1 = arith.constant 1 : index
    %c0_65 = arith.constant 0 : index
    %c0_66 = arith.constant 0 : index
    %73 = vector.load %arg4[%c1, %c0_65, %c0_66] : memref<3x384x128xbf16, #tpu.memory_space<vmem>>, vector<1x384x128xbf16>
    %74 = vector.shape_cast %73 : vector<1x384x128xbf16> to vector<384x128xbf16>
    %cst_67 = arith.constant dense<0.000000e+00> : vector<78x128xf32>
    %75 = tpu.matmul %72, %74, %cst_67 {dimension_numbers = #tpu.dot_dimension_numbers<[1], [0], [0], [1], [0, 0, 1, 1], [], []>} : vector<78x384xbf16>, vector<384x128xbf16>, vector<78x128xf32> -> vector<78x128xf32>
    %c1_68 = arith.constant 1 : index
    %c0_69 = arith.constant 0 : index
    %c0_70 = arith.constant 0 : index
    %76 = vector.load %arg5[%c1_68, %c0_69, %c0_70] : memref<3x1x128xf32, #tpu.memory_space<vmem>>, vector<1x1x128xf32>
    %77 = vector.shape_cast %76 : vector<1x1x128xf32> to vector<1x128xf32>
    %78 = vector.broadcast %77 : vector<1x128xf32> to vector<78x128xf32>
    %79 = arith.addf %75, %78 : vector<78x128xf32>
    %cst_71 = arith.constant 0.000000e+00 : f32
    %80 = vector.broadcast %cst_71 : f32 to vector<78x128xf32>
    %81 = arith.cmpf ogt, %79, %80 : vector<78x128xf32>
    %cst_72 = arith.constant 1.000000e-01 : f32
    %82 = vector.broadcast %cst_72 : f32 to vector<78x128xf32>
    %83 = arith.mulf %82, %79 : vector<78x128xf32>
    %84 = arith.select %81, %79, %83 : vector<78x128xi1>, vector<78x128xf32>
    %85 = arith.truncf %84 : vector<78x128xf32> to vector<78x128xbf16>
    %c9_73 = arith.constant 9 : index
    %c0_74 = arith.constant 0 : index
    %86 = vector.load %arg10[%c9_73, %c0_74] : memref<96x128xbf16, #tpu.memory_space<vmem>>, vector<78x128xbf16>
    tpu.vector_store %arg10[%c9_73, %c0_74], %85 {strides = array<i32>} : memref<96x128xbf16, #tpu.memory_space<vmem>>, vector<78x128xbf16>,
    %c0_i32_75 = arith.constant 0 : i32
    %87 = arith.cmpi eq, %arg1, %c0_i32_75 : i32
    %88 = arith.extui %87 : i1 to i32
    %c0_i32_76 = arith.constant 0 : i32
    %89 = arith.cmpi ne, %88, %c0_i32_76 : i32
    scf.if %89 {
      %cst_143 = arith.constant 0.000000e+00 : bf16
      %163 = vector.broadcast %cst_143 : bf16 to vector<7x128xbf16>
      %c9_144 = arith.constant 9 : index
      %c0_145 = arith.constant 0 : index
      %164 = vector.load %arg10[%c9_144, %c0_145] : memref<96x128xbf16, #tpu.memory_space<vmem>>, vector<7x128xbf16>
      tpu.vector_store %arg10[%c9_144, %c0_145], %163 {strides = array<i32>} : memref<96x128xbf16, #tpu.memory_space<vmem>>, vector<7x128xbf16>,
    } else {
    }
    %c3_i32_77 = arith.constant 3 : i32
    %90 = arith.cmpi eq, %arg1, %c3_i32_77 : i32
    %91 = arith.extui %90 : i1 to i32
    %c0_i32_78 = arith.constant 0 : i32
    %92 = arith.cmpi ne, %91, %c0_i32_78 : i32
    scf.if %92 {
      %cst_143 = arith.constant 0.000000e+00 : bf16
      %163 = vector.broadcast %cst_143 : bf16 to vector<7x128xbf16>
      %c80_144 = arith.constant 80 : index
      %c0_145 = arith.constant 0 : index
      %164 = vector.load %arg10[%c80_144, %c0_145] : memref<96x128xbf16, #tpu.memory_space<vmem>>, vector<7x128xbf16>
      tpu.vector_store %arg10[%c80_144, %c0_145], %163 {strides = array<i32>} : memref<96x128xbf16, #tpu.memory_space<vmem>>, vector<7x128xbf16>,
    } else {
    }
    %c9_79 = arith.constant 9 : index
    %c0_80 = arith.constant 0 : index
    %93 = vector.load %arg10[%c9_79, %c0_80] : memref<96x128xbf16, #tpu.memory_space<vmem>>, vector<76x128xbf16>
    %c10 = arith.constant 10 : index
    %c0_81 = arith.constant 0 : index
    %94 = vector.load %arg10[%c10, %c0_81] : memref<96x128xbf16, #tpu.memory_space<vmem>>, vector<76x128xbf16>
    %c11 = arith.constant 11 : index
    %c0_82 = arith.constant 0 : index
    %95 = vector.load %arg10[%c11, %c0_82] : memref<96x128xbf16, #tpu.memory_space<vmem>>, vector<76x128xbf16>
    %96 = tpu.concatenate %93, %94, %95 in 1 : vector<76x128xbf16>, vector<76x128xbf16>, vector<76x128xbf16> -> vector<76x384xbf16>
    %c1_83 = arith.constant 1 : index
    %c0_84 = arith.constant 0 : index
    %c0_85 = arith.constant 0 : index
    %97 = vector.load %arg6[%c1_83, %c0_84, %c0_85] : memref<3x384x128xbf16, #tpu.memory_space<vmem>>, vector<1x384x128xbf16>
    %98 = vector.shape_cast %97 : vector<1x384x128xbf16> to vector<384x128xbf16>
    %cst_86 = arith.constant dense<0.000000e+00> : vector<76x128xf32>
    %99 = tpu.matmul %96, %98, %cst_86 {dimension_numbers = #tpu.dot_dimension_numbers<[1], [0], [0], [1], [0, 0, 1, 1], [], []>} : vector<76x384xbf16>, vector<384x128xbf16>, vector<76x128xf32> -> vector<76x128xf32>
    %c1_87 = arith.constant 1 : index
    %c0_88 = arith.constant 0 : index
    %c0_89 = arith.constant 0 : index
    %100 = vector.load %arg7[%c1_87, %c0_88, %c0_89] : memref<3x1x128xf32, #tpu.memory_space<vmem>>, vector<1x1x128xf32>
    %101 = vector.shape_cast %100 : vector<1x1x128xf32> to vector<1x128xf32>
    %102 = vector.broadcast %101 : vector<1x128xf32> to vector<76x128xf32>
    %103 = arith.addf %99, %102 : vector<76x128xf32>
    %c10_90 = arith.constant 10 : index
    %c0_91 = arith.constant 0 : index
    %104 = vector.load %arg9[%c10_90, %c0_91] : memref<96x128xf32, #tpu.memory_space<vmem>>, vector<76x128xf32>
    %105 = arith.addf %104, %103 : vector<76x128xf32>
    %c10_92 = arith.constant 10 : index
    %c0_93 = arith.constant 0 : index
    %106 = vector.load %arg9[%c10_92, %c0_93] : memref<96x128xf32, #tpu.memory_space<vmem>>, vector<76x128xf32>
    tpu.vector_store %arg9[%c10_92, %c0_93], %105 {strides = array<i32>} : memref<96x128xf32, #tpu.memory_space<vmem>>, vector<76x128xf32>,
    %c0_i32_94 = arith.constant 0 : i32
    %107 = arith.cmpi eq, %arg1, %c0_i32_94 : i32
    %108 = arith.extui %107 : i1 to i32
    %c0_i32_95 = arith.constant 0 : i32
    %109 = arith.cmpi ne, %108, %c0_i32_95 : i32
    scf.if %109 {
      %cst_143 = arith.constant 0.000000e+00 : f32
      %163 = vector.broadcast %cst_143 : f32 to vector<6x128xf32>
      %c10_144 = arith.constant 10 : index
      %c0_145 = arith.constant 0 : index
      %164 = vector.load %arg9[%c10_144, %c0_145] : memref<96x128xf32, #tpu.memory_space<vmem>>, vector<6x128xf32>
      tpu.vector_store %arg9[%c10_144, %c0_145], %163 {strides = array<i32>} : memref<96x128xf32, #tpu.memory_space<vmem>>, vector<6x128xf32>,
    } else {
    }
    %c3_i32_96 = arith.constant 3 : i32
    %110 = arith.cmpi eq, %arg1, %c3_i32_96 : i32
    %111 = arith.extui %110 : i1 to i32
    %c0_i32_97 = arith.constant 0 : i32
    %112 = arith.cmpi ne, %111, %c0_i32_97 : i32
    scf.if %112 {
      %cst_143 = arith.constant 0.000000e+00 : f32
      %163 = vector.broadcast %cst_143 : f32 to vector<6x128xf32>
      %c80_144 = arith.constant 80 : index
      %c0_145 = arith.constant 0 : index
      %164 = vector.load %arg9[%c80_144, %c0_145] : memref<96x128xf32, #tpu.memory_space<vmem>>, vector<6x128xf32>
      tpu.vector_store %arg9[%c80_144, %c0_145], %163 {strides = array<i32>} : memref<96x128xf32, #tpu.memory_space<vmem>>, vector<6x128xf32>,
    } else {
    }
    %c10_98 = arith.constant 10 : index
    %c0_99 = arith.constant 0 : index
    %113 = vector.load %arg9[%c10_98, %c0_99] : memref<96x128xf32, #tpu.memory_space<vmem>>, vector<76x128xf32>
    %cst_100 = arith.constant 0.000000e+00 : f32
    %114 = vector.broadcast %cst_100 : f32 to vector<76x128xf32>
    %115 = arith.cmpf ogt, %113, %114 : vector<76x128xf32>
    %cst_101 = arith.constant 1.000000e-01 : f32
    %116 = vector.broadcast %cst_101 : f32 to vector<76x128xf32>
    %117 = arith.mulf %116, %113 : vector<76x128xf32>
    %118 = arith.select %115, %113, %117 : vector<76x128xi1>, vector<76x128xf32>
    %119 = arith.truncf %118 : vector<76x128xf32> to vector<76x128xbf16>
    %c10_102 = arith.constant 10 : index
    %c0_103 = arith.constant 0 : index
    %120 = vector.load %arg10[%c10_102, %c0_103] : memref<96x128xbf16, #tpu.memory_space<vmem>>, vector<76x128xbf16>
    tpu.vector_store %arg10[%c10_102, %c0_103], %119 {strides = array<i32>} : memref<96x128xbf16, #tpu.memory_space<vmem>>, vector<76x128xbf16>,
    %c10_104 = arith.constant 10 : index
    %c0_105 = arith.constant 0 : index
    %121 = vector.load %arg10[%c10_104, %c0_105] : memref<96x128xbf16, #tpu.memory_space<vmem>>, vector<66x128xbf16>
    %c15 = arith.constant 15 : index
    %c0_106 = arith.constant 0 : index
    %122 = vector.load %arg10[%c15, %c0_106] : memref<96x128xbf16, #tpu.memory_space<vmem>>, vector<66x128xbf16>
    %c20 = arith.constant 20 : index
    %c0_107 = arith.constant 0 : index
    %123 = vector.load %arg10[%c20, %c0_107] : memref<96x128xbf16, #tpu.memory_space<vmem>>, vector<66x128xbf16>
    %124 = tpu.concatenate %121, %122, %123 in 1 : vector<66x128xbf16>, vector<66x128xbf16>, vector<66x128xbf16> -> vector<66x384xbf16>
    %c2 = arith.constant 2 : index
    %c0_108 = arith.constant 0 : index
    %c0_109 = arith.constant 0 : index
    %125 = vector.load %arg4[%c2, %c0_108, %c0_109] : memref<3x384x128xbf16, #tpu.memory_space<vmem>>, vector<1x384x128xbf16>
    %126 = vector.shape_cast %125 : vector<1x384x128xbf16> to vector<384x128xbf16>
    %cst_110 = arith.constant dense<0.000000e+00> : vector<66x128xf32>
    %127 = tpu.matmul %124, %126, %cst_110 {dimension_numbers = #tpu.dot_dimension_numbers<[1], [0], [0], [1], [0, 0, 1, 1], [], []>} : vector<66x384xbf16>, vector<384x128xbf16>, vector<66x128xf32> -> vector<66x128xf32>
    %c2_111 = arith.constant 2 : index
    %c0_112 = arith.constant 0 : index
    %c0_113 = arith.constant 0 : index
    %128 = vector.load %arg5[%c2_111, %c0_112, %c0_113] : memref<3x1x128xf32, #tpu.memory_space<vmem>>, vector<1x1x128xf32>
    %129 = vector.shape_cast %128 : vector<1x1x128xf32> to vector<1x128xf32>
    %130 = vector.broadcast %129 : vector<1x128xf32> to vector<66x128xf32>
    %131 = arith.addf %127, %130 : vector<66x128xf32>
    %cst_114 = arith.constant 0.000000e+00 : f32
    %132 = vector.broadcast %cst_114 : f32 to vector<66x128xf32>
    %133 = arith.cmpf ogt, %131, %132 : vector<66x128xf32>
    %cst_115 = arith.constant 1.000000e-01 : f32
    %134 = vector.broadcast %cst_115 : f32 to vector<66x128xf32>
    %135 = arith.mulf %134, %131 : vector<66x128xf32>
    %136 = arith.select %133, %131, %135 : vector<66x128xi1>, vector<66x128xf32>
    %137 = arith.truncf %136 : vector<66x128xf32> to vector<66x128xbf16>
    %c15_116 = arith.constant 15 : index
    %c0_117 = arith.constant 0 : index
    %138 = vector.load %arg10[%c15_116, %c0_117] : memref<96x128xbf16, #tpu.memory_space<vmem>>, vector<66x128xbf16>
    tpu.vector_store %arg10[%c15_116, %c0_117], %137 {strides = array<i32>} : memref<96x128xbf16, #tpu.memory_space<vmem>>, vector<66x128xbf16>,
    %c0_i32_118 = arith.constant 0 : i32
    %139 = arith.cmpi eq, %arg1, %c0_i32_118 : i32
    %140 = arith.extui %139 : i1 to i32
    %c0_i32_119 = arith.constant 0 : i32
    %141 = arith.cmpi ne, %140, %c0_i32_119 : i32
    scf.if %141 {
      %cst_143 = arith.constant 0.000000e+00 : bf16
      %163 = vector.broadcast %cst_143 : bf16 to vector<1x128xbf16>
      %c15_144 = arith.constant 15 : index
      %c0_145 = arith.constant 0 : index
      %164 = vector.load %arg10[%c15_144, %c0_145] : memref<96x128xbf16, #tpu.memory_space<vmem>>, vector<1x128xbf16>
      tpu.vector_store %arg10[%c15_144, %c0_145], %163 {strides = array<i32>} : memref<96x128xbf16, #tpu.memory_space<vmem>>, vector<1x128xbf16>,
    } else {
    }
    %c3_i32_120 = arith.constant 3 : i32
    %142 = arith.cmpi eq, %arg1, %c3_i32_120 : i32
    %143 = arith.extui %142 : i1 to i32
    %c0_i32_121 = arith.constant 0 : i32
    %144 = arith.cmpi ne, %143, %c0_i32_121 : i32
    scf.if %144 {
      %cst_143 = arith.constant 0.000000e+00 : bf16
      %163 = vector.broadcast %cst_143 : bf16 to vector<1x128xbf16>
      %c80_144 = arith.constant 80 : index
      %c0_145 = arith.constant 0 : index
      %164 = vector.load %arg10[%c80_144, %c0_145] : memref<96x128xbf16, #tpu.memory_space<vmem>>, vector<1x128xbf16>
      tpu.vector_store %arg10[%c80_144, %c0_145], %163 {strides = array<i32>} : memref<96x128xbf16, #tpu.memory_space<vmem>>, vector<1x128xbf16>,
    } else {
    }
    %c15_122 = arith.constant 15 : index
    %c0_123 = arith.constant 0 : index
    %145 = vector.load %arg10[%c15_122, %c0_123] : memref<96x128xbf16, #tpu.memory_space<vmem>>, vector<64x128xbf16>
    %c16_124 = arith.constant 16 : index
    %c0_125 = arith.constant 0 : index
    %146 = vector.load %arg10[%c16_124, %c0_125] : memref<96x128xbf16, #tpu.memory_space<vmem>>, vector<64x128xbf16>
    %c17 = arith.constant 17 : index
    %c0_126 = arith.constant 0 : index
    %147 = vector.load %arg10[%c17, %c0_126] : memref<96x128xbf16, #tpu.memory_space<vmem>>, vector<64x128xbf16>
    %148 = tpu.concatenate %145, %146, %147 in 1 : vector<64x128xbf16>, vector<64x128xbf16>, vector<64x128xbf16> -> vector<64x384xbf16>
    %c2_127 = arith.constant 2 : index
    %c0_128 = arith.constant 0 : index
    %c0_129 = arith.constant 0 : index
    %149 = vector.load %arg6[%c2_127, %c0_128, %c0_129] : memref<3x384x128xbf16, #tpu.memory_space<vmem>>, vector<1x384x128xbf16>
    %150 = vector.shape_cast %149 : vector<1x384x128xbf16> to vector<384x128xbf16>
    %cst_130 = arith.constant dense<0.000000e+00> : vector<64x128xf32>
    %151 = tpu.matmul %148, %150, %cst_130 {dimension_numbers = #tpu.dot_dimension_numbers<[1], [0], [0], [1], [0, 0, 1, 1], [], []>} : vector<64x384xbf16>, vector<384x128xbf16>, vector<64x128xf32> -> vector<64x128xf32>
    %c2_131 = arith.constant 2 : index
    %c0_132 = arith.constant 0 : index
    %c0_133 = arith.constant 0 : index
    %152 = vector.load %arg7[%c2_131, %c0_132, %c0_133] : memref<3x1x128xf32, #tpu.memory_space<vmem>>, vector<1x1x128xf32>
    %153 = vector.shape_cast %152 : vector<1x1x128xf32> to vector<1x128xf32>
    %154 = vector.broadcast %153 : vector<1x128xf32> to vector<64x128xf32>
    %155 = arith.addf %151, %154 : vector<64x128xf32>
    %c16_134 = arith.constant 16 : index
    %c0_135 = arith.constant 0 : index
    %156 = vector.load %arg9[%c16_134, %c0_135] : memref<96x128xf32, #tpu.memory_space<vmem>>, vector<64x128xf32>
    %157 = arith.addf %156, %155 : vector<64x128xf32>
    %c16_136 = arith.constant 16 : index
    %c0_137 = arith.constant 0 : index
    %158 = vector.load %arg9[%c16_136, %c0_137] : memref<96x128xf32, #tpu.memory_space<vmem>>, vector<64x128xf32>
    tpu.vector_store %arg9[%c16_136, %c0_137], %157 {strides = array<i32>} : memref<96x128xf32, #tpu.memory_space<vmem>>, vector<64x128xf32>,
    %c16_138 = arith.constant 16 : index
    %c0_139 = arith.constant 0 : index
    %159 = vector.load %arg9[%c16_138, %c0_139] : memref<96x128xf32, #tpu.memory_space<vmem>>, vector<64x128xf32>
    %c0_140 = arith.constant 0 : index
    %c0_141 = arith.constant 0 : index
    %c0_142 = arith.constant 0 : index
    %160 = vector.load %arg8[%c0_140, %c0_141, %c0_142] : memref<1x64x128xf32, #tpu.memory_space<vmem>>, vector<1x64x128xf32>
    %161 = vector.shape_cast %160 : vector<1x64x128xf32> to vector<64x128xf32>
    %162 = vector.shape_cast %159 : vector<64x128xf32> to vector<1x64x128xf32>
    tpu.vector_store %arg8[%c0_140, %c0_141, %c0_142], %162 {strides = array<i32>} : memref<1x64x128xf32, #tpu.memory_space<vmem>>, vector<1x64x128xf32>,
    return
  }
  func.func @transform_0(%arg0: i32, %arg1: i32) -> (i32, i32, i32) {
    %c0_i32 = arith.constant 0 : i32
    %c0_i32_0 = arith.constant 0 : i32
    return %arg0, %arg1, %c0_i32 : i32, i32, i32
  }
  func.func @transform_1(%arg0: i32, %arg1: i32) -> (i32, i32, i32, i32) {
    %c0_i32 = arith.constant 0 : i32
    %c0_i32_0 = arith.constant 0 : i32
    %c0_i32_1 = arith.constant 0 : i32
    return %arg0, %arg1, %c0_i32, %c0_i32_0 : i32, i32, i32, i32
  }
  func.func @transform_2(%arg0: i32, %arg1: i32) -> (i32, i32, i32) {
    %c0_i32 = arith.constant 0 : i32
    %c0_i32_0 = arith.constant 0 : i32
    %c0_i32_1 = arith.constant 0 : i32
    %c0_i32_2 = arith.constant 0 : i32
    return %c0_i32, %c0_i32_0, %c0_i32_1 : i32, i32, i32
  }
  func.func @transform_3(%arg0: i32, %arg1: i32) -> (i32, i32, i32) {
    %c0_i32 = arith.constant 0 : i32
    %c0_i32_0 = arith.constant 0 : i32
    %c0_i32_1 = arith.constant 0 : i32
    %c0_i32_2 = arith.constant 0 : i32
    return %c0_i32, %c0_i32_0, %c0_i32_1 : i32, i32, i32
  }
  func.func @transform_4(%arg0: i32, %arg1: i32) -> (i32, i32, i32) {
    %c0_i32 = arith.constant 0 : i32
    %c0_i32_0 = arith.constant 0 : i32
    %c0_i32_1 = arith.constant 0 : i32
    %c0_i32_2 = arith.constant 0 : i32
    return %c0_i32, %c0_i32_0, %c0_i32_1 : i32, i32, i32
  }
  func.func @transform_5(%arg0: i32, %arg1: i32) -> (i32, i32, i32) {
    %c0_i32 = arith.constant 0 : i32
    %c0_i32_0 = arith.constant 0 : i32
    %c0_i32_1 = arith.constant 0 : i32
    %c0_i32_2 = arith.constant 0 : i32
    return %c0_i32, %c0_i32_0, %c0_i32_1 : i32, i32, i32
  }
  func.func @transform_6(%arg0: i32, %arg1: i32) -> (i32, i32, i32) {
    %c0_i32 = arith.constant 0 : i32
    %c0_i32_0 = arith.constant 0 : i32
    return %arg0, %arg1, %c0_i32 : i32, i32, i32
  }
}

</mosaic_0001>

<bundles_post_ra>
// kernel: resblock1_forward.1
= control target key start
LH: loop header
LB: loop body
LE: loop exit
PB: predicated region body
PF: predicated region fallthrough
CT: control target
= control target key end

     0   :  { %s5783_s21 = smov 0   ;;  %s5785_s22 = smov 0   ;;  %s6876_s0 = inlined_call_operand.vmem [shape: f32[2,256,128], index: 0, kind: input, shape index: {}]   ;;  %s6877_s1 = inlined_call_operand.vmem [shape: f32[2,4,32,128], index: 1, kind: input, shape index: {}]   ;;  %s6878_s2 = inlined_call_operand.vmem [shape: bf16[3,384,128], index: 2, kind: input, shape index: {}]   ;;  %s6879_s3 = inlined_call_operand.vmem [shape: f32[3,1,128], index: 3, kind: input, shape index: {}]   ;;  %s6880_s4 = inlined_call_operand.vmem [shape: bf16[3,384,128], index: 4, kind: input, shape index: {}]   ;;  %s6881_s5 = inlined_call_operand.vmem [shape: f32[3,1,128], index: 5, kind: input, shape index: {}]   ;;  %s6882_s6 = inlined_call_operand.vmem [shape: f32[2,256,128], index: 6, kind: output, shape index: {}]  }
   0x1   :  { %s5787_s23 = smov 0   ;;  %s5789_s24 = smov 0  }
   0x2   :  { %s5791_s25 = smov 0  }
   0x3 LB: > { %s25_s26 = sadd.s32 1, %s5732_s23  ;;  %s28_s27 = sadd.s32 1, %s5736_s24  ;;  %s5740_s25 = sphi %s5791_s25, %s16_s25   ;;  %s5736_s24 = sphi %s5789_s24, %s6908_s24   ;;  %s5732_s23 = sphi %s5787_s23, %s6907_s23   ;;  %s5728_s22 = sphi %s5785_s22, %s6906_s22   ;;  %s5724_s21 = sphi %s5783_s21, %s6905_s21  }
   0x4   : > { %p26_p0 = scmp.ge.s32.totalorder %s25_s26, 4  ;;  %p4472_p1 = scmp.ge.s32.totalorder %s5740_s25, 1 }
   0x5   : > { %p249_p2 = scmp.lt.s32.totalorder %s5740_s25, 9 }
   0x6   : > { %s6910_s26 = smov (%p26_p0, %s25_s26), 0  ;;  %s6912_s27 = smov (!%p26_p0, %s28_s27), %s5736_s24 }
   0x7   : > { %p250_p3 = pnand %p4472_p1, %p249_p2  ;;  %p30_p4 = scmp.ge.s32.totalorder %s6912_s27, 2 }
   0x8   : > { %s4473_s8 = sshll.u32 (!%p250_p3), %s5724_s21, 3  ;;  %p297_p5 = scmp.lt.s32.totalorder (!%p250_p3), %s5728_s22, 1 }
   0x9   : > { %s6914_s27 = smov (%p30_p4, %s6912_s27), 0  ;;  %253 = sbr.rel (%p250_p3) target bundleno = 1684 (0x694), region = 44 }
   0xa   : > { %p299_p6 = scmp.lt.s32.totalorder (!%p250_p3), %s4473_s8, 31  ;;  %p308_p7 = scmp.lt.s32.totalorder (!%p250_p3), %s5724_s21, 3 }
   0xb   : > { %p4594_p8 = scmp.ne.s32.totalorder (!%p250_p3), %s5724_s21, 0 }
   0xe   : > { %v5342_v0 = vld [vmem:[%s6878_s2 + $0x38] sm:$0xff]  ;;  %v5341_v3 = vld [vmem:[%s6878_s2 + $0x30] sm:$0xff]  ;;  %s6916_s22 = smov (!%p297_p5, %s5728_s22), 1  ;;  %s6918_s8 = smov (!%p299_p6, %s4473_s8), 31  ;;  %v5340_v6 = vld [vmem:[%s6878_s2 + $0x28] sm:$0xff]  ;;  %vm416_vm2 = vcmask 1041408  }
   0xf   : > { %v5358_v1 = vld [vmem:[%s6878_s2 + $0xb8] sm:$0xff]  ;;  %833 = vmatpush.bf16.msra.mxu0 %v5342_v0  ;;  %v5357_v4 = vld [vmem:[%s6878_s2 + $0xb0] sm:$0xff]  ;;  %s4474_s17 = sshll.u32 %s6916_s22, 5  ;;  %v5356_v7 = vld [vmem:[%s6878_s2 + $0xa8] sm:$0xff]  ;;  %s4477_s7 = sshll.u32 %s6916_s22, 4  ;;  %vm417_vm5 = vcmask 1045508  }
  0x10   : > { %v5350_v2 = vld [vmem:[%s6878_s2 + $0x78] sm:$0xff]  ;;  %909 = vmatpush.bf16.msra.mxu2 %v5358_v1  ;;  %v5349_v5 = vld [vmem:[%s6878_s2 + $0x70] sm:$0xff]  ;;  %s302_s18 = sadd.s32 %s4474_s17, %s6918_s8  ;;  %v5348_v8 = vld [vmem:[%s6878_s2 + $0x68] sm:$0xff]  ;;  %vm573_vm13 = vcmask 1046528   ;;  %vm637_vm14 = vcmask 1045504  }
  0x11   : > { %871 = vmatpush.bf16.msra.mxu1 %v5350_v2  ;;  %s4475_s30 = sshll.u32 %s302_s18, 3  ;;  %v5339_v13 = vld [vmem:[%s6878_s2 + $0x20] sm:$0xff]  ;;  %v5338_v18 = vld [vmem:[%s6878_s2 + $0x18] sm:$0xff]  ;;  %v5337_v25 = vld [vmem:[%s6878_s2 + $0x10] sm:$0xff]  ;;  %vm522_vm15 = vsmask.f32 7424 }
  0x12   : > { %s5851_s8 = scalar_lea.vmem %s6876_s0, %s4475_s30  ;;  %s5856_s15 = scalar_lea.vmem %s6882_s6, %s4475_s30  ;;  %v5355_v14 = vld [vmem:[%s6878_s2 + $0xa0] sm:$0xff]  ;;  %v5354_v19 = vld [vmem:[%s6878_s2 + $0x98] sm:$0xff]  ;;  %v5353_v26 = vld [vmem:[%s6878_s2 + $0x90] sm:$0xff] }
  0x13   : > { %834 = vmatpush.bf16.msra.mxu0 %v5341_v3  ;;  %s309_s22 = scalar_select %p308_p7, %s5724_s21, 3  ;;  %v330_v9 = vld [vmem:[%s5851_s8] sm:$0xff]  ;;  %v331_v10 = vld [vmem:[%s5851_s8 + $0x8] sm:$0xff]  ;;  %v332_v11 = vld [vmem:[%s5851_s8 + $0x10] sm:$0xff] }
  0x14   : > { %910 = vmatpush.bf16.msra.mxu2 %v5357_v4  ;;  %338 = vst [vmem:[#allocation2 + $0x10] sm:$0xff] %v330_v9  ;;  %v333_v12 = vld [vmem:[%s5851_s8 + $0x18] sm:$0xff]  ;;  %v334_v15 = vld [vmem:[%s5851_s8 + $0x20] sm:$0xff]  ;;  %v335_v17 = vld [vmem:[%s5851_s8 + $0x28] sm:$0xff] }
  0x15   : > { %872 = vmatpush.bf16.msra.mxu1 %v5349_v5  ;;  %s4476_s20 = sshll.u32 %s309_s22, 2  ;;  %339 = vst [vmem:[#allocation2 + $0x18] sm:$0xff] %v331_v10  ;;  %v5347_v16 = vld [vmem:[%s6878_s2 + $0x60] sm:$0xff]  ;;  %v336_v22 = vld [vmem:[%s5851_s8 + $0x30] sm:$0xff]  ;;  %v5346_v23 = vld [vmem:[%s6878_s2 + $0x58] sm:$0xff] }
  0x16   : > { %s312_s30 = sadd.s32 %s4477_s7, %s4476_s20  ;;  %340 = vst [vmem:[#allocation2 + $0x20] sm:$0xff] %v332_v11  ;;  %v5345_v29 = vld [vmem:[%s6878_s2 + $0x50] sm:$0xff]  ;;  %v337_v32 = vld [vmem:[%s5851_s8 + $0x38] sm:$0xff]  ;;  %v5336_v41 = vld [vmem:[%s6878_s2 + $0x8] sm:$0xff] }
  0x17   : > { %835 = vmatpush.bf16.msra.mxu0 %v5340_v6  ;;  %s4478_s9 = sshll.u32 %s312_s30, 3  ;;  %341 = vst [vmem:[#allocation2 + $0x28] sm:$0xff] %v333_v12  ;;  %v5352_v42 = vld [vmem:[%s6878_s2 + $0x88] sm:$0xff]  ;;  %v5335_v59 = vld [vmem:[%s6878_s2] sm:$0xff]  ;;  %vm5917_vm9 = vmor %vm416_vm2, %vm417_vm5 }
  0x18   : > { %911 = vmatpush.bf16.msra.mxu2 %v5356_v7  ;;  %s5883_s16 = scalar_lea.vmem %s6877_s1, %s4478_s9  ;;  %342 = vst [vmem:[#allocation2 + $0x30] sm:$0xff] %v334_v15  ;;  %v5344_v48 = vld [vmem:[%s6878_s2 + $0x48] sm:$0xff]  ;;  %v5351_v63 = vld [vmem:[%s6878_s2 + $0x80] sm:$0xff] }
  0x19   : > { %873 = vmatpush.bf16.msra.mxu1 %v5348_v8  ;;  %v326_v20 = vld [vmem:[%s5883_s16] sm:$0xff]  ;;  %v327_v21 = vld [vmem:[%s5883_s16 + $0x8] sm:$0xff]  ;;  %343 = vst [vmem:[#allocation2 + $0x38] sm:$0xff] %v335_v17  ;;  %v346_v40 = vld [vmem:[%s5883_s16 + $0x10] sm:$0xff] }
  0x1a   : > { %328 = vst [vmem:[#allocation2] sm:$0xff] %v326_v20  ;;  %v5343_v5 = vld [vmem:[%s6878_s2 + $0x40] sm:$0xff] }
  0x1b   : > { %836 = vmatpush.bf16.msra.mxu0 %v5339_v13  ;;  %329 = vst [vmem:[#allocation2 + $0x8] sm:$0xff] %v327_v21 }
  0x1c   : > { %912 = vmatpush.bf16.msra.mxu2 %v5355_v14  ;;  %v352_v24 = vld [vmem:[#allocation2 + $0x14] sm:$0xff]  ;;  %344 = vst [vmem:[#allocation2 + $0x40] sm:$0xff] %v336_v22 }
  0x1d   : > { %874 = vmatpush.bf16.msra.mxu1 %v5347_v16  ;;  %v353_v27 = vld [vmem:[#allocation2 + $0x1c] sm:$0xff]  ;;  %vm363_vm0 = vcmp.gt.f32.partialorder %v352_v24, 0.0  ;;  %v374_v28 = vmul.f32 0.1, %v352_v24  ;;  %345 = vst [vmem:[#allocation2 + $0x48] sm:$0xff] %v337_v32 }
  0x1e   : > { %vm364_vm1 = vcmp.gt.f32.partialorder %v353_v27, 0.0  ;;  %v375_v30 = vmul.f32 0.1, %v353_v27  ;;  %v354_v31 = vld [vmem:[#allocation2 + $0x24] sm:$0xff]  ;;  %348 = vst [vmem:[#allocation2 + $0x50] sm:$0xff] %v346_v40 }
  0x1f   : > { %837 = vmatpush.bf16.msra.mxu0 %v5338_v18  ;;  %v385_v33 = vsel %vm363_vm0, %v352_v24, %v374_v28  ;;  %v355_v34 = vld [vmem:[#allocation2 + $0x2c] sm:$0xff]  ;;  %vm365_vm3 = vcmp.gt.f32.partialorder %v354_v31, 0.0  ;;  %v376_v35 = vmul.f32 0.1, %v354_v31 }
  0x20   : > { %913 = vmatpush.bf16.msra.mxu2 %v5354_v19  ;;  %v386_v36 = vsel %vm364_vm1, %v353_v27, %v375_v30  ;;  %v396_v37 = vpack.c.bf16 %v385_v33, %v385_v33  ;;  %vm366_vm4 = vcmp.gt.f32.partialorder %v355_v34, 0.0  ;;  %v377_v38 = vmul.f32 0.1, %v355_v34  ;;  %v356_v39 = vld [vmem:[#allocation2 + $0x34] sm:$0xff] }
  0x21   : > { %875 = vmatpush.bf16.msra.mxu1 %v5346_v23  ;;  %v397_v43 = vpack.c.bf16 %v386_v36, %v386_v36  ;;  %v387_v44 = vsel %vm365_vm3, %v354_v31, %v376_v35  ;;  %vm367_vm6 = vcmp.gt.f32.partialorder %v356_v39, 0.0  ;;  %v378_v51 = vmul.f32 0.1, %v356_v39  ;;  %v347_v33 = vld [vmem:[%s5883_s16 + $0x18] sm:$0xff] }
  0x22   : > { %v350_v45 = vld [vmem:[#allocation2 + $0x4] sm:$0xff]  ;;  %v351_v46 = vld [vmem:[#allocation2 + $0xc] sm:$0xff]  ;;  %v424_v47 = vrot.slane %v396_v37, 6  ;;  %v388_v49 = vsel %vm366_vm4, %v355_v34, %v377_v38  ;;  %v398_v50 = vpack.c.bf16 %v387_v44, %v387_v44  ;;  %349 = vst [vmem:[#allocation2 + $0x58] sm:$0xff] %v347_v33  ;;  %vm1115_vm3 = vcmask 1043458  }
  0x23   : > { %838 = vmatpush.bf16.msra.mxu0 %v5337_v25  ;;  %vm361_vm7 = vcmp.gt.f32.partialorder %v350_v45, 0.0  ;;  %vm362_vm8 = vcmp.gt.f32.partialorder %v351_v46, 0.0  ;;  %v372_v52 = vmul.f32 0.1, %v350_v45  ;;  %v373_v53 = vmul.f32 0.1, %v351_v46 }
  0x24   : > { %914 = vmatpush.bf16.msra.mxu2 %v5353_v26  ;;  %v426_v54 = vrot.slane %v424_v47, 4  ;;  %v427_v55 = vrot.slane %v397_v43, 6  ;;  %v399_v56 = vpack.c.bf16 %v388_v49, %v388_v49  ;;  %v430_v57 = vrot.slane %v398_v50, 6  ;;  %v357_v58 = vld [vmem:[#allocation2 + $0x3c] sm:$0xff]  ;;  %v358_v10 = vld [vmem:[#allocation2 + $0x44] sm:$0xff] }
  0x25   : > { %876 = vmatpush.bf16.msra.mxu1 %v5345_v29  ;;  %v383_v60 = vsel %vm361_vm7, %v350_v45, %v372_v52  ;;  %v384_v61 = vsel %vm362_vm8, %v351_v46, %v373_v53  ;;  %vm368_vm10 = vcmp.gt.f32.partialorder %v357_v58, 0.0  ;;  %v379_v0 = vmul.f32 0.1, %v357_v58  ;;  %v359_v15 = vld [vmem:[#allocation2 + $0x4c] sm:$0xff] }
  0x26   : > { %v394_v1 = vpack.c.bf16 %v383_v60, %v383_v60  ;;  %v395_v2 = vpack.c.bf16 %v384_v61, %v384_v61  ;;  %v428_v3 = vsel %vm5917_vm9, %v426_v54, %v427_v55  ;;  %v429_v4 = vrot.slane %v427_v55, 4 }
  0x27   : > { %839 = vmatpush.bf16.msra.mxu0 %v5336_v41  ;;  %466 = vst [vmem:[#allocation3 + $0xc] sm:$0xf] %v428_v3  ;;  %v432_v6 = vrot.slane %v430_v57, 4  ;;  %v433_v7 = vrot.slane %v399_v56, 6  ;;  %v389_v8 = vsel %vm367_vm6, %v356_v39, %v378_v51  ;;  %v390_v9 = vsel %vm368_vm10, %v357_v58, %v379_v0 }
  0x28   : > { %915 = vmatpush.bf16.msra.mxu2 %v5352_v42  ;;  %v419_v11 = vrot.slane %v394_v1, 6  ;;  %v421_v12 = vrot.slane %v395_v2, 6  ;;  %v431_v13 = vsel %vm5917_vm9, %v429_v4, %v430_v57  ;;  %v400_v14 = vpack.c.bf16 %v389_v8, %v389_v8 }
  0x29   : > { %877 = vmatpush.bf16.msra.mxu1 %v5344_v48  ;;  %v434_v16 = vsel %vm5917_vm9, %v432_v6, %v433_v7  ;;  %467 = vst [vmem:[#allocation3 + $0x10] sm:$0xf] %v431_v13  ;;  %v401_v17 = vpack.c.bf16 %v390_v9, %v390_v9  ;;  %v435_v18 = vrot.slane %v433_v7, 4  ;;  %vm369_vm11 = vcmp.gt.f32.partialorder %v358_v10, 0.0  ;;  %v360_v8 = vld [vmem:[#allocation2 + $0x54] sm:$0xff] }
  0x2a   : > { %v420_v19 = vrot.slane %v419_v11, 4  ;;  %v423_v20 = vrot.slane %v421_v12, 4  ;;  %463 = vst [vmem:[#allocation3] sm:$0xc] %v419_v11  ;;  %v436_v21 = vrot.slane %v400_v14, 6  ;;  %vm370_vm12 = vcmp.gt.f32.partialorder %v359_v15, 0.0 }
  0x2b   : > { %840 = vmatpush.bf16.msra.mxu0 %v5335_v59  ;;  %468 = vst [vmem:[#allocation3 + $0x14] sm:$0xf] %v434_v16  ;;  %v439_v22 = vrot.slane %v401_v17, 6  ;;  %v380_v23 = vmul.f32 0.1, %v358_v10  ;;  %vm371_vm0 = vcmp.gt.f32.partialorder %v360_v8, 0.0 }
  0x2c   : > { %916 = vmatpush.bf16.msra.mxu2 %v5351_v63  ;;  %v422_v24 = vsel %vm5917_vm9, %v420_v19, %v421_v12  ;;  %v425_v25 = vsel %vm5917_vm9, %v423_v20, %v424_v47  ;;  %v437_v26 = vsel %vm5917_vm9, %v435_v18, %v436_v21  ;;  %v438_v27 = vrot.slane %v436_v21, 4 }
  0x2d   : > { %878 = vmatpush.bf16.msra.mxu1 %v5343_v5  ;;  %464 = vst [vmem:[#allocation3 + $0x4] sm:$0xf] %v422_v24  ;;  %v381_v28 = vmul.f32 0.1, %v359_v15  ;;  %v391_v29 = vsel %vm369_vm11, %v358_v10, %v380_v23  ;;  %v441_v32 = vrot.slane %v439_v22, 4 }
  0x2e   : > { %465 = vst [vmem:[#allocation3 + $0x8] sm:$0xf] %v425_v25  ;;  %v440_v30 = vsel %vm5917_vm9, %v438_v27, %v439_v22  ;;  %v402_v31 = vpack.c.bf16 %v391_v29, %v391_v29  ;;  %v382_v16 = vmul.f32 0.1, %v360_v8  ;;  %vm1116_vm4 = vsmask.f32 7946 }
  0x2f   : > { %469 = vst [vmem:[#allocation3 + $0x18] sm:$0xf] %v437_v26  ;;  %v392_v34 = vsel %vm370_vm12, %v359_v15, %v381_v28  ;;  %vm5996_vm5 = vmand %vm1115_vm3, %vm1116_vm4  ;;  %vm991_vm7 = vsmask.f32 2304  ;;  %vm992_vm8 = vsmask.f32 6416 }
  0x30   : > { %470 = vst [vmem:[#allocation3 + $0x1c] sm:$0xf] %v440_v30  ;;  %v403_v35 = vpack.c.bf16 %v392_v34, %v392_v34  ;;  %v442_v36 = vrot.slane %v402_v31, 6  ;;  %v393_v20 = vsel %vm371_vm0, %v360_v8, %v382_v16 }
  0x31   : > { %v5943_v37 = vld [vmem:[#allocation3] sm:$0xc]  ;;  %v404_v21 = vpack.c.bf16 %v393_v20, %v393_v20 }
  0x32   : > { %v488_v38 = vld [vmem:[#allocation3] sm:$0x8]  ;;  %v5945_v39 = vld [vmem:[#allocation3 + $0x10] sm:$0xff]  ;;  %v443_v40 = vsel %vm5917_vm9, %v441_v32, %v442_v36  ;;  %v444_v41 = vrot.slane %v442_v36, 4  ;;  %v501_v42 = vunpack.c.l.b16 %v5943_v37  ;;  %v445_v44 = vrot.slane %v403_v35, 6 }
  0x33   : > { %v571_v43 = vunpack.c.l.b16 %v488_v38  ;;  %471 = vst [vmem:[#allocation3 + $0x20] sm:$0xf] %v443_v40  ;;  %v577_v48 = vrot.slane %v5945_v39, 1  ;;  %v539_v49 = vshll.u32 %v5945_v39, 16  ;;  %v543_v17 = vshrl.u32 %v5945_v39, 16 }
  0x34   : > { %v476_v45 = vld [vmem:[#allocation3 + $0x4] sm:$0xf]  ;;  %v446_v50 = vsel %vm5917_vm9, %v444_v41, %v445_v44  ;;  %v447_v22 = vrot.slane %v445_v44, 4  ;;  %v647_v23 = vrot.slane %v5945_v39, 2  ;;  %v448_v27 = vrot.slane %v404_v21, 6 }
  0x35   : > { %v5331_v46 = vld [vmem:[#allocation3 + $0x8] sm:$0xff]  ;;  %v502_v47 = vunpack.c.l.b16 %v476_v45  ;;  %472 = vst [vmem:[#allocation3 + $0x24] sm:$0xf] %v446_v50  ;;  %v541_v60 = vrot.slane %v539_v49, 1 }
  0x36   : > { %v639_v52 = vrot.slane %v5331_v46, 2  ;;  %v575_v54 = vrot.slane %v5331_v46, 1  ;;  %v531_v55 = vshll.u32 %v5331_v46, 16  ;;  %v535_v56 = vshrl.u32 %v5331_v46, 16 }
  0x37   : > { %v513_v51 = vpack.c.b16 %v502_v47, %v501_v42  ;;  %v572_v53 = vpack.c.b16 %v502_v47, %v571_v43  ;;  %v5957_v7 = vld [vmem:[#allocation3 + $0x18] sm:$0xff]  ;;  %v545_v25 = vor.u32 %v543_v17, %v541_v60  ;;  %v449_v29 = vsel %vm5917_vm9, %v447_v22, %v448_v27  ;;  %v5992_v17 = vld [vmem:[%s6879_s3] ss:$0 sm:$0xff]  ;;  %vm6005_vm9 = vmor %vm991_vm7, %vm992_vm8 }
  0x38   : > { %v578_v59 = vsel %vm573_vm13, %v575_v54, %v577_v48  ;;  %v533_v1 = vrot.slane %v531_v55, 1  ;;  %v579_v15 = vrot.slane %v5957_v7, 1  ;;  %v547_v18 = vshll.u32 %v5957_v7, 16  ;;  %473 = vst [vmem:[#allocation3 + $0x28] sm:$0xf] %v449_v29 }
  0x39   : > { %v638_v57 = vrot.slane %v513_v51, 2  ;;  %v574_v58 = vrot.slane %v572_v53, 1  ;;  %v645_v61 = vrot.slane %v578_v59, 2  ;;  %v524_v63 = vshrl.u32 %v513_v51, 16 }
  0x3a   : > { %v526_v0 = vshll.u32 %v513_v51, 16  ;;  %v537_v6 = vor.u32 %v535_v56, %v533_v1  ;;  %v580_v24 = vsel %vm573_vm13, %v577_v48, %v579_v15  ;;  %v549_v26 = vrot.slane %v547_v18, 1 }
  0x3b   : > { %v640_v2 = vsel %vm637_vm14, %v638_v57, %v639_v52  ;;  %v576_v3 = vsel %vm573_vm13, %v574_v58, %v575_v54  ;;  %v651_v28 = vrot.slane %v580_v24, 2  ;;  %v450_v30 = vrot.slane %v448_v27, 4 }
  0x3c   : > { %841 = vmatmul.bf16.vlgmr.msra.gmra.mxu0 %v640_v2  ;;  %v644_v4 = vrot.slane %v576_v3, 2  ;;  %v528_v5 = vrot.slane %v526_v0, 1  ;;  %v542_v11 = vsel %vm522_vm15, %v537_v6, %v541_v60  ;;  %v648_v31 = vsel %vm637_vm14, %v639_v52, %v647_v23  ;;  %v5334_v35 = vld [vmem:[#allocation3 + $0x20] sm:$0xff] }
  0x3d   : > { %v642_v12 = vrot.slane %v542_v11, 2  ;;  %v550_v32 = vsel %vm522_vm15, %v545_v25, %v549_v26  ;;  %474 = vst [vmem:[#allocation3 + $0x2c] sm:$0x3] %v450_v30  ;;  %v652_v33 = vsel %vm637_vm14, %v645_v61, %v651_v28  ;;  %v581_v38 = vrot.slane %v5334_v35, 1 }
  0x3e   : > { %v646_v9 = vsel %vm637_vm14, %v644_v4, %v645_v61  ;;  %v529_v10 = vor.u32 %v528_v5, %v524_v63  ;;  %v649_v34 = vrot.slane %v550_v32, 2  ;;  %v551_v39 = vshrl.u32 %v5957_v7, 16 }
  0x3f   : > { %917 = vmatmul.bf16.vlgmr.msra.gmra.mxu2 %v646_v9  ;;  %v555_v62 = vshll.u32 %v5334_v35, 16  ;;  %v653_v40 = vrot.slane %v5957_v7, 2  ;;  %v582_v41 = vsel %vm573_vm13, %v579_v15, %v581_v38  ;;  %v485_v44 = vld [vmem:[#allocation3 + $0x28] sm:$0xf]  ;;  %v559_v56 = vshrl.u32 %v5334_v35, 16 }
  0x40   : > { %v534_v13 = vsel %vm522_vm15, %v529_v10, %v533_v1  ;;  %v650_v36 = vsel %vm637_vm14, %v642_v12, %v649_v34  ;;  %v553_v42 = vor.u32 %v551_v39, %v549_v26  ;;  %v657_v46 = vrot.slane %v582_v41, 2 }
  0x41   : > { %v641_v14 = vrot.slane %v534_v13, 2  ;;  %v557_v43 = vrot.slane %v555_v62, 1  ;;  %v654_v47 = vsel %vm637_vm14, %v647_v23, %v653_v40  ;;  %v511_v48 = vunpack.c.l.b16 %v485_v44 }
  0x42   : > { %v658_v51 = vsel %vm637_vm14, %v651_v28, %v657_v46  ;;  %v659_v58 = vrot.slane %v5334_v35, 2  ;;  %vm1130_vm8 = vsmask.f32 1280 }
  0x43   : > { %v643_v19 = vsel %vm637_vm14, %v641_v14, %v642_v12  ;;  %v558_v50 = vsel %vm522_vm15, %v553_v42, %v557_v43  ;;  %v561_v60 = vor.u32 %v559_v56, %v557_v43 }
  0x44   : > { %879 = vmatmul.bf16.vlgmr.msra.gmra.mxu1 %v643_v19  ;;  %v487_v45 = vld [vmem:[#allocation3 + $0x2c] sm:$0x3]  ;;  %v655_v52 = vrot.slane %v558_v50, 2  ;;  %v660_v0 = vsel %vm637_vm14, %v653_v40, %v659_v58 }
  0x45   : > { %v520_v49 = vunpack.c.l.b16 %v487_v45  ;;  %v486_v2 = vld [vmem:[#allocation3 + $0x2c] sm:$0x1] }
  0x46   : > { %v656_v54 = vsel %vm637_vm14, %v649_v34, %v655_v52  ;;  %v512_v5 = vunpack.c.l.b16 %v486_v2 }
  0x47   : > { %v521_v53 = vpack.c.b16 %v520_v49, %v511_v48 }
  0x48   : > { %v518_v7 = vpack.c.b16 %v512_v5, %v511_v48 }
  0x49   : > { %v583_v55 = vrot.slane %v521_v53, 1  ;;  %v563_v57 = vshll.u32 %v521_v53, 16  ;;  %v567_v9 = vshrl.u32 %v521_v53, 16 }
  0x4a   : > { %v665_v8 = vrot.slane %v518_v7, 2 }
  0x4b   : > { %v584_v59 = vsel %vm573_vm13, %v581_v38, %v583_v55  ;;  %v565_v61 = vrot.slane %v563_v57, 1  ;;  %v669_v10 = vrot.slane %v583_v55, 2 }
  0x4c   : > { %846 = vmatmul.bf16.gmra.mxu0 %v648_v31  ;;  %v663_v63 = vrot.slane %v584_v59, 2  ;;  %v666_v11 = vsel %vm637_vm14, %v659_v58, %v665_v8 }
  0x4d   : > { %v566_v1 = vsel %vm522_vm15, %v561_v60, %v565_v61  ;;  %v569_v12 = vor.u32 %v567_v9, %v565_v61 }
  0x4e   : > { %v664_v3 = vsel %vm637_vm14, %v657_v46, %v663_v63  ;;  %v661_v4 = vrot.slane %v566_v1, 2  ;;  %v670_v13 = vsel %vm637_vm14, %v663_v63, %v669_v10 }
  0x4f   : > { %922 = vmatmul.bf16.gmra.mxu2 %v652_v33  ;;  %v667_v14 = vrot.slane %v569_v12, 2 }
  0x50   : > { %v662_v6 = vsel %vm637_vm14, %v655_v52, %v661_v4 }
  0x51   : > { %v668_v15 = vsel %vm637_vm14, %v661_v4, %v667_v14 }
  0x54   : > { %884 = vmatmul.bf16.gmra.mxu1 %v650_v36 }
  0x5c   : > { %851 = vmatmul.bf16.gmra.mxu0 %v654_v47 }
  0x5f   : > { %927 = vmatmul.bf16.gmra.mxu2 %v658_v51 }
  0x64   : > { %889 = vmatmul.bf16.gmra.mxu1 %v656_v54 }
  0x6c   : > { %856 = vmatmul.bf16.gmra.mxu0 %v660_v0 }
  0x6f   : > { %932 = vmatmul.bf16.gmra.mxu2 %v664_v3 }
  0x74   : > { %894 = vmatmul.bf16.gmra.mxu1 %v662_v6 }
  0x7c   : > { %861 = vmatmul.bf16.gmra.mxu0 %v666_v11 }
  0x7f   : > { %937 = vmatmul.bf16.gmra.mxu2 %v670_v13 }
  0x84   : > { %899 = vmatmul.bf16.gmra.mxu1 %v668_v15 }
  0x8c   : > { %866 = vmatmul.bf16.gmra.mxu0 %v665_v8 }
  0x8f   : > { %942 = vmatmul.bf16.gmra.mxu2 %v669_v10 }
  0x94   : > { %904 = vmatmul.bf16.gmra.mxu1 %v667_v14 }
  0xb9   : > { %v842_v16 = vpop.f32.mrf.mxu0 }
  0xba   : > { %v843_v18 = vadd.f32 %v5992_v17, %v842_v16 }
  0xc1   : > { %v880_v19 = vpop.f32.mrf.mxu1  ;;  %v844_v20 = vpop.f32.mrf.mxu0 }
  0xc2   : > { %v881_v21 = vadd.f32 %v880_v19, %v843_v18  ;;  %v918_v22 = vpop.f32.mrf.mxu2  ;;  %v845_v25 = vadd.f32 %v5992_v17, %v844_v20 }
  0xc4   : > { %v919_v23 = vadd.f32 %v918_v22, %v881_v21 }
  0xc6   : > { %vm947_vm1 = vcmp.gt.f32.partialorder %v919_v23, 0.0  ;;  %v958_v24 = vmul.f32 0.1, %v919_v23 }
  0xc8   : > { %v969_v26 = vsel %vm947_vm1, %v919_v23, %v958_v24 }
  0xc9   : > { %v980_v27 = vpack.c.bf16 %v969_v26, %v969_v26  ;;  %v882_v28 = vpop.f32.mrf.mxu1  ;;  %v847_v29 = vpop.f32.mrf.mxu0 }
  0xca   : > { %v883_v30 = vadd.f32 %v882_v28, %v845_v25  ;;  %v920_v31 = vpop.f32.mrf.mxu2  ;;  %v848_v39 = vadd.f32 %v5992_v17, %v847_v29 }
  0xcb   : > { %v995_v32 = vshrl.u32 %v980_v27, 16  ;;  %v998_v33 = vshll.u32 %v980_v27, 16 }
  0xcc   : > { %v921_v34 = vadd.f32 %v920_v31, %v883_v30 }
  0xcd   : > { %v997_v35 = vrot.slane %v995_v32, 5  ;;  %v1000_v36 = vrot.slane %v998_v33, 6 }
  0xce   : > { %vm948_vm6 = vcmp.gt.f32.partialorder %v921_v34, 0.0  ;;  %v959_v62 = vmul.f32 0.1, %v921_v34 }
  0xcf   : > { %v1001_v40 = vor.u32 %v1000_v36, %v997_v35 }
  0xd0   : > { %v970_v41 = vsel %vm948_vm6, %v921_v34, %v959_v62 }
  0xd1   : > { %v1118_v42 = vsel %vm5996_vm5, %v1001_v40, %v5943_v37  ;;  %v981_v43 = vpack.c.bf16 %v970_v41, %v970_v41  ;;  %v885_v44 = vpop.f32.mrf.mxu1  ;;  %v849_v45 = vpop.f32.mrf.mxu0  ;;  %v1002_v54 = vrot.slane %v1001_v40, 4 }
  0xd2   : > { %1119 = vst [vmem:[#allocation3] sm:$0xc] %v1118_v42  ;;  %v886_v46 = vadd.f32 %v885_v44, %v848_v39  ;;  %v923_v47 = vpop.f32.mrf.mxu2  ;;  %v850_v56 = vadd.f32 %v5992_v17, %v849_v45 }
  0xd3   : > { %v1004_v48 = vshrl.u32 %v981_v43, 16  ;;  %v1007_v49 = vshll.u32 %v981_v43, 16 }
  0xd4   : > { %v924_v50 = vadd.f32 %v923_v47, %v886_v46 }
  0xd5   : > { %v1006_v51 = vrot.slane %v1004_v48, 5  ;;  %v1009_v52 = vrot.slane %v1007_v49, 6 }
  0xd6   : > { %vm949_vm10 = vcmp.gt.f32.partialorder %v924_v50, 0.0  ;;  %v960_v37 = vmul.f32 0.1, %v924_v50 }
  0xd7   : > { %v1010_v55 = vor.u32 %v1009_v52, %v1006_v51 }
  0xd8   : > { %v971_v57 = vsel %vm949_vm10, %v924_v50, %v960_v37  ;;  %vm6036_vm10 = vmand %vm416_vm2, %vm1130_vm8 }
  0xd9   : > { %v1011_v58 = vsel %vm6005_vm9, %v1002_v54, %v1010_v55  ;;  %v982_v59 = vpack.c.bf16 %v971_v57, %v971_v57  ;;  %v887_v60 = vpop.f32.mrf.mxu1  ;;  %v852_v61 = vpop.f32.mrf.mxu0  ;;  %v1012_v8 = vrot.slane %v1010_v55, 4 }
  0xda   : > { %1120 = vst [vmem:[#allocation3 + $0x4] sm:$0xf] %v1011_v58  ;;  %v888_v63 = vadd.f32 %v887_v60, %v850_v56  ;;  %v925_v0 = vpop.f32.mrf.mxu2  ;;  %v853_v6 = vadd.f32 %v5992_v17, %v852_v61 }
  0xdb   : > { %v1014_v1 = vshrl.u32 %v982_v59, 16  ;;  %v1017_v2 = vshll.u32 %v982_v59, 16 }
  0xdc   : > { %v926_v3 = vadd.f32 %v925_v0, %v888_v63 }
  0xdd   : > { %v1016_v4 = vrot.slane %v1014_v1, 5  ;;  %v1019_v5 = vrot.slane %v1017_v2, 6 }
  0xde   : > { %vm950_vm11 = vcmp.gt.f32.partialorder %v926_v3, 0.0  ;;  %v961_v7 = vmul.f32 0.1, %v926_v3 }
  0xdf   : > { %v1020_v9 = vor.u32 %v1019_v5, %v1016_v4 }
  0xe0   : > { %v972_v10 = vsel %vm950_vm11, %v926_v3, %v961_v7 }
  0xe1   : > { %v1021_v11 = vsel %vm6005_vm9, %v1012_v8, %v1020_v9  ;;  %v983_v12 = vpack.c.bf16 %v972_v10, %v972_v10  ;;  %v890_v13 = vpop.f32.mrf.mxu1  ;;  %v854_v14 = vpop.f32.mrf.mxu0  ;;  %v1022_v24 = vrot.slane %v1020_v9, 4 }
  0xe2   : > { %1121 = vst [vmem:[#allocation3 + $0x8] sm:$0xf] %v1021_v11  ;;  %v891_v15 = vadd.f32 %v890_v13, %v853_v6  ;;  %v928_v16 = vpop.f32.mrf.mxu2  ;;  %v855_v26 = vadd.f32 %v5992_v17, %v854_v14 }
  0xe3   : > { %v1024_v18 = vshrl.u32 %v983_v12, 16  ;;  %v1027_v19 = vshll.u32 %v983_v12, 16 }
  0xe4   : > { %v929_v20 = vadd.f32 %v928_v16, %v891_v15 }
  0xe5   : > { %v1026_v21 = vrot.slane %v1024_v18, 5  ;;  %v1029_v22 = vrot.slane %v1027_v19, 6 }
  0xe6   : > { %vm951_vm12 = vcmp.gt.f32.partialorder %v929_v20, 0.0  ;;  %v962_v23 = vmul.f32 0.1, %v929_v20 }
  0xe7   : > { %v1030_v25 = vor.u32 %v1029_v22, %v1026_v21 }
  0xe8   : > { %v973_v27 = vsel %vm951_vm12, %v929_v20, %v962_v23 }
  0xe9   : > { %v1031_v28 = vsel %vm6005_vm9, %v1022_v24, %v1030_v25  ;;  %v984_v29 = vpack.c.bf16 %v973_v27, %v973_v27  ;;  %v892_v30 = vpop.f32.mrf.mxu1  ;;  %v857_v31 = vpop.f32.mrf.mxu0  ;;  %v1032_v42 = vrot.slane %v1030_v25, 4 }
  0xea   : > { %1122 = vst [vmem:[#allocation3 + $0xc] sm:$0xf] %v1031_v28  ;;  %v893_v32 = vadd.f32 %v892_v30, %v855_v26  ;;  %v930_v33 = vpop.f32.mrf.mxu2  ;;  %v858_v40 = vadd.f32 %v5992_v17, %v857_v31 }
  0xeb   : > { %v1034_v34 = vshrl.u32 %v984_v29, 16  ;;  %v1037_v35 = vshll.u32 %v984_v29, 16 }
  0xec   : > { %v931_v36 = vadd.f32 %v930_v33, %v893_v32 }
  0xed   : > { %v1036_v39 = vrot.slane %v1034_v34, 5  ;;  %v1039_v62 = vrot.slane %v1037_v35, 6 }
  0xee   : > { %vm952_vm14 = vcmp.gt.f32.partialorder %v931_v36, 0.0  ;;  %v963_v41 = vmul.f32 0.1, %v931_v36 }
  0xef   : > { %v1040_v43 = vor.u32 %v1039_v62, %v1036_v39 }
  0xf0   : > { %v974_v44 = vsel %vm952_vm14, %v931_v36, %v963_v41 }
  0xf1   : > { %v1041_v45 = vsel %vm6005_vm9, %v1032_v42, %v1040_v43  ;;  %v985_v46 = vpack.c.bf16 %v974_v44, %v974_v44  ;;  %v895_v47 = vpop.f32.mrf.mxu1  ;;  %v859_v48 = vpop.f32.mrf.mxu0  ;;  %v1042_v57 = vrot.slane %v1040_v43, 4 }
  0xf2   : > { %1123 = vst [vmem:[#allocation3 + $0x10] sm:$0xf] %v1041_v45  ;;  %v896_v49 = vadd.f32 %v895_v47, %v858_v40  ;;  %v933_v50 = vpop.f32.mrf.mxu2  ;;  %v860_v59 = vadd.f32 %v5992_v17, %v859_v48 }
  0xf3   : > { %v1044_v51 = vshrl.u32 %v985_v46, 16  ;;  %v1047_v52 = vshll.u32 %v985_v46, 16 }
  0xf4   : > { %v934_v37 = vadd.f32 %v933_v50, %v896_v49 }
  0xf5   : > { %v1046_v54 = vrot.slane %v1044_v51, 5  ;;  %v1049_v55 = vrot.slane %v1047_v52, 6 }
  0xf6   : > { %vm953_vm0 = vcmp.gt.f32.partialorder %v934_v37, 0.0  ;;  %v964_v56 = vmul.f32 0.1, %v934_v37 }
  0xf7   : > { %v1050_v58 = vor.u32 %v1049_v55, %v1046_v54 }
  0xf8   : > { %v975_v60 = vsel %vm953_vm0, %v934_v37, %v964_v56 }
  0xf9   : > { %v1051_v61 = vsel %vm6005_vm9, %v1042_v57, %v1050_v58  ;;  %v986_v63 = vpack.c.bf16 %v975_v60, %v975_v60  ;;  %v897_v0 = vpop.f32.mrf.mxu1  ;;  %v862_v1 = vpop.f32.mrf.mxu0  ;;  %v1052_v11 = vrot.slane %v1050_v58, 4 }
  0xfa   : > { %1124 = vst [vmem:[#allocation3 + $0x14] sm:$0xf] %v1051_v61  ;;  %v898_v2 = vadd.f32 %v897_v0, %v860_v59  ;;  %v935_v3 = vpop.f32.mrf.mxu2  ;;  %v863_v9 = vadd.f32 %v5992_v17, %v862_v1 }
  0xfb   : > { %v1054_v4 = vshrl.u32 %v986_v63, 16  ;;  %v1057_v5 = vshll.u32 %v986_v63, 16 }
  0xfc   : > { %v936_v6 = vadd.f32 %v935_v3, %v898_v2 }
  0xfd   : > { %v1056_v7 = vrot.slane %v1054_v4, 5  ;;  %v1059_v8 = vrot.slane %v1057_v5, 6 }
  0xfe   : > { %vm954_vm1 = vcmp.gt.f32.partialorder %v936_v6, 0.0  ;;  %v965_v10 = vmul.f32 0.1, %v936_v6 }
  0xff   : > { %v1060_v12 = vor.u32 %v1059_v8, %v1056_v7 }
 0x100   : > { %v976_v13 = vsel %vm954_vm1, %v936_v6, %v965_v10  ;;  %v1132_v10 = vld [vmem:[#allocation3 + $0x2c] sm:$0x3] }
 0x101   : > { %v1061_v14 = vsel %vm6005_vm9, %v1052_v11, %v1060_v12  ;;  %v987_v15 = vpack.c.bf16 %v976_v13, %v976_v13  ;;  %v900_v16 = vpop.f32.mrf.mxu1  ;;  %v864_v18 = vpop.f32.mrf.mxu0  ;;  %v1062_v27 = vrot.slane %v1060_v12, 4 }
 0x102   : > { %1125 = vst [vmem:[#allocation3 + $0x18] sm:$0xf] %v1061_v14  ;;  %v901_v19 = vadd.f32 %v900_v16, %v863_v9  ;;  %v938_v20 = vpop.f32.mrf.mxu2  ;;  %v865_v29 = vadd.f32 %v5992_v17, %v864_v18 }
 0x103   : > { %v1064_v21 = vshrl.u32 %v987_v15, 16  ;;  %v1067_v22 = vshll.u32 %v987_v15, 16 }
 0x104   : > { %v939_v23 = vadd.f32 %v938_v20, %v901_v19 }
 0x105   : > { %v1066_v24 = vrot.slane %v1064_v21, 5  ;;  %v1069_v25 = vrot.slane %v1067_v22, 6 }
 0x106   : > { %vm955_vm3 = vcmp.gt.f32.partialorder %v939_v23, 0.0  ;;  %v966_v26 = vmul.f32 0.1, %v939_v23 }
 0x107   : > { %v1070_v28 = vor.u32 %v1069_v25, %v1066_v24 }
 0x108   : > { %v977_v30 = vsel %vm955_vm3, %v939_v23, %v966_v26 }
 0x109   : > { %v1071_v31 = vsel %vm6005_vm9, %v1062_v27, %v1070_v28  ;;  %v988_v32 = vpack.c.bf16 %v977_v30, %v977_v30  ;;  %v902_v33 = vpop.f32.mrf.mxu1  ;;  %v867_v34 = vpop.f32.mrf.mxu0  ;;  %v1072_v45 = vrot.slane %v1070_v28, 4 }
 0x10a   : > { %1126 = vst [vmem:[#allocation3 + $0x1c] sm:$0xf] %v1071_v31  ;;  %v903_v35 = vadd.f32 %v902_v33, %v865_v29  ;;  %v940_v36 = vpop.f32.mrf.mxu2  ;;  %v868_v43 = vadd.f32 %v5992_v17, %v867_v34 }
 0x10b   : > { %v1074_v39 = vshrl.u32 %v988_v32, 16  ;;  %v1077_v62 = vshll.u32 %v988_v32, 16 }
 0x10c   : > { %v941_v40 = vadd.f32 %v940_v36, %v903_v35 }
 0x10d   : > { %v1076_v41 = vrot.slane %v1074_v39, 5  ;;  %v1079_v42 = vrot.slane %v1077_v62, 6 }
 0x10e   : > { %vm956_vm4 = vcmp.gt.f32.partialorder %v941_v40, 0.0  ;;  %v967_v44 = vmul.f32 0.1, %v941_v40 }
 0x10f   : > { %v1080_v46 = vor.u32 %v1079_v42, %v1076_v41 }
 0x110   : > { %v978_v47 = vsel %vm956_vm4, %v941_v40, %v967_v44 }
 0x111   : > { %v1081_v48 = vsel %vm6005_vm9, %v1072_v45, %v1080_v46  ;;  %v989_v49 = vpack.c.bf16 %v978_v47, %v978_v47  ;;  %v905_v50 = vpop.f32.mrf.mxu1  ;;  %v869_v51 = vpop.f32.mrf.mxu0  ;;  %v1082_v59 = vrot.slane %v1080_v46, 4 }
 0x112   : > { %1127 = vst [vmem:[#allocation3 + $0x20] sm:$0xf] %v1081_v48  ;;  %v906_v52 = vadd.f32 %v905_v50, %v868_v43  ;;  %v943_v37 = vpop.f32.mrf.mxu2 }
 0x113   : > { %v1084_v54 = vshrl.u32 %v989_v49, 16  ;;  %v1087_v55 = vshll.u32 %v989_v49, 16 }
 0x114   : > { %v944_v56 = vadd.f32 %v943_v37, %v906_v52 }
 0x115   : > { %v1086_v57 = vrot.slane %v1084_v54, 5  ;;  %v1089_v58 = vrot.slane %v1087_v55, 6 }
 0x116   : > { %vm957_vm6 = vcmp.gt.f32.partialorder %v944_v56, 0.0  ;;  %v968_v17 = vmul.f32 0.1, %v944_v56 }
 0x117   : > { %v1090_v60 = vor.u32 %v1089_v58, %v1086_v57 }
 0x118   : > { %v979_v61 = vsel %vm957_vm6, %v944_v56, %v968_v17 }
 0x119   : > { %v1091_v63 = vsel %vm6005_vm9, %v1082_v59, %v1090_v60  ;;  %v990_v0 = vpack.c.bf16 %v979_v61, %v979_v61  ;;  %v907_v1 = vpop.f32.mrf.mxu1  ;;  %v1092_v7 = vrot.slane %v1090_v60, 4 }
 0x11a   : > { %1128 = vst [vmem:[#allocation3 + $0x24] sm:$0xf] %v1091_v63  ;;  %v945_v2 = vpop.f32.mrf.mxu2 }
 0x11b   : > { %v1094_v3 = vshrl.u32 %v990_v0, 16  ;;  %v1097_v4 = vshll.u32 %v990_v0, 16 }
 0x11d   : > { %v1096_v5 = vrot.slane %v1094_v3, 5  ;;  %v1099_v6 = vrot.slane %v1097_v4, 6 }
 0x11f   : > { %v1100_v8 = vor.u32 %v1099_v6, %v1096_v5 }
 0x120   : > { %1138 = sbr.rel (%p4594_p8) target bundleno = 296 (0x128), region = 48 }
 0x121   : > { %v1101_v11 = vsel %vm6005_vm9, %v1092_v7, %v1100_v8  ;;  %v1102_v12 = vrot.slane %v1100_v8, 4 }
 0x122   : > { %1129 = vst [vmem:[#allocation3 + $0x28] sm:$0xf] %v1101_v11 }
 0x123   : > { %v1133_v13 = vsel %vm6036_vm10, %v1102_v12, %v1132_v10 }
 0x124   : > { %1134 = vst [vmem:[#allocation3 + $0x2c] sm:$0x3] %v1133_v13 }
 0x125   : > { %v1139_v14 = vld [vmem:[#allocation3] sm:$0xc]  ;;  %v5742_v16 = vmov 0  }
 0x126   : > { %v1140_v15 = vsel %vm5996_vm5, 0, %v1139_v14  ;;  %1142 = vst [vmem:[#allocation3 + $0x4] sm:$0xf] %v5742_v16 }
 0x127   : > { %1141 = vst [vmem:[#allocation3] sm:$0xc] %v1140_v15 }
 0x128 PF: > { %p4595_p9 = scmp.ne.s32.totalorder %s5724_s21, 3 }
 0x12a   : > { %1146 = sbr.rel (%p4595_p9) target bundleno = 306 (0x132), region = 52 }
 0x12f   : > { %v1148_v53 = vld [vmem:[#allocation3 + $0x2c] sm:$0x3]  ;;  %v5743_v18 = vmov 0  }
 0x130   : > { %1147 = vst [vmem:[#allocation3 + $0x28] sm:$0xf] %v5743_v18  ;;  %v1149_v19 = vsel %vm6036_vm10, 0, %v1148_v53 }
 0x131   : > { %1150 = vst [vmem:[#allocation3 + $0x2c] sm:$0x3] %v1149_v19 }
 0x132 PF: > { %v5370_v38 = vld [vmem:[%s6880_s4 + $0x38] sm:$0xff]  ;;  %v5369_v22 = vld [vmem:[%s6880_s4 + $0x30] sm:$0xff]  ;;  %v5368_v25 = vld [vmem:[%s6880_s4 + $0x28] sm:$0xff]  ;;  %vm1311_vm2 = vsmask.f32 5376 }
 0x133   : > { %v5378_v20 = vld [vmem:[%s6880_s4 + $0x78] sm:$0xff]  ;;  %1608 = vmatpush.bf16.msra.mxu3 %v5370_v38  ;;  %v5377_v23 = vld [vmem:[%s6880_s4 + $0x70] sm:$0xff]  ;;  %v5376_v26 = vld [vmem:[%s6880_s4 + $0x68] sm:$0xff] }
 0x134   : > { %v5386_v21 = vld [vmem:[%s6880_s4 + $0xb8] sm:$0xff]  ;;  %1646 = vmatpush.bf16.msrb.mxu0 %v5378_v20  ;;  %v5385_v24 = vld [vmem:[%s6880_s4 + $0xb0] sm:$0xff]  ;;  %v5384_v27 = vld [vmem:[%s6880_s4 + $0xa8] sm:$0xff] }
 0x135   : > { %1684 = vmatpush.bf16.msrb.mxu1 %v5386_v21  ;;  %v1151_v28 = vld [vmem:[#allocation3] sm:$0xc]  ;;  %v1152_v29 = vld [vmem:[#allocation3 + $0x4] sm:$0xf]  ;;  %v5359_v30 = vld [vmem:[#allocation3 + $0x8] sm:$0xff] }
 0x136   : > { %v5367_v31 = vld [vmem:[%s6880_s4 + $0x20] sm:$0xff]  ;;  %v1177_v33 = vunpack.c.l.b16 %v1151_v28  ;;  %v1178_v34 = vunpack.c.l.b16 %v1152_v29  ;;  %v6084_v35 = vld [vmem:[#allocation3 + $0x10] sm:$0xff]  ;;  %v1206_v62 = vshll.u32 %v5359_v30, 16  ;;  %v1210_v40 = vshrl.u32 %v5359_v30, 16  ;;  %v5366_v49 = vld [vmem:[%s6880_s4 + $0x18] sm:$0xff] }
 0x137   : > { %1609 = vmatpush.bf16.msra.mxu3 %v5369_v22  ;;  %v1163_v32 = vld [vmem:[#allocation3] sm:$0x8]  ;;  %v1249_v41 = vrot.slane %v5359_v30, 1  ;;  %v1214_v43 = vshll.u32 %v6084_v35, 16  ;;  %v1251_v44 = vrot.slane %v6084_v35, 1  ;;  %v5374_v50 = vld [vmem:[%s6880_s4 + $0x58] sm:$0xff] }
 0x138   : > { %1647 = vmatpush.bf16.msrb.mxu0 %v5377_v23  ;;  %v5375_v36 = vld [vmem:[%s6880_s4 + $0x60] sm:$0xff]  ;;  %v1196_v39 = vunpack.c.l.b16 %v1163_v32  ;;  %v1189_v45 = vpack.c.b16 %v1178_v34, %v1177_v33  ;;  %v1208_v47 = vrot.slane %v1206_v62, 1  ;;  %v5382_v55 = vld [vmem:[%s6880_s4 + $0x98] sm:$0xff]  ;;  %v5365_v0 = vld [vmem:[%s6880_s4 + $0x10] sm:$0xff]  ;;  %v1218_v8 = vshrl.u32 %v6084_v35, 16 }
 0x139   : > { %1685 = vmatpush.bf16.msrb.mxu1 %v5385_v24  ;;  %v5383_v42 = vld [vmem:[%s6880_s4 + $0xa0] sm:$0xff]  ;;  %v6096_v48 = vrot.slane %v1214_v43, 1  ;;  %v1252_v54 = vsel %vm573_vm13, %v1249_v41, %v1251_v44  ;;  %v5373_v1 = vld [vmem:[%s6880_s4 + $0x50] sm:$0xff]  ;;  %v6123_v9 = vld [vmem:[#allocation3 + $0x18] sm:$0xff]  ;;  %v1320_v11 = vrot.slane %v1210_v40, 2  ;;  %v1321_v12 = vrot.slane %v1206_v62, 3 }
 0x13a   : > { %v1197_v46 = vpack.c.b16 %v1178_v34, %v1196_v39  ;;  %v1212_v37 = vor.u32 %v1210_v40, %v1208_v47  ;;  %v1313_v57 = vshrl.u32 %v1189_v45, 16  ;;  %v1316_v59 = vshll.u32 %v1189_v45, 16  ;;  %v5381_v6 = vld [vmem:[%s6880_s4 + $0x90] sm:$0xff]  ;;  %v5364_v18 = vld [vmem:[%s6880_s4 + $0x8] sm:$0xff]  ;;  %v5363_v29 = vld [vmem:[%s6880_s4] sm:$0xff] }
 0x13b   : > { %1610 = vmatpush.bf16.msra.mxu3 %v5368_v25  ;;  %v1350_v61 = vshrl.u32 %v1252_v54, 16  ;;  %v1353_v63 = vshll.u32 %v1252_v54, 16  ;;  %v5372_v19 = vld [vmem:[%s6880_s4 + $0x48] sm:$0xff]  ;;  %v1322_v28 = vor.u32 %v1321_v12, %v1320_v11  ;;  %v5371_v30 = vld [vmem:[%s6880_s4 + $0x40] sm:$0xff]  ;;  %v1220_v62 = vor.u32 %v1218_v8, %v6096_v48 }
 0x13c   : > { %1648 = vmatpush.bf16.msrb.mxu0 %v5376_v26  ;;  %v1199_v51 = vshrl.u32 %v1197_v46, 16  ;;  %v1201_v52 = vshll.u32 %v1197_v46, 16  ;;  %v1248_v56 = vrot.slane %v1197_v46, 1  ;;  %v1217_v17 = vsel %vm522_vm15, %v1212_v37, %v6096_v48  ;;  %v5380_v23 = vld [vmem:[%s6880_s4 + $0x88] sm:$0xff]  ;;  %v5379_v34 = vld [vmem:[%s6880_s4 + $0x80] sm:$0xff] }
 0x13d   : > { %1686 = vmatpush.bf16.msrb.mxu1 %v5384_v27  ;;  %v1333_v3 = vshrl.u32 %v1217_v17, 16  ;;  %v1336_v4 = vshll.u32 %v1217_v17, 16  ;;  %v1315_v10 = vrot.slane %v1313_v57, 2  ;;  %v1318_v14 = vrot.slane %v1316_v59, 3  ;;  %v5362_v37 = vld [vmem:[#allocation3 + $0x20] sm:$0xff] }
 0x13e   : > { %v1203_v58 = vrot.slane %v1201_v52, 1  ;;  %v1250_v60 = vsel %vm573_vm13, %v1248_v56, %v1249_v41  ;;  %v1352_v53 = vrot.slane %v1350_v61, 2  ;;  %v1355_v22 = vrot.slane %v1353_v63, 3  ;;  %v1164_v11 = vld [vmem:[#allocation3 + $0x2c] sm:$0x3] }
 0x13f   : > { %1611 = vmatpush.bf16.msra.mxu3 %v5367_v31  ;;  %v1342_v5 = vshrl.u32 %v1250_v60, 16  ;;  %v1345_v7 = vshll.u32 %v1250_v60, 16  ;;  %v1335_v38 = vrot.slane %v1333_v3, 2  ;;  %v1338_v20 = vrot.slane %v1336_v4, 3  ;;  %v1161_v3 = vld [vmem:[#allocation3 + $0x28] sm:$0xf] }
 0x140   : > { %1649 = vmatpush.bf16.msrb.mxu0 %v5375_v36  ;;  %v1204_v2 = vor.u32 %v1203_v58, %v1199_v51  ;;  %v1222_v27 = vshll.u32 %v6123_v9, 16  ;;  %v1319_v31 = vor.u32 %v1318_v14, %v1315_v10  ;;  %v1356_v39 = vor.u32 %v1355_v22, %v1352_v53  ;;  %v1162_v4 = vld [vmem:[#allocation3 + $0x2c] sm:$0x1] }
 0x141   : > { %1687 = vmatpush.bf16.msrb.mxu1 %v5383_v42  ;;  %v1344_v21 = vrot.slane %v1342_v5, 2  ;;  %v1347_v26 = vrot.slane %v1345_v7, 3  ;;  %v1339_v33 = vor.u32 %v1338_v20, %v1335_v38  ;;  %v1253_v41 = vrot.slane %v6123_v9, 1 }
 0x142   : > { %v1209_v13 = vsel %vm522_vm15, %v1204_v2, %v1208_v47  ;;  %v1224_v40 = vrot.slane %v1222_v27, 1  ;;  %v1323_v42 = vsel %vm1311_vm2, %v1319_v31, %v1322_v28  ;;  %v1358_v54 = vrot.slane %v1218_v8, 2 }
 0x143   : > { %1612 = vmatpush.bf16.msra.mxu3 %v5366_v49  ;;  %v1325_v15 = vshrl.u32 %v1209_v13, 16  ;;  %v1328_v16 = vshll.u32 %v1209_v13, 16  ;;  %v1348_v36 = vor.u32 %v1347_v26, %v1344_v21  ;;  %v1254_v48 = vsel %vm573_vm13, %v1251_v44, %v1253_v41 }
 0x144   : > { %1650 = vmatpush.bf16.msrb.mxu0 %v5374_v50  ;;  %v1225_v47 = vsel %vm522_vm15, %v1220_v62, %v1224_v40  ;;  %v1372_v51 = vshrl.u32 %v1254_v48, 16  ;;  %v1375_v52 = vshll.u32 %v1254_v48, 16  ;;  %v1226_v59 = vshrl.u32 %v6123_v9, 16 }
 0x145   : > { %1688 = vmatpush.bf16.msrb.mxu1 %v5382_v55  ;;  %v1327_v24 = vrot.slane %v1325_v15, 2  ;;  %v1330_v25 = vrot.slane %v1328_v16, 3  ;;  %v1357_v46 = vsel %vm1311_vm2, %v1348_v36, %v1356_v39  ;;  %v1363_v49 = vshrl.u32 %v1225_v47, 16 }
 0x146   : > { %v1366_v50 = vshll.u32 %v1225_v47, 16  ;;  %v1359_v55 = vrot.slane %v1214_v43, 3  ;;  %v1374_v58 = vrot.slane %v1372_v51, 2  ;;  %v1377_v17 = vrot.slane %v1375_v52, 3 }
 0x147   : > { %1613 = vmatpush.bf16.msra.mxu3 %v5365_v0  ;;  %v1331_v32 = vor.u32 %v1330_v25, %v1327_v24  ;;  %v1365_v56 = vrot.slane %v1363_v49, 2  ;;  %v1230_v60 = vshll.u32 %v5362_v37, 16  ;;  %v1228_v0 = vor.u32 %v1226_v59, %v1224_v40 }
 0x148   : > { %1651 = vmatpush.bf16.msrb.mxu0 %v5373_v1  ;;  %v1368_v57 = vrot.slane %v1366_v50, 3  ;;  %v1360_v44 = vor.u32 %v1359_v55, %v1358_v54  ;;  %v1378_v63 = vor.u32 %v1377_v17, %v1374_v58  ;;  %v1255_v2 = vrot.slane %v5362_v37, 1 }
 0x149   : > { %1689 = vmatpush.bf16.msrb.mxu1 %v5381_v6  ;;  %v1340_v45 = vsel %vm1311_vm2, %v1331_v32, %v1339_v33  ;;  %v1232_v1 = vrot.slane %v1230_v60, 1  ;;  %v1187_v7 = vunpack.c.l.b16 %v1161_v3  ;;  %v1188_v8 = vunpack.c.l.b16 %v1162_v4 }
 0x14a   : > { %v1369_v61 = vor.u32 %v1368_v57, %v1365_v56  ;;  %v1361_v5 = vsel %vm1311_vm2, %v1322_v28, %v1360_v44  ;;  %v1379_v43 = vsel %vm1311_vm2, %v1356_v39, %v1378_v63  ;;  %v1256_v10 = vsel %vm573_vm13, %v1253_v41, %v1255_v2 }
 0x14b   : > { %1614 = vmatpush.bf16.msra.mxu3 %v5364_v18  ;;  %v1233_v6 = vsel %vm522_vm15, %v1228_v0, %v1232_v1  ;;  %v1394_v14 = vshrl.u32 %v1256_v10, 16  ;;  %v1397_v15 = vshll.u32 %v1256_v10, 16  ;;  %v1194_v16 = vpack.c.b16 %v1188_v8, %v1187_v7  ;;  %v6180_v10 = vld [vmem:[%s6881_s5] ss:$0 sm:$0xff] }
 0x14c   : > { %1652 = vmatpush.bf16.msrb.mxu0 %v5372_v19  ;;  %v1370_v35 = vsel %vm1311_vm2, %v1339_v33, %v1369_v61  ;;  %v1385_v12 = vshrl.u32 %v1233_v6, 16  ;;  %v1388_v13 = vshll.u32 %v1233_v6, 16  ;;  %v1246_v53 = vunpack.c.l.b16 %v1164_v11 }
 0x14d   : > { %1690 = vmatpush.bf16.msrb.mxu1 %v5380_v23  ;;  %v1380_v18 = vrot.slane %v1226_v59, 2  ;;  %v1381_v19 = vrot.slane %v1222_v27, 3  ;;  %v1396_v21 = vrot.slane %v1394_v14, 2  ;;  %v1399_v22 = vrot.slane %v1397_v15, 3 }
 0x14e   : > { %v1387_v38 = vrot.slane %v1385_v12, 2  ;;  %v1390_v20 = vrot.slane %v1388_v13, 3  ;;  %v1234_v23 = vshrl.u32 %v5362_v37, 16  ;;  %v1238_v24 = vshll.u32 %v1194_v16, 16 }
 0x14f   : > { %1615 = vmatpush.bf16.msra.mxu3 %v5363_v29  ;;  %v1247_v25 = vpack.c.b16 %v1246_v53, %v1187_v7  ;;  %v1382_v26 = vor.u32 %v1381_v19, %v1380_v18  ;;  %v1400_v29 = vor.u32 %v1399_v22, %v1396_v21  ;;  %v1242_v52 = vshrl.u32 %v1194_v16, 16  ;;  %v1722_v16 = vld [vmem:[#allocation2 + $0x6] sm:$0xff] }
 0x150   : > { %1653 = vmatpush.bf16.msrb.mxu0 %v5371_v30  ;;  %v1391_v28 = vor.u32 %v1390_v20, %v1387_v38  ;;  %v1236_v30 = vor.u32 %v1234_v23, %v1232_v1  ;;  %v1240_v31 = vrot.slane %v1238_v24, 1 }
 0x151   : > { %1691 = vmatpush.bf16.msrb.mxu1 %v5379_v34  ;;  %v1257_v32 = vrot.slane %v1247_v25, 1  ;;  %v1383_v33 = vsel %vm1311_vm2, %v1360_v44, %v1382_v26  ;;  %v1401_v9 = vsel %vm1311_vm2, %v1378_v63, %v1400_v29  ;;  %v1424_v44 = vrot.slane %v1242_v52, 2 }
 0x152   : > { %1616 = vmatmul.bf16.vlgmr.msra.gmra.mxu3 %v1323_v42  ;;  %v1392_v34 = vsel %vm1311_vm2, %v1369_v61, %v1391_v28  ;;  %v1241_v27 = vsel %vm522_vm15, %v1236_v30, %v1240_v31  ;;  %v1402_v42 = vrot.slane %v1234_v23, 2  ;;  %v1244_v56 = vor.u32 %v1242_v52, %v1240_v31  ;;  %v1723_v23 = vld [vmem:[#allocation2 + $0xe] sm:$0xff] }
 0x153   : > { %1654 = vmatmul.bf16.vlgmr.msrb.gmra.mxu0 %v1340_v45  ;;  %v1258_v36 = vsel %vm573_vm13, %v1255_v2, %v1257_v32  ;;  %v1407_v39 = vshrl.u32 %v1241_v27, 16  ;;  %v1410_v62 = vshll.u32 %v1241_v27, 16  ;;  %v1403_v45 = vrot.slane %v1230_v60, 3 }
 0x154   : > { %1692 = vmatmul.bf16.vlgmr.msrb.gmra.mxu1 %v1357_v46  ;;  %v1416_v40 = vshrl.u32 %v1258_v36, 16  ;;  %v1419_v41 = vshll.u32 %v1258_v36, 16  ;;  %v1429_v58 = vshrl.u32 %v1244_v56, 16  ;;  %v1432_v17 = vshll.u32 %v1244_v56, 16 }
 0x155   : > { %v1409_v46 = vrot.slane %v1407_v39, 2  ;;  %v1412_v47 = vrot.slane %v1410_v62, 3  ;;  %v1404_v50 = vor.u32 %v1403_v45, %v1402_v42  ;;  %v1438_v59 = vshrl.u32 %v1257_v32, 16 }
 0x156   : > { %v1418_v48 = vrot.slane %v1416_v40, 2  ;;  %v1421_v49 = vrot.slane %v1419_v41, 3  ;;  %v1441_v60 = vshll.u32 %v1257_v32, 16  ;;  %v1425_v61 = vrot.slane %v1238_v24, 3  ;;  %v1724_v32 = vld [vmem:[#allocation2 + $0x16] sm:$0xff]  ;;  %v1725_v40 = vld [vmem:[#allocation2 + $0x1e] sm:$0xff] }
 0x157   : > { %v1413_v51 = vor.u32 %v1412_v47, %v1409_v46  ;;  %v1405_v54 = vsel %vm1311_vm2, %v1382_v26, %v1404_v50  ;;  %v1431_v63 = vrot.slane %v1429_v58, 2  ;;  %v1434_v0 = vrot.slane %v1432_v17, 3  ;;  %v1727_v58 = vld [vmem:[#allocation2 + $0x2e] sm:$0xff] }
 0x158   : > { %v1422_v37 = vor.u32 %v1421_v49, %v1418_v48  ;;  %v1440_v1 = vrot.slane %v1438_v59, 2  ;;  %v1443_v2 = vrot.slane %v1441_v60, 3  ;;  %v1426_v3 = vor.u32 %v1425_v61, %v1424_v44 }
 0x159   : > { %v1414_v55 = vsel %vm1311_vm2, %v1391_v28, %v1413_v51  ;;  %v1435_v4 = vor.u32 %v1434_v0, %v1431_v63 }
 0x15a   : > { %v1423_v57 = vsel %vm1311_vm2, %v1400_v29, %v1422_v37 }
 0x162   : > { %1621 = vmatmul.bf16.gmra.mxu3 %v1361_v5  ;;  %v1444_v5 = vor.u32 %v1443_v2, %v1440_v1  ;;  %v1728_v1 = vld [vmem:[#allocation2 + $0x36] sm:$0xff] }
 0x163   : > { %1659 = vmatmul.bf16.gmra.mxu0 %v1370_v35  ;;  %v1427_v35 = vsel %vm1311_vm2, %v1404_v50, %v1426_v3  ;;  %v1726_v50 = vld [vmem:[#allocation2 + $0x26] sm:$0xff] }
 0x164   : > { %1697 = vmatmul.bf16.gmra.mxu1 %v1379_v43  ;;  %v1436_v43 = vsel %vm1311_vm2, %v1413_v51, %v1435_v4  ;;  %v1445_v6 = vsel %vm1311_vm2, %v1422_v37, %v1444_v5 }
 0x172   : > { %1626 = vmatmul.bf16.gmra.mxu3 %v1383_v33 }
 0x173   : > { %1664 = vmatmul.bf16.gmra.mxu0 %v1392_v34 }
 0x174   : > { %1702 = vmatmul.bf16.gmra.mxu1 %v1401_v9 }
 0x182   : > { %1631 = vmatmul.bf16.gmra.mxu3 %v1405_v54 }
 0x183   : > { %1669 = vmatmul.bf16.gmra.mxu0 %v1414_v55 }
 0x184   : > { %1707 = vmatmul.bf16.gmra.mxu1 %v1423_v57 }
 0x192   : > { %1636 = vmatmul.bf16.gmra.mxu3 %v1427_v35 }
 0x193   : > { %1674 = vmatmul.bf16.gmra.mxu0 %v1436_v43 }
 0x194   : > { %1712 = vmatmul.bf16.gmra.mxu1 %v1445_v6 }
 0x1a2   : > { %1641 = vmatmul.bf16.gmra.mxu3 %v1426_v3 }
 0x1a3   : > { %1679 = vmatmul.bf16.gmra.mxu0 %v1435_v4 }
 0x1a4   : > { %1717 = vmatmul.bf16.gmra.mxu1 %v1444_v5 }
 0x1d0   : > { %v1655_v7 = vpop.f32.mrf.mxu0 }
 0x1d1   : > { %v1693_v8 = vpop.f32.mrf.mxu1 }
 0x1d5   : > { %v1617_v11 = vpop.f32.mrf.mxu3 }
 0x1d6   : > { %v1618_v12 = vadd.f32 %v6180_v10, %v1617_v11 }
 0x1d8   : > { %v1657_v13 = vpop.f32.mrf.mxu0  ;;  %v1656_v14 = vadd.f32 %v1655_v7, %v1618_v12  ;;  %v1729_v7 = vld [vmem:[#allocation2 + $0x3e] sm:$0xff] }
 0x1d9   : > { %v1695_v15 = vpop.f32.mrf.mxu1 }
 0x1da   : > { %v1694_v53 = vadd.f32 %v1693_v8, %v1656_v14 }
 0x1dc   : > { %v1733_v18 = vadd.f32 %v1722_v16, %v1694_v53  ;;  %v1730_v53 = vld [vmem:[#allocation2 + $0x46] sm:$0xff] }
 0x1dd   : > { %v1619_v19 = vpop.f32.mrf.mxu3 }
 0x1de   : > { %1744 = vst [vmem:[#allocation2 + $0x6] sm:$0xff] %v1733_v18  ;;  %v1620_v38 = vadd.f32 %v6180_v10, %v1619_v19 }
 0x1e0   : > { %v1660_v20 = vpop.f32.mrf.mxu0  ;;  %v1658_v21 = vadd.f32 %v1657_v13, %v1620_v38 }
 0x1e1   : > { %v1698_v22 = vpop.f32.mrf.mxu1 }
 0x1e2   : > { %v1696_v24 = vadd.f32 %v1695_v15, %v1658_v21 }
 0x1e4   : > { %v1734_v25 = vadd.f32 %v1723_v23, %v1696_v24  ;;  %v1731_v24 = vld [vmem:[#allocation2 + $0x4e] sm:$0xff] }
 0x1e5   : > { %v1622_v26 = vpop.f32.mrf.mxu3 }
 0x1e6   : > { %1745 = vst [vmem:[#allocation2 + $0xe] sm:$0xff] %v1734_v25  ;;  %v1623_v28 = vadd.f32 %v6180_v10, %v1622_v26 }
 0x1e8   : > { %v1662_v29 = vpop.f32.mrf.mxu0  ;;  %v1661_v30 = vadd.f32 %v1660_v20, %v1623_v28 }
 0x1e9   : > { %v1700_v31 = vpop.f32.mrf.mxu1 }
 0x1ea   : > { %v1699_v33 = vadd.f32 %v1698_v22, %v1661_v30 }
 0x1ec   : > { %v1735_v34 = vadd.f32 %v1724_v32, %v1699_v33  ;;  %v1732_v33 = vld [vmem:[#allocation2 + $0x56] sm:$0xf] }
 0x1ed   : > { %v1624_v9 = vpop.f32.mrf.mxu3 }
 0x1ee   : > { %1746 = vst [vmem:[#allocation2 + $0x16] sm:$0xff] %v1735_v34  ;;  %v1625_v27 = vadd.f32 %v6180_v10, %v1624_v9 }
 0x1f0   : > { %v1665_v36 = vpop.f32.mrf.mxu0  ;;  %v1663_v39 = vadd.f32 %v1662_v29, %v1625_v27 }
 0x1f1   : > { %v1703_v62 = vpop.f32.mrf.mxu1 }
 0x1f2   : > { %v1701_v41 = vadd.f32 %v1700_v31, %v1663_v39 }
 0x1f4   : > { %v1736_v42 = vadd.f32 %v1725_v40, %v1701_v41 }
 0x1f5   : > { %v1627_v45 = vpop.f32.mrf.mxu3 }
 0x1f6   : > { %1747 = vst [vmem:[#allocation2 + $0x1e] sm:$0xff] %v1736_v42  ;;  %v1628_v46 = vadd.f32 %v6180_v10, %v1627_v45 }
 0x1f8   : > { %v1667_v47 = vpop.f32.mrf.mxu0  ;;  %v1666_v48 = vadd.f32 %v1665_v36, %v1628_v46 }
 0x1f9   : > { %v1705_v49 = vpop.f32.mrf.mxu1 }
 0x1fa   : > { %v1704_v51 = vadd.f32 %v1703_v62, %v1666_v48 }
 0x1fc   : > { %v1737_v52 = vadd.f32 %v1726_v50, %v1704_v51 }
 0x1fd   : > { %v1629_v37 = vpop.f32.mrf.mxu3 }
 0x1fe   : > { %1748 = vst [vmem:[#allocation2 + $0x26] sm:$0xff] %v1737_v52  ;;  %v1630_v54 = vadd.f32 %v6180_v10, %v1629_v37 }
 0x200   : > { %v1670_v55 = vpop.f32.mrf.mxu0  ;;  %v1668_v56 = vadd.f32 %v1667_v47, %v1630_v54 }
 0x201   : > { %v1708_v57 = vpop.f32.mrf.mxu1 }
 0x202   : > { %v1706_v17 = vadd.f32 %v1705_v49, %v1668_v56 }
 0x204   : > { %v1738_v59 = vadd.f32 %v1727_v58, %v1706_v17 }
 0x205   : > { %v1632_v60 = vpop.f32.mrf.mxu3 }
 0x206   : > { %1749 = vst [vmem:[#allocation2 + $0x2e] sm:$0xff] %v1738_v59  ;;  %v1633_v44 = vadd.f32 %v6180_v10, %v1632_v60 }
 0x208   : > { %v1672_v61 = vpop.f32.mrf.mxu0  ;;  %v1671_v63 = vadd.f32 %v1670_v55, %v1633_v44 }
 0x209   : > { %v1710_v0 = vpop.f32.mrf.mxu1 }
 0x20a   : > { %v1709_v2 = vadd.f32 %v1708_v57, %v1671_v63 }
 0x20c   : > { %v1739_v3 = vadd.f32 %v1728_v1, %v1709_v2 }
 0x20d   : > { %v1634_v4 = vpop.f32.mrf.mxu3 }
 0x20e   : > { %1750 = vst [vmem:[#allocation2 + $0x36] sm:$0xff] %v1739_v3  ;;  %v1635_v5 = vadd.f32 %v6180_v10, %v1634_v4 }
 0x210   : > { %v1675_v35 = vpop.f32.mrf.mxu0  ;;  %v1673_v43 = vadd.f32 %v1672_v61, %v1635_v5 }
 0x211   : > { %v1713_v6 = vpop.f32.mrf.mxu1 }
 0x212   : > { %v1711_v8 = vadd.f32 %v1710_v0, %v1673_v43 }
 0x214   : > { %v1740_v11 = vadd.f32 %v1729_v7, %v1711_v8 }
 0x215   : > { %v1637_v12 = vpop.f32.mrf.mxu3 }
 0x216   : > { %1751 = vst [vmem:[#allocation2 + $0x3e] sm:$0xff] %v1740_v11  ;;  %v1638_v13 = vadd.f32 %v6180_v10, %v1637_v12 }
 0x218   : > { %v1677_v14 = vpop.f32.mrf.mxu0  ;;  %v1676_v15 = vadd.f32 %v1675_v35, %v1638_v13 }
 0x219   : > { %v1715_v16 = vpop.f32.mrf.mxu1 }
 0x21a   : > { %v1714_v18 = vadd.f32 %v1713_v6, %v1676_v15 }
 0x21c   : > { %v1741_v19 = vadd.f32 %v1730_v53, %v1714_v18 }
 0x21d   : > { %v1639_v38 = vpop.f32.mrf.mxu3 }
 0x21e   : > { %1752 = vst [vmem:[#allocation2 + $0x46] sm:$0xff] %v1741_v19  ;;  %v1640_v20 = vadd.f32 %v6180_v10, %v1639_v38 }
 0x220   : > { %v1680_v21 = vpop.f32.mrf.mxu0  ;;  %v1678_v22 = vadd.f32 %v1677_v14, %v1640_v20 }
 0x221   : > { %v1718_v23 = vpop.f32.mrf.mxu1 }
 0x222   : > { %v1716_v25 = vadd.f32 %v1715_v16, %v1678_v22 }
 0x224   : > { %v1742_v26 = vadd.f32 %v1731_v24, %v1716_v25 }
 0x225   : > { %v1642_v28 = vpop.f32.mrf.mxu3 }
 0x226   : > { %1753 = vst [vmem:[#allocation2 + $0x4e] sm:$0xff] %v1742_v26  ;;  %v1643_v29 = vadd.f32 %v6180_v10, %v1642_v28 }
 0x228   : > { %v1682_v30 = vpop.f32.mrf.mxu0  ;;  %v1681_v31 = vadd.f32 %v1680_v21, %v1643_v29 }
 0x229   : > { %v1720_v32 = vpop.f32.mrf.mxu1 }
 0x22a   : > { %v1719_v34 = vadd.f32 %v1718_v23, %v1681_v31  ;;  %1757 = sbr.rel (%p4594_p8) target bundleno = 562 (0x232), region = 56 }
 0x22c   : > { %v1743_v9 = vadd.f32 %v1732_v33, %v1719_v34 }
 0x22d   : > { %v1644_v27 = vpop.f32.mrf.mxu3 }
 0x22e   : > { %1754 = vst [vmem:[#allocation2 + $0x56] sm:$0xf] %v1743_v9 }
 0x22f   : > { %v5744_v36 = vmov 0.0  }
 0x230   : > { %1758 = vst [vmem:[#allocation2 + $0x6] sm:$0xff] %v5744_v36 }
 0x231   : > { %1759 = vst [vmem:[#allocation2 + $0xe] sm:$0x3] %v5744_v36 }
 0x232 PF: > { %1762 = sbr.rel (%p4595_p9) target bundleno = 570 (0x23a), region = 60 }
 0x237   : > { %v5745_v39 = vmov 0.0  }
 0x238   : > { %1763 = vst [vmem:[#allocation2 + $0x50] sm:$0xff] %v5745_v39 }
 0x239   : > { %1764 = vst [vmem:[#allocation2 + $0x58] sm:$0x3] %v5745_v39 }
 0x23a PF: > { %v5399_v10 = vld [vmem:[%s6878_s2 + $0xf8] sm:$0xff]  ;;  %v5398_v40 = vld [vmem:[%s6878_s2 + $0xf0] sm:$0xff]  ;;  %v5397_v42 = vld [vmem:[%s6878_s2 + $0xe8] sm:$0xff]  ;;  %vm1831_vm14 = vcmask 1042432   ;;  %vm1832_vm0 = vcmask 1046532  }
 0x23b   : > { %v5407_v62 = vld [vmem:[%s6878_s2 + $0x138] sm:$0xff]  ;;  %2279 = vmatpush.bf16.msrb.mxu2 %v5399_v10  ;;  %v5406_v41 = vld [vmem:[%s6878_s2 + $0x130] sm:$0xff]  ;;  %v5405_v45 = vld [vmem:[%s6878_s2 + $0x128] sm:$0xff] }
 0x23c   : > { %2313 = vmatpush.bf16.msrb.mxu3 %v5407_v62  ;;  %v1765_v46 = vld [vmem:[#allocation2 + $0x6] sm:$0xff]  ;;  %v1766_v47 = vld [vmem:[#allocation2 + $0xe] sm:$0xff]  ;;  %v1767_v48 = vld [vmem:[#allocation2 + $0x16] sm:$0xff] }
 0x23d   : > { %v1768_v49 = vld [vmem:[#allocation2 + $0x1e] sm:$0xff]  ;;  %vm1776_vm5 = vcmp.gt.f32.partialorder %v1765_v46, 0.0  ;;  %vm1777_vm9 = vcmp.gt.f32.partialorder %v1766_v47, 0.0  ;;  %v1787_v50 = vmul.f32 0.1, %v1765_v46  ;;  %vm1778_vm11 = vcmp.gt.f32.partialorder %v1767_v48, 0.0  ;;  %vm6224_vm4 = vmor %vm1831_vm14, %vm1832_vm0 }
 0x23e   : > { %vm1779_vm12 = vcmp.gt.f32.partialorder %v1768_v49, 0.0  ;;  %v1788_v51 = vmul.f32 0.1, %v1766_v47  ;;  %v1789_v52 = vmul.f32 0.1, %v1767_v48  ;;  %v1769_v55 = vld [vmem:[#allocation2 + $0x26] sm:$0xff] }
 0x23f   : > { %2280 = vmatpush.bf16.msrb.mxu2 %v5398_v40  ;;  %v1790_v37 = vmul.f32 0.1, %v1768_v49  ;;  %v1798_v54 = vsel %vm1776_vm5, %v1765_v46, %v1787_v50  ;;  %vm1780_vm1 = vcmp.gt.f32.partialorder %v1769_v55, 0.0  ;;  %v1770_v17 = vld [vmem:[#allocation2 + $0x2e] sm:$0xff]  ;;  %v1771_v59 = vld [vmem:[#allocation2 + $0x36] sm:$0xff]  ;;  %v5396_v60 = vld [vmem:[%s6878_s2 + $0xe0] sm:$0xff] }
 0x240   : > { %2314 = vmatpush.bf16.msrb.mxu3 %v5406_v41  ;;  %v1799_v56 = vsel %vm1777_vm9, %v1766_v47, %v1788_v51  ;;  %v1800_v57 = vsel %vm1778_vm11, %v1767_v48, %v1789_v52  ;;  %v1809_v58 = vpack.c.bf16 %v1798_v54, %v1798_v54  ;;  %v5404_v44 = vld [vmem:[%s6878_s2 + $0x120] sm:$0xff]  ;;  %v1791_v1 = vmul.f32 0.1, %v1769_v55  ;;  %v5395_v14 = vld [vmem:[%s6878_s2 + $0xd8] sm:$0xff]  ;;  %v5394_v23 = vld [vmem:[%s6878_s2 + $0xd0] sm:$0xff] }
 0x241   : > { %v1801_v61 = vsel %vm1779_vm12, %v1768_v49, %v1790_v37  ;;  %v1810_v63 = vpack.c.bf16 %v1799_v56, %v1799_v56  ;;  %v1811_v0 = vpack.c.bf16 %v1800_v57, %v1800_v57  ;;  %vm1781_vm3 = vcmp.gt.f32.partialorder %v1770_v17, 0.0  ;;  %v1772_v7 = vld [vmem:[#allocation2 + $0x3e] sm:$0xff]  ;;  %v1773_v22 = vld [vmem:[#allocation2 + $0x46] sm:$0xff]  ;;  %v5402_v29 = vld [vmem:[%s6878_s2 + $0x110] sm:$0xff] }
 0x242   : > { %v1812_v2 = vpack.c.bf16 %v1801_v61, %v1801_v61  ;;  %v1834_v3 = vrot.slane %v1809_v58, 5  ;;  %v1792_v4 = vmul.f32 0.1, %v1770_v17  ;;  %v1802_v6 = vsel %vm1780_vm1, %v1769_v55, %v1791_v1  ;;  %v5403_v15 = vld [vmem:[%s6878_s2 + $0x118] sm:$0xff]  ;;  %v5393_v46 = vld [vmem:[%s6878_s2 + $0xc8] sm:$0xff]  ;;  %v5392_v55 = vld [vmem:[%s6878_s2 + $0xc0] sm:$0xff] }
 0x243   : > { %2281 = vmatpush.bf16.msrb.mxu2 %v5397_v42  ;;  %v1836_v35 = vrot.slane %v1810_v63, 5  ;;  %v1839_v43 = vrot.slane %v1811_v0, 5  ;;  %vm1782_vm6 = vcmp.gt.f32.partialorder %v1771_v59, 0.0  ;;  %v1813_v12 = vpack.c.bf16 %v1802_v6, %v1802_v6  ;;  %v5401_v47 = vld [vmem:[%s6878_s2 + $0x108] sm:$0xff]  ;;  %v5400_v57 = vld [vmem:[%s6878_s2 + $0x100] sm:$0xff]  ;;  %v5415_v63 = vld [vmem:[%s6878_s2 + $0x178] sm:$0xff] }
 0x244   : > { %2315 = vmatpush.bf16.msrb.mxu3 %v5405_v45  ;;  %v1835_v8 = vrot.slane %v1834_v3, 4  ;;  %v1842_v11 = vrot.slane %v1812_v2, 5  ;;  %1878 = vst [vmem:[#allocation3] sm:$0x8] %v1834_v3  ;;  %v1803_v13 = vsel %vm1781_vm3, %v1770_v17, %v1792_v4  ;;  %v1793_v19 = vmul.f32 0.1, %v1771_v59 }
 0x245   : > { %v1838_v16 = vrot.slane %v1836_v35, 4  ;;  %v1841_v53 = vrot.slane %v1839_v43, 4  ;;  %v1814_v18 = vpack.c.bf16 %v1803_v13, %v1803_v13  ;;  %v1845_v21 = vrot.slane %v1813_v12, 5  ;;  %v1774_v61 = vld [vmem:[#allocation2 + $0x4e] sm:$0xff] }
 0x246   : > { %v1837_v38 = vsel %vm6224_vm4, %v1835_v8, %v1836_v35  ;;  %v1844_v20 = vrot.slane %v1842_v11, 4  ;;  %vm1783_vm8 = vcmp.gt.f32.partialorder %v1772_v7, 0.0  ;;  %v1804_v28 = vsel %vm1782_vm6, %v1771_v59, %v1793_v19  ;;  %v1775_v35 = vld [vmem:[#allocation2 + $0x56] sm:$0xf] }
 0x247   : > { %2282 = vmatpush.bf16.msrb.mxu2 %v5396_v60  ;;  %v1840_v24 = vsel %vm6224_vm4, %v1838_v16, %v1839_v43  ;;  %v1843_v25 = vsel %vm6224_vm4, %v1841_v53, %v1842_v11  ;;  %1879 = vst [vmem:[#allocation3 + $0x4] sm:$0xf] %v1837_v38  ;;  %v1848_v26 = vrot.slane %v1814_v18, 5  ;;  %v1847_v31 = vrot.slane %v1845_v21, 4 }
 0x248   : > { %2316 = vmatpush.bf16.msrb.mxu3 %v5404_v44  ;;  %1880 = vst [vmem:[#allocation3 + $0x8] sm:$0xf] %v1840_v24  ;;  %v1846_v30 = vsel %vm6224_vm4, %v1844_v20, %v1845_v21  ;;  %v1815_v32 = vpack.c.bf16 %v1804_v28, %v1804_v28  ;;  %v1794_v33 = vmul.f32 0.1, %v1772_v7  ;;  %vm1784_vm10 = vcmp.gt.f32.partialorder %v1773_v22, 0.0 }
 0x249   : > { %1881 = vst [vmem:[#allocation3 + $0xc] sm:$0xf] %v1843_v25  ;;  %v1850_v34 = vrot.slane %v1848_v26, 4  ;;  %v1795_v9 = vmul.f32 0.1, %v1773_v22  ;;  %v1849_v27 = vsel %vm6224_vm4, %v1847_v31, %v1848_v26  ;;  %vm2086_vm5 = vcmask 1044480  }
 0x24a   : > { %1882 = vst [vmem:[#allocation3 + $0x10] sm:$0xf] %v1846_v30  ;;  %v1851_v36 = vrot.slane %v1815_v32, 5  ;;  %v1805_v39 = vsel %vm1783_vm8, %v1772_v7, %v1794_v33  ;;  %v1796_v0 = vmul.f32 0.1, %v1774_v61  ;;  %vm1785_vm9 = vcmp.gt.f32.partialorder %v1774_v61, 0.0 }
 0x24b   : > { %2283 = vmatpush.bf16.msrb.mxu2 %v5395_v14  ;;  %v1890_v10 = vld [vmem:[#allocation3] sm:$0x8]  ;;  %1883 = vst [vmem:[#allocation3 + $0x14] sm:$0xf] %v1849_v27  ;;  %v1816_v62 = vpack.c.bf16 %v1805_v39, %v1805_v39  ;;  %v1806_v40 = vsel %vm1784_vm10, %v1773_v22, %v1795_v9  ;;  %v1797_v6 = vmul.f32 0.1, %v1775_v35 }
 0x24c   : > { %2317 = vmatpush.bf16.msrb.mxu3 %v5403_v15  ;;  %v1852_v41 = vsel %vm6224_vm4, %v1850_v34, %v1851_v36  ;;  %v1853_v42 = vrot.slane %v1851_v36, 4  ;;  %v1817_v45 = vpack.c.bf16 %v1806_v40, %v1806_v40  ;;  %v1924_v48 = vunpack.c.l.b16 %v1890_v10  ;;  %v5414_v14 = vld [vmem:[%s6878_s2 + $0x170] sm:$0xff]  ;;  %v5412_v27 = vld [vmem:[%s6878_s2 + $0x160] sm:$0xff] }
 0x24d   : > { %1884 = vst [vmem:[#allocation3 + $0x18] sm:$0xf] %v1852_v41  ;;  %v1854_v49 = vrot.slane %v1816_v62, 5  ;;  %v1807_v53 = vsel %vm1785_vm9, %v1774_v61, %v1796_v0  ;;  %vm1786_vm11 = vcmp.gt.f32.partialorder %v1775_v35, 0.0  ;;  %v5411_v41 = vld [vmem:[%s6878_s2 + $0x158] sm:$0xff]  ;;  %vm2522_vm0 = vcmask 1043456  }
 0x24e   : > { %v6261_v50 = vld [vmem:[#allocation3 + $0x4] sm:$0xf]  ;;  %v6263_v51 = vrot.slane %v1817_v45, 5  ;;  %v1818_v21 = vpack.c.bf16 %v1807_v53, %v1807_v53  ;;  %v1808_v22 = vsel %vm1786_vm11, %v1775_v35, %v1797_v6  ;;  %vm2523_vm1 = vsmask.f32 7938 }
 0x24f   : > { %2284 = vmatpush.bf16.msrb.mxu2 %v5394_v23  ;;  %v1925_v52 = vunpack.c.l.b16 %v6261_v50  ;;  %v1855_v37 = vsel %vm6224_vm4, %v1853_v42, %v1854_v49  ;;  %v1856_v54 = vrot.slane %v1854_v49, 4  ;;  %v5413_v23 = vld [vmem:[%s6878_s2 + $0x168] sm:$0xff]  ;;  %v1819_v25 = vpack.c.bf16 %v1808_v22, %v1808_v22  ;;  %vm6357_vm3 = vmand %vm2522_vm0, %vm2523_vm1 }
 0x250   : > { %2318 = vmatpush.bf16.msrb.mxu3 %v5402_v29  ;;  %v6271_v56 = vld [vmem:[#allocation3 + $0x8] sm:$0xff]   ;;  %1885 = vst [vmem:[#allocation3 + $0x1c] sm:$0xf] %v1855_v37  ;;  %v1859_v24 = vrot.slane %v6263_v51, 4  ;;  %v1860_v30 = vrot.slane %v1818_v21, 5 }
 0x251   : > { %v5493_v58 = vunpack.c.l.b16 %v6271_v56  ;;  %v1935_v17 = vpack.c.b16 %v1925_v52, %v1924_v48  ;;  %v2088_v59 = vrot.slane %v6271_v56, 3  ;;  %v5573_v60 = vld [vmem:[#allocation3 + $0xc] sm:$0xff]   ;;  %v1858_v44 = vsel %vm6224_vm4, %v1856_v54, %v6263_v51 }
 0x252   : > { %1886 = vst [vmem:[#allocation3 + $0x20] sm:$0xf] %v1858_v44  ;;  %v1957_v3 = vshrl.u32 %v5573_v60, 16  ;;  %v1960_v4 = vshll.u32 %v5573_v60, 16  ;;  %v6293_v31 = vrot.slane %v1819_v25, 5  ;;  %v5540_v9 = vld [vmem:[#allocation3 + $0x10] sm:$0xff]   ;;  %v1861_v36 = vsel %vm6224_vm4, %v1859_v24, %v1860_v30 }
 0x253   : > { %2285 = vmatpush.bf16.msrb.mxu2 %v5393_v46  ;;  %v1943_v1 = vpack.c.b16 %v5493_v58, %v1925_v52  ;;  %v2087_v2 = vrot.slane %v1935_v17, 3  ;;  %v1862_v39 = vrot.slane %v1860_v30, 4  ;;  %1887 = vst [vmem:[#allocation3 + $0x24] sm:$0xf] %v1861_v36  ;;  %v2096_v62 = vrot.slane %v5540_v9, 3  ;;  %v5410_v54 = vld [vmem:[%s6878_s2 + $0x150] sm:$0xff] }
 0x254   : > { %2319 = vmatpush.bf16.msrb.mxu3 %v5401_v47  ;;  %v5575_v43 = vld [vmem:[#allocation3 + $0x14] sm:$0xff]   ;;  %v1959_v12 = vrot.slane %v1957_v3, 5  ;;  %v1962_v13 = vrot.slane %v1960_v4, 6  ;;  %v5408_v3 = vld [vmem:[%s6878_s2 + $0x140] sm:$0xff]  ;;  %v1865_v9 = vrot.slane %v6293_v31, 4 }
 0x255   : > { %v2089_v7 = vsel %vm2086_vm5, %v2087_v2, %v2088_v59  ;;  %v1949_v8 = vshrl.u32 %v1943_v1, 16  ;;  %v1952_v11 = vshll.u32 %v1943_v1, 16  ;;  %v1966_v19 = vshrl.u32 %v5575_v43, 16 }
 0x256   : > { %v1963_v18 = vor.u32 %v1962_v13, %v1959_v12  ;;  %v1969_v20 = vshll.u32 %v5575_v43, 16  ;;  %v1864_v10 = vsel %vm6224_vm4, %v1862_v39, %v6293_v31  ;;  %v2097_v42 = vsel %vm2086_vm5, %v2088_v59, %v2096_v62  ;;  %1889 = vst [vmem:[#allocation3 + $0x2c] sm:$0x1] %v1865_v9 }
 0x257   : > { %2286 = vmatpush.bf16.msrb.mxu2 %v5392_v55  ;;  %v1951_v15 = vrot.slane %v1949_v8, 5  ;;  %v1954_v16 = vrot.slane %v1952_v11, 6  ;;  %v1968_v32 = vrot.slane %v1966_v19, 5  ;;  %1888 = vst [vmem:[#allocation3 + $0x28] sm:$0xf] %v1864_v10  ;;  %v5541_v37 = vld [vmem:[#allocation3 + $0x18] sm:$0xff]  }
 0x258   : > { %2320 = vmatpush.bf16.msrb.mxu3 %v5400_v57  ;;  %v1971_v33 = vrot.slane %v1969_v20, 6  ;;  %v2102_v55 = vrot.slane %v5541_v37, 3  ;;  %v5409_v57 = vld [vmem:[%s6878_s2 + $0x148] sm:$0xff]  ;;  %vm2421_vm6 = vsmask.f32 256 }
 0x259   : > { %v1955_v38 = vor.u32 %v1954_v16, %v1951_v15  ;;  %v5577_v46 = vld [vmem:[#allocation3 + $0x1c] sm:$0xff]   ;;  %v4712_v15 = vld [vmem:[#allocation3 + $0x4] sm:$0xc]  ;;  %v5387_v16 = vld [vmem:[#allocation3 + $0x4] sm:$0xf0] }
 0x25a   : > { %2287 = vmatmul.bf16.vlgmr.msrb.gmra.mxu2 %v2089_v7  ;;  %v1972_v40 = vor.u32 %v1971_v33, %v1968_v32  ;;  %v1975_v48 = vshrl.u32 %v5577_v46, 16  ;;  %v1978_v49 = vshll.u32 %v5577_v46, 16  ;;  %v2103_v58 = vsel %vm2086_vm5, %v2096_v62, %v2102_v55  ;;  %v5542_v2 = vld [vmem:[#allocation3 + $0x20] sm:$0xff]  }
 0x25b   : > { %2347 = vmatpush.bf16.msra.mxu2 %v5415_v63  ;;  %v1964_v26 = vsel %vm991_vm7, %v1955_v38, %v1963_v18  ;;  %v2090_v28 = vrot.slane %v1955_v38, 3  ;;  %v2108_v4 = vrot.slane %v5542_v2, 3  ;;  %v4713_v19 = vor.u32 %v5387_v16, %v4712_v15 }
 0x25c   : > { %v2091_v29 = vrot.slane %v1964_v26, 3  ;;  %v1973_v45 = vsel %vm991_vm7, %v1963_v18, %v1972_v40  ;;  %v1977_v51 = vrot.slane %v1975_v48, 5  ;;  %v1980_v52 = vrot.slane %v1978_v49, 6  ;;  %v5388_v18 = vld [vmem:[#allocation3 + $0xc] sm:$0xff] }
 0x25d   : > { %v2098_v47 = vrot.slane %v1973_v45, 3  ;;  %v2109_v43 = vsel %vm2086_vm5, %v2102_v55, %v2108_v4  ;;  %v2021_v20 = vrot.slane %v4713_v19, 7  ;;  %v2022_v21 = vrot.slane %v5388_v18, 7 }
 0x25e   : > { %v2092_v34 = vsel %vm2086_vm5, %v2090_v28, %v2091_v29  ;;  %v1981_v56 = vor.u32 %v1980_v52, %v1977_v51  ;;  %v5578_v59 = vld [vmem:[#allocation3 + $0x24] sm:$0xff]  ;;  %v5389_v28 = vld [vmem:[#allocation3 + $0x14] sm:$0xff]  ;;  %vm2422_vm8 = vsmask.f32 4368 }
 0x25f   : > { %2348 = vmatpush.bf16.msra.mxu2 %v5414_v14  ;;  %2321 = vmatmul.bf16.vlgmr.msrb.gmra.mxu3 %v2092_v34  ;;  %v2099_v5 = vsel %vm2086_vm5, %v2091_v29, %v2098_v47  ;;  %v1984_v44 = vshrl.u32 %v5578_v59, 16  ;;  %v1987_v61 = vshll.u32 %v5578_v59, 16  ;;  %v1900_v7 = vld [vmem:[#allocation3 + $0x28] sm:$0x3]  ;;  %v2093_v24 = vrot.slane %v2021_v20, 3  ;;  %v5390_v34 = vld [vmem:[#allocation3 + $0x1c] sm:$0xff]  ;;  %vm6366_vm10 = vmor %vm2421_vm6, %vm2422_vm8 }
 0x260   : > { %v1982_v17 = vsel %vm991_vm7, %v1972_v40, %v1981_v56  ;;  %v1934_v11 = vunpack.c.l.b16 %v1900_v7  ;;  %v2024_v29 = vrot.slane %v5389_v28, 7  ;;  %v5391_v62 = vld [vmem:[#allocation3 + $0x24] sm:$0xff] }
 0x261   : > { %v2104_v60 = vrot.slane %v1982_v17, 3  ;;  %v1986_v0 = vrot.slane %v1984_v44, 5  ;;  %v1989_v1 = vrot.slane %v1987_v61, 6  ;;  %v2028_v40 = vrot.slane %v5391_v62, 7  ;;  %v6349_v61 = vld [vmem:[%s6879_s3 + $0x1] ss:$0 sm:$0xff] }
 0x262   : > { %v1940_v13 = vpack.c.b16 %v1934_v11, %v1934_v11 }
 0x263   : > { %2349 = vmatpush.bf16.msra.mxu2 %v5413_v23  ;;  %v2105_v63 = vsel %vm2086_vm5, %v2098_v47, %v2104_v60  ;;  %v1990_v35 = vor.u32 %v1989_v1, %v1986_v0 }
 0x264   : > { %v2114_v14 = vrot.slane %v1940_v13, 3 }
 0x265   : > { %v1991_v6 = vsel %vm991_vm7, %v1981_v56, %v1990_v35  ;;  %v2116_v38 = vrot.slane %v1990_v35, 3  ;;  %vm2020_vm7 = vcmask 1040384  }
 0x266   : > { %v2110_v8 = vrot.slane %v1991_v6, 3  ;;  %v2115_v53 = vsel %vm2086_vm5, %v2108_v4, %v2114_v14  ;;  %v2023_v23 = vsel %vm2020_vm7, %v2021_v20, %v2022_v21  ;;  %v2025_v30 = vsel %vm2020_vm7, %v2022_v21, %v2024_v29 }
 0x267   : > { %2350 = vmatpush.bf16.msra.mxu2 %v5412_v27  ;;  %v2094_v25 = vrot.slane %v2023_v23, 3  ;;  %v2100_v32 = vrot.slane %v2025_v30, 3  ;;  %v2026_v27 = vrot.slane %v5390_v34, 7 }
 0x268   : > { %v2111_v12 = vsel %vm2086_vm5, %v2104_v60, %v2110_v8  ;;  %v2117_v22 = vsel %vm2086_vm5, %v2110_v8, %v2116_v38 }
 0x269   : > { %v2095_v26 = vsel %vm2086_vm5, %v2093_v24, %v2094_v25  ;;  %v2101_v33 = vsel %vm2086_vm5, %v2094_v25, %v2100_v32  ;;  %v2027_v36 = vsel %vm2020_vm7, %v2024_v29, %v2026_v27 }
 0x26a   : > { %2292 = vmatmul.bf16.gmra.mxu2 %v2097_v42  ;;  %v2106_v39 = vrot.slane %v2027_v36, 3  ;;  %v1912_v42 = vld [vmem:[#allocation3 + $0x2c] sm:$0x1] }
 0x26b   : > { %2351 = vmatpush.bf16.msra.mxu2 %v5411_v41  ;;  %v2029_v41 = vsel %vm2020_vm7, %v2026_v27, %v2028_v40  ;;  %v2013_v46 = vunpack.c.l.b16 %v1912_v42 }
 0x26c   : > { %v2107_v10 = vsel %vm2086_vm5, %v2100_v32, %v2106_v39  ;;  %v2112_v45 = vrot.slane %v2029_v41, 3 }
 0x26d   : > { %v2019_v48 = vpack.c.b16 %v2013_v46, %v2013_v46 }
 0x26e   : > { %v2113_v47 = vsel %vm2086_vm5, %v2106_v39, %v2112_v45 }
 0x26f   : > { %2326 = vmatmul.bf16.gmra.mxu3 %v2099_v5  ;;  %2352 = vmatpush.bf16.msra.mxu2 %v5410_v54  ;;  %v2030_v31 = vrot.slane %v2019_v48, 7 }
 0x271   : > { %v2031_v5 = vsel %vm2020_vm7, %v2028_v40, %v2030_v31 }
 0x272   : > { %v2118_v51 = vrot.slane %v2031_v5, 3 }
 0x273   : > { %2353 = vmatpush.bf16.msra.mxu2 %v5409_v57 }
 0x274   : > { %v2119_v37 = vsel %vm2086_vm5, %v2112_v45, %v2118_v51 }
 0x277   : > { %2354 = vmatpush.bf16.msra.mxu2 %v5408_v3 }
 0x27a   : > { %2297 = vmatmul.bf16.gmra.mxu2 %v2103_v58 }
 0x27f   : > { %2331 = vmatmul.bf16.gmra.mxu3 %v2105_v63 }
 0x28a   : > { %2302 = vmatmul.bf16.gmra.mxu2 %v2109_v43 }
 0x28f   : > { %2336 = vmatmul.bf16.gmra.mxu3 %v2111_v12 }
 0x29a   : > { %2307 = vmatmul.bf16.gmra.mxu2 %v2115_v53 }
 0x29f   : > { %2341 = vmatmul.bf16.gmra.mxu3 %v2117_v22 }
 0x2aa   : > { %2355 = vmatmul.bf16.vlgmr.msra.gmra.mxu2 %v2095_v26 }
 0x2ba   : > { %2360 = vmatmul.bf16.gmra.mxu2 %v2101_v33 }
 0x2ca   : > { %2365 = vmatmul.bf16.gmra.mxu2 %v2107_v10 }
 0x2da   : > { %2370 = vmatmul.bf16.gmra.mxu2 %v2113_v47 }
 0x2dd   : > { %v2288_v49 = vpop.f32.mrf.mxu2 }
 0x2de   : > { %v2289_v0 = vadd.f32 %v6349_v61, %v2288_v49 }
 0x2e2   : > { %v2322_v59 = vpop.f32.mrf.mxu3 }
 0x2e3   : > { %v2323_v2 = vadd.f32 %v2322_v59, %v2289_v0 }
 0x2e5   : > { %v2290_v52 = vpop.f32.mrf.mxu2 }
 0x2e6   : > { %v2291_v35 = vadd.f32 %v6349_v61, %v2290_v52 }
 0x2ea   : > { %2375 = vmatmul.bf16.gmra.mxu2 %v2119_v37  ;;  %v2324_v44 = vpop.f32.mrf.mxu3 }
 0x2eb   : > { %v2325_v8 = vadd.f32 %v2324_v44, %v2291_v35 }
 0x2ed   : > { %v2293_v54 = vpop.f32.mrf.mxu2 }
 0x2ee   : > { %v2294_v53 = vadd.f32 %v6349_v61, %v2293_v54 }
 0x2f2   : > { %v2327_v1 = vpop.f32.mrf.mxu3 }
 0x2f3   : > { %v2328_v23 = vadd.f32 %v2327_v1, %v2294_v53 }
 0x2f5   : > { %v2295_v55 = vpop.f32.mrf.mxu2 }
 0x2f6   : > { %v2296_v32 = vadd.f32 %v6349_v61, %v2295_v55 }
 0x2fa   : > { %v2329_v11 = vpop.f32.mrf.mxu3 }
 0x2fb   : > { %v2330_v10 = vadd.f32 %v2329_v11, %v2296_v32 }
 0x2fd   : > { %v2298_v56 = vpop.f32.mrf.mxu2 }
 0x2fe   : > { %v2299_v46 = vadd.f32 %v6349_v61, %v2298_v56 }
 0x302   : > { %v2332_v28 = vpop.f32.mrf.mxu3 }
 0x303   : > { %v2333_v37 = vadd.f32 %v2332_v28, %v2299_v46 }
 0x305   : > { %v6338_v57 = vpop.f32.mrf.mxu2 }
 0x306   : > { %v2301_v56 = vadd.f32 %v6349_v61, %v6338_v57 }
 0x30a   : > { %v2334_v48 = vpop.f32.mrf.mxu3 }
 0x30d   : > { %v6340_v58 = vpop.f32.mrf.mxu2 }
 0x30e   : > { %v2304_v57 = vadd.f32 %v6349_v61, %v6340_v58 }
 0x312   : > { %v2337_v35 = vpop.f32.mrf.mxu3 }
 0x315   : > { %v6342_v17 = vpop.f32.mrf.mxu2 }
 0x316   : > { %v2306_v58 = vadd.f32 %v6349_v61, %v6342_v17 }
 0x31d   : > { %v6344_v60 = vpop.f32.mrf.mxu2 }
 0x31e   : > { %v2309_v17 = vadd.f32 %v6349_v61, %v6344_v60 }
 0x325   : > { %v6351_v63 = vpop.f32.mrf.mxu2 }
 0x32d   : > { %v2356_v3 = vpop.f32.mrf.mxu2 }
 0x32e   : > { %v2357_v4 = vadd.f32 %v2356_v3, %v2323_v2 }
 0x330   : > { %vm2381_vm12 = vcmp.gt.f32.partialorder %v2357_v4, 0.0  ;;  %v2391_v43 = vmul.f32 0.1, %v2357_v4 }
 0x332   : > { %v2401_v6 = vsel %vm2381_vm12, %v2357_v4, %v2391_v43 }
 0x333   : > { %v2411_v7 = vpack.c.bf16 %v2401_v6, %v2401_v6 }
 0x335   : > { %v2425_v12 = vshrl.u32 %v2411_v7, 16  ;;  %v2358_v13 = vpop.f32.mrf.mxu2  ;;  %v2428_v16 = vshll.u32 %v2411_v7, 16  ;;  %v2335_v7 = vadd.f32 %v2334_v48, %v2301_v56 }
 0x336   : > { %v2359_v14 = vadd.f32 %v2358_v13, %v2325_v8 }
 0x337   : > { %v2427_v15 = vrot.slane %v2425_v12, 7 }
 0x338   : > { %vm2382_vm4 = vcmp.gt.f32.partialorder %v2359_v14, 0.0  ;;  %v2392_v19 = vmul.f32 0.1, %v2359_v14 }
 0x339   : > { %v2430_v38 = vor.u32 %v2428_v16, %v2427_v15  ;;  %v2431_v34 = vrot.slane %v2427_v15, 4 }
 0x33a   : > { %v2402_v20 = vsel %vm2382_vm4, %v2359_v14, %v2392_v19 }
 0x33b   : > { %v2525_v21 = vsel %vm6357_vm3, %v2430_v38, %v6261_v50  ;;  %v2412_v22 = vpack.c.bf16 %v2402_v20, %v2402_v20 }
 0x33c   : > { %2526 = vst [vmem:[#allocation3 + $0x4] sm:$0xf] %v2525_v21  ;;  %v2338_v21 = vadd.f32 %v2337_v35, %v2304_v57 }
 0x33d   : > { %v2433_v24 = vshrl.u32 %v2412_v22, 16  ;;  %v2361_v25 = vpop.f32.mrf.mxu2  ;;  %v2436_v30 = vshll.u32 %v2412_v22, 16  ;;  %v2339_v22 = vpop.f32.mrf.mxu3 }
 0x33e   : > { %v2362_v26 = vadd.f32 %v2361_v25, %v2328_v23 }
 0x33f   : > { %v2435_v29 = vrot.slane %v2433_v24, 7 }
 0x340   : > { %vm2383_vm5 = vcmp.gt.f32.partialorder %v2362_v26, 0.0  ;;  %v2393_v50 = vmul.f32 0.1, %v2362_v26 }
 0x341   : > { %v2438_v9 = vor.u32 %v2436_v30, %v2435_v29  ;;  %v2440_v31 = vrot.slane %v2435_v29, 4 }
 0x342   : > { %v2403_v27 = vsel %vm2383_vm5, %v2362_v26, %v2393_v50 }
 0x343   : > { %v2439_v36 = vsel %vm6366_vm10, %v2431_v34, %v2438_v9  ;;  %v2413_v39 = vpack.c.bf16 %v2403_v27, %v2403_v27  ;;  %v2340_v27 = vadd.f32 %v2339_v22, %v2306_v58 }
 0x344   : > { %2527 = vst [vmem:[#allocation3 + $0x8] sm:$0xf] %v2439_v36 }
 0x345   : > { %v2442_v62 = vshrl.u32 %v2413_v39, 16  ;;  %v2363_v40 = vpop.f32.mrf.mxu2  ;;  %v2445_v45 = vshll.u32 %v2413_v39, 16 }
 0x346   : > { %v2364_v41 = vadd.f32 %v2363_v40, %v2330_v10 }
 0x347   : > { %v2444_v42 = vrot.slane %v2442_v62, 7  ;;  %v2342_v62 = vpop.f32.mrf.mxu3 }
 0x348   : > { %vm2384_vm9 = vcmp.gt.f32.partialorder %v2364_v41, 0.0  ;;  %v2394_v47 = vmul.f32 0.1, %v2364_v41 }
 0x349   : > { %v2447_v49 = vor.u32 %v2445_v45, %v2444_v42  ;;  %v2449_v2 = vrot.slane %v2444_v42, 4 }
 0x34a   : > { %v2404_v5 = vsel %vm2384_vm9, %v2364_v41, %v2394_v47  ;;  %vm2535_vm9 = vsmask.f32 3328 }
 0x34b   : > { %v2448_v51 = vsel %vm6366_vm10, %v2440_v31, %v2447_v49  ;;  %v2414_v52 = vpack.c.bf16 %v2404_v5, %v2404_v5  ;;  %v2343_v49 = vadd.f32 %v2342_v62, %v2309_v17 }
 0x34c   : > { %2528 = vst [vmem:[#allocation3 + $0xc] sm:$0xf] %v2448_v51 }
 0x34d   : > { %v2451_v54 = vshrl.u32 %v2414_v52, 16  ;;  %v2366_v55 = vpop.f32.mrf.mxu2  ;;  %v2454_v0 = vshll.u32 %v2414_v52, 16 }
 0x34e   : > { %v2367_v59 = vadd.f32 %v2366_v55, %v2333_v37  ;;  %v2311_v55 = vadd.f32 %v6349_v61, %v6351_v63 }
 0x34f   : > { %v2453_v44 = vrot.slane %v2451_v54, 7 }
 0x350   : > { %vm2385_vm11 = vcmp.gt.f32.partialorder %v2367_v59, 0.0  ;;  %v2395_v1 = vmul.f32 0.1, %v2367_v59 }
 0x351   : > { %v2456_v3 = vor.u32 %v2454_v0, %v2453_v44  ;;  %v2458_v16 = vrot.slane %v2453_v44, 4 }
 0x352   : > { %v2405_v4 = vsel %vm2385_vm11, %v2367_v59, %v2395_v1  ;;  %v2344_v59 = vpop.f32.mrf.mxu3  ;;  %vm2536_vm11 = vmand %vm2522_vm0, %vm2535_vm9 }
 0x353   : > { %v2457_v43 = vsel %vm6366_vm10, %v2449_v2, %v2456_v3  ;;  %v2415_v6 = vpack.c.bf16 %v2405_v4, %v2405_v4  ;;  %v2345_v3 = vadd.f32 %v2344_v59, %v2311_v55 }
 0x354   : > { %2529 = vst [vmem:[#allocation3 + $0x10] sm:$0xf] %v2457_v43 }
 0x355   : > { %v2460_v8 = vshrl.u32 %v2415_v6, 16  ;;  %v2368_v11 = vpop.f32.mrf.mxu2  ;;  %v2463_v14 = vshll.u32 %v2415_v6, 16 }
 0x356   : > { %v2369_v12 = vadd.f32 %v2368_v11, %v2335_v7 }
 0x357   : > { %v2462_v13 = vrot.slane %v2460_v8, 7 }
 0x358   : > { %vm2386_vm12 = vcmp.gt.f32.partialorder %v2369_v12, 0.0  ;;  %v2396_v15 = vmul.f32 0.1, %v2369_v12 }
 0x359   : > { %v2465_v53 = vor.u32 %v2463_v14, %v2462_v13  ;;  %v2467_v30 = vrot.slane %v2462_v13, 4 }
 0x35a   : > { %v2406_v19 = vsel %vm2386_vm12, %v2369_v12, %v2396_v15 }
 0x35b   : > { %v2466_v38 = vsel %vm6366_vm10, %v2458_v16, %v2465_v53  ;;  %v2416_v20 = vpack.c.bf16 %v2406_v19, %v2406_v19  ;;  %v2537_v19 = vld [vmem:[#allocation3 + $0x28] sm:$0xf] }
 0x35c   : > { %2530 = vst [vmem:[#allocation3 + $0x14] sm:$0xf] %v2466_v38 }
 0x35d   : > { %v2469_v23 = vshrl.u32 %v2416_v20, 16  ;;  %v2371_v24 = vpop.f32.mrf.mxu2  ;;  %v2472_v28 = vshll.u32 %v2416_v20, 16 }
 0x35e   : > { %v2372_v25 = vadd.f32 %v2371_v24, %v2338_v21 }
 0x35f   : > { %v2471_v26 = vrot.slane %v2469_v23, 7 }
 0x360   : > { %vm2387_vm1 = vcmp.gt.f32.partialorder %v2372_v25, 0.0  ;;  %v2397_v29 = vmul.f32 0.1, %v2372_v25 }
 0x361   : > { %v2474_v32 = vor.u32 %v2472_v28, %v2471_v26  ;;  %v2476_v45 = vrot.slane %v2471_v26, 4 }
 0x362   : > { %v2407_v50 = vsel %vm2387_vm1, %v2372_v25, %v2397_v29 }
 0x363   : > { %v2475_v34 = vsel %vm6366_vm10, %v2467_v30, %v2474_v32  ;;  %v2417_v9 = vpack.c.bf16 %v2407_v50, %v2407_v50 }
 0x364   : > { %2531 = vst [vmem:[#allocation3 + $0x18] sm:$0xf] %v2475_v34 }
 0x365   : > { %v2478_v36 = vshrl.u32 %v2417_v9, 16  ;;  %v2373_v39 = vpop.f32.mrf.mxu2  ;;  %v2481_v41 = vshll.u32 %v2417_v9, 16 }
 0x366   : > { %v2374_v10 = vadd.f32 %v2373_v39, %v2340_v27 }
 0x367   : > { %v2480_v40 = vrot.slane %v2478_v36, 7 }
 0x368   : > { %vm2388_vm4 = vcmp.gt.f32.partialorder %v2374_v10, 0.0  ;;  %v2398_v42 = vmul.f32 0.1, %v2374_v10 }
 0x369   : > { %v2483_v46 = vor.u32 %v2481_v41, %v2480_v40  ;;  %v2485_v44 = vrot.slane %v2480_v40, 4 }
 0x36a   : > { %v2408_v47 = vsel %vm2388_vm4, %v2374_v10, %v2398_v42 }
 0x36b   : > { %v2484_v48 = vsel %vm6366_vm10, %v2476_v45, %v2483_v46  ;;  %v2418_v31 = vpack.c.bf16 %v2408_v47, %v2408_v47 }
 0x36c   : > { %2532 = vst [vmem:[#allocation3 + $0x1c] sm:$0xf] %v2484_v48 }
 0x36d   : > { %v2487_v5 = vshrl.u32 %v2418_v31, 16  ;;  %v2376_v51 = vpop.f32.mrf.mxu2  ;;  %v2490_v54 = vshll.u32 %v2418_v31, 16 }
 0x36e   : > { %v2377_v52 = vadd.f32 %v2376_v51, %v2343_v49 }
 0x36f   : > { %v2489_v37 = vrot.slane %v2487_v5, 7 }
 0x370   : > { %vm2389_vm8 = vcmp.gt.f32.partialorder %v2377_v52, 0.0  ;;  %v2399_v60 = vmul.f32 0.1, %v2377_v52 }
 0x371   : > { %v2492_v0 = vor.u32 %v2490_v54, %v2489_v37  ;;  %v2494_v61 = vrot.slane %v2489_v37, 4 }
 0x372   : > { %v2409_v56 = vsel %vm2389_vm8, %v2377_v52, %v2399_v60 }
 0x373   : > { %v2493_v1 = vsel %vm6366_vm10, %v2485_v44, %v2492_v0  ;;  %v2419_v2 = vpack.c.bf16 %v2409_v56, %v2409_v56 }
 0x374   : > { %2533 = vst [vmem:[#allocation3 + $0x20] sm:$0xf] %v2493_v1 }
 0x375   : > { %v2496_v4 = vshrl.u32 %v2419_v2, 16  ;;  %v2378_v35 = vpop.f32.mrf.mxu2  ;;  %v2499_v7 = vshll.u32 %v2419_v2, 16 }
 0x376   : > { %v2379_v43 = vadd.f32 %v2378_v35, %v2345_v3 }
 0x377   : > { %v2498_v6 = vrot.slane %v2496_v4, 7 }
 0x378   : > { %vm2390_vm5 = vcmp.gt.f32.partialorder %v2379_v43, 0.0  ;;  %v2400_v8 = vmul.f32 0.1, %v2379_v43 }
 0x379   : > { %v2501_v63 = vor.u32 %v2499_v7, %v2498_v6  ;;  %v2503_v16 = vrot.slane %v2498_v6, 4 }
 0x37a   : > { %v2410_v11 = vsel %vm2390_vm5, %v2379_v43, %v2400_v8 }
 0x37b   : > { %v2502_v12 = vsel %vm6366_vm10, %v2494_v61, %v2501_v63  ;;  %v2420_v13 = vpack.c.bf16 %v2410_v11, %v2410_v11 }
 0x37c   : > { %2534 = vst [vmem:[#allocation3 + $0x24] sm:$0xf] %v2502_v12 }
 0x37d   : > { %v2505_v14 = vshrl.u32 %v2420_v13, 16  ;;  %v2508_v15 = vshll.u32 %v2420_v13, 16 }
 0x37f   : > { %v2507_v57 = vrot.slane %v2505_v14, 7 }
 0x381   : > { %v2510_v53 = vor.u32 %v2508_v15, %v2507_v57  ;;  %2542 = sbr.rel (%p4594_p8) target bundleno = 905 (0x389), region = 64 }
 0x383   : > { %v2511_v38 = vsel %vm6366_vm10, %v2503_v16, %v2510_v53 }
 0x384   : > { %v2538_v20 = vsel %vm2536_vm11, %v2511_v38, %v2537_v19 }
 0x385   : > { %2539 = vst [vmem:[#allocation3 + $0x28] sm:$0xf] %v2538_v20 }
 0x386   : > { %v2543_v21 = vld [vmem:[#allocation3 + $0x4] sm:$0xf] }
 0x387   : > { %v2544_v22 = vsel %vm6357_vm3, 0, %v2543_v21 }
 0x388   : > { %2545 = vst [vmem:[#allocation3 + $0x4] sm:$0xf] %v2544_v22 }
 0x389 PF: > { %2548 = sbr.rel (%p4595_p9) target bundleno = 914 (0x392), region = 68 }
 0x38f   : > { %v2549_v23 = vld [vmem:[#allocation3 + $0x28] sm:$0xf] }
 0x390   : > { %v2550_v24 = vsel %vm2536_vm11, 0, %v2549_v23 }
 0x391   : > { %2551 = vst [vmem:[#allocation3 + $0x28] sm:$0xf] %v2550_v24 }
 0x392 PF: > { %v5426_v33 = vld [vmem:[%s6880_s4 + $0xf8] sm:$0xff]  ;;  %v5425_v26 = vld [vmem:[%s6880_s4 + $0xf0] sm:$0xff]  ;;  %v5424_v29 = vld [vmem:[%s6880_s4 + $0xe8] sm:$0xff] }
 0x393   : > { %v5434_v25 = vld [vmem:[%s6880_s4 + $0x138] sm:$0xff]  ;;  %2942 = vmatpush.bf16.msra.mxu3 %v5426_v33  ;;  %v5433_v28 = vld [vmem:[%s6880_s4 + $0x130] sm:$0xff]  ;;  %v5432_v30 = vld [vmem:[%s6880_s4 + $0x128] sm:$0xff] }
 0x394   : > { %v5442_v18 = vld [vmem:[%s6880_s4 + $0x178] sm:$0xff]  ;;  %2976 = vmatpush.bf16.msra.mxu0 %v5434_v25  ;;  %v5441_v58 = vld [vmem:[%s6880_s4 + $0x170] sm:$0xff]  ;;  %v5440_v32 = vld [vmem:[%s6880_s4 + $0x168] sm:$0xff] }
 0x395   : > { %3010 = vmatpush.bf16.msra.mxu1 %v5442_v18  ;;  %v6434_v50 = vld [vmem:[#allocation3 + $0x4] sm:$0xff]   ;;  %v5416_v9 = vld [vmem:[#allocation3 + $0xc] sm:$0xff]  ;;  %v6436_v36 = vld [vmem:[#allocation3 + $0x14] sm:$0xff] }
 0x396   : > { %v5714_v34 = vld [vmem:[#allocation3 + $0x4] sm:$0xf0]  ;;  %v5715_v27 = vld [vmem:[#allocation3 + $0x4] sm:$0xe]  ;;  %v2600_v62 = vshll.u32 %v5416_v9, 16  ;;  %v2604_v17 = vshrl.u32 %v5416_v9, 16 }
 0x397   : > { %2943 = vmatpush.bf16.msra.mxu3 %v5425_v26  ;;  %v5423_v39 = vld [vmem:[%s6880_s4 + $0xe0] sm:$0xff]  ;;  %v5716_v41 = vor.u32 %v5715_v27, %v5714_v34  ;;  %v2608_v42 = vshll.u32 %v6436_v36, 16  ;;  %v2635_v46 = vrot.slane %v5416_v9, 1  ;;  %v5422_v31 = vld [vmem:[%s6880_s4 + $0xd8] sm:$0xff]  ;;  %v2637_v60 = vrot.slane %v6436_v36, 1  ;;  %v5421_v44 = vld [vmem:[%s6880_s4 + $0xd0] sm:$0xff] }
 0x398   : > { %2977 = vmatpush.bf16.msra.mxu0 %v5433_v28  ;;  %v5431_v10 = vld [vmem:[%s6880_s4 + $0x120] sm:$0xff]  ;;  %v2602_v45 = vrot.slane %v2600_v62, 1  ;;  %v5430_v49 = vld [vmem:[%s6880_s4 + $0x118] sm:$0xff]  ;;  %v5429_v0 = vld [vmem:[%s6880_s4 + $0x110] sm:$0xff]  ;;  %v2700_v56 = vshll.u32 %v6434_v50, 16  ;;  %v2698_v6 = vshrl.u32 %v6434_v50, 16 }
 0x399   : > { %3011 = vmatpush.bf16.msra.mxu1 %v5441_v58  ;;  %v5439_v40 = vld [vmem:[%s6880_s4 + $0x160] sm:$0xff]  ;;  %v2593_v47 = vshrl.u32 %v5716_v41, 16  ;;  %v2595_v48 = vshll.u32 %v5716_v41, 16  ;;  %v2634_v5 = vrot.slane %v5716_v41, 1  ;;  %v5438_v51 = vld [vmem:[%s6880_s4 + $0x158] sm:$0xff]  ;;  %v2610_v54 = vrot.slane %v2608_v42, 1 }
 0x39a   : > { %v2606_v37 = vor.u32 %v2604_v17, %v2602_v45  ;;  %v5437_v1 = vld [vmem:[%s6880_s4 + $0x150] sm:$0xff]  ;;  %v2638_v43 = vsel %vm573_vm13, %v2635_v46, %v2637_v60  ;;  %v5420_v7 = vld [vmem:[%s6880_s4 + $0xc8] sm:$0xff]  ;;  %v2702_v61 = vrot.slane %v2700_v56, 1  ;;  %v5418_v16 = vld [vmem:[#allocation3 + $0x1c] sm:$0xff]  ;;  %v2612_v33 = vshrl.u32 %v6436_v36, 16 }
 0x39b   : > { %2944 = vmatpush.bf16.msra.mxu3 %v5424_v29  ;;  %v2597_v52 = vrot.slane %v2595_v48, 1  ;;  %v2636_v55 = vsel %vm573_vm13, %v2634_v5, %v2635_v46  ;;  %v5428_v8 = vld [vmem:[%s6880_s4 + $0x108] sm:$0xff]  ;;  %v2725_v15 = vshll.u32 %v2638_v43, 16  ;;  %v5419_v53 = vld [vmem:[%s6880_s4 + $0xc0] sm:$0xff]  ;;  %v2616_v25 = vshll.u32 %v5418_v16, 16 }
 0x39c   : > { %2978 = vmatpush.bf16.msra.mxu0 %v5432_v30  ;;  %v6471_v3 = vsel %vm522_vm15, %v2606_v37, %v2610_v54  ;;  %v2720_v4 = vshll.u32 %v2636_v55, 16  ;;  %v5436_v13 = vld [vmem:[%s6880_s4 + $0x148] sm:$0xff]  ;;  %v2718_v14 = vshrl.u32 %v2636_v55, 16  ;;  %v5427_v19 = vld [vmem:[%s6880_s4 + $0x100] sm:$0xff]  ;;  %v2703_v38 = vor.u32 %v2702_v61, %v2698_v6 }
 0x39d   : > { %3012 = vmatpush.bf16.msra.mxu1 %v5440_v32  ;;  %v2598_v59 = vor.u32 %v2597_v52, %v2593_v47  ;;  %v2713_v12 = vshll.u32 %v6471_v3, 16  ;;  %v5435_v22 = vld [vmem:[%s6880_s4 + $0x140] sm:$0xff]  ;;  %v2727_v24 = vrot.slane %v2725_v15, 1  ;;  %v2614_v58 = vor.u32 %v2612_v33, %v2610_v54  ;;  %v5721_v34 = vld [vmem:[#allocation3 + $0x24] sm:$0x70] }
 0x39e   : > { %v2722_v57 = vrot.slane %v2720_v4, 1  ;;  %v2704_v18 = vsel %vm522_vm15, %v2703_v38, %v2602_v45  ;;  %v2618_v29 = vrot.slane %v2616_v25, 1  ;;  %v2639_v30 = vrot.slane %v5418_v16, 1  ;;  %v2560_v32 = vld [vmem:[#allocation3 + $0x24] sm:$0xff]  }
 0x39f   : > { %2945 = vmatpush.bf16.msra.mxu3 %v5423_v39  ;;  %v2603_v2 = vsel %vm522_vm15, %v2598_v59, %v2602_v45  ;;  %v2715_v21 = vrot.slane %v2713_v12, 1  ;;  %v5719_v50 = vld [vmem:[#allocation3 + $0x24] sm:$0xf]   ;;  %v2729_v36 = vshrl.u32 %v6471_v3, 16  ;;  %v2620_v46 = vshrl.u32 %v5418_v16, 16  ;;  %v3044_v25 = vld [vmem:[#allocation2 + $0xa] sm:$0xff] }
 0x3a0   : > { %2979 = vmatpush.bf16.msra.mxu0 %v5431_v10  ;;  %v2708_v35 = vshll.u32 %v2603_v2, 16  ;;  %v2706_v63 = vshrl.u32 %v2603_v2, 16  ;;  %v2723_v23 = vor.u32 %v2722_v57, %v2718_v14  ;;  %v2619_v9 = vsel %vm522_vm15, %v2614_v58, %v2618_v29 }
 0x3a1   : > { %3013 = vmatpush.bf16.msra.mxu1 %v5439_v40  ;;  %v2640_v27 = vsel %vm573_vm13, %v2637_v60, %v2639_v30  ;;  %v2733_v39 = vshll.u32 %v2619_v9, 16  ;;  %v2737_v10 = vshrl.u32 %v2638_v43, 16  ;;  %v5720_v40 = vor.u32 %v5721_v34, %v5719_v50  ;;  %v3045_v50 = vld [vmem:[#allocation2 + $0x12] sm:$0xff] }
 0x3a2   : > { %v2710_v11 = vrot.slane %v2708_v35, 1  ;;  %v2728_v28 = vsel %vm522_vm15, %v2723_v23, %v2727_v24  ;;  %v2741_v62 = vshll.u32 %v2640_v27, 16  ;;  %v2731_v41 = vor.u32 %v2729_v36, %v2715_v21 }
 0x3a3   : > { %2946 = vmatpush.bf16.msra.mxu3 %v5422_v31  ;;  %v2735_v17 = vrot.slane %v2733_v39, 1  ;;  %v2739_v42 = vor.u32 %v2737_v10, %v2727_v24  ;;  %v2624_v47 = vshll.u32 %v5720_v40, 16  ;;  %v2745_v54 = vshrl.u32 %v2619_v9, 16 }
 0x3a4   : > { %2980 = vmatpush.bf16.msra.mxu0 %v5430_v49  ;;  %v2711_v20 = vor.u32 %v2710_v11, %v2706_v63  ;;  %v2743_v45 = vrot.slane %v2741_v62, 1  ;;  %v2622_v49 = vor.u32 %v2620_v46, %v2618_v29  ;;  %v2753_v60 = vshrl.u32 %v2640_v27, 16 }
 0x3a5   : > { %3014 = vmatpush.bf16.msra.mxu1 %v5438_v51  ;;  %v2736_v48 = vsel %vm522_vm15, %v2731_v41, %v2735_v17  ;;  %v2626_v5 = vrot.slane %v2624_v47, 1  ;;  %v2641_v51 = vrot.slane %v2560_v32, 1  ;;  %v2628_v4 = vshrl.u32 %v5720_v40, 16  ;;  %v3046_v40 = vld [vmem:[#allocation2 + $0x1a] sm:$0xff] }
 0x3a6   : > { %v2716_v26 = vsel %vm522_vm15, %v2711_v20, %v2715_v21  ;;  %v2744_v31 = vsel %vm522_vm15, %v2739_v42, %v2743_v45  ;;  %v2755_v56 = vor.u32 %v2753_v60, %v2743_v45  ;;  %v6513_v20 = vld [vmem:[%s6881_s5 + $0x1] ss:$0 sm:$0xff] }
 0x3a7   : > { %2947 = vmatpush.bf16.msra.mxu3 %v5421_v44  ;;  %v2627_v52 = vsel %vm522_vm15, %v2622_v49, %v2626_v5  ;;  %v2642_v37 = vsel %vm573_vm13, %v2639_v30, %v2641_v51  ;;  %v2747_v44 = vor.u32 %v2745_v54, %v2735_v17  ;;  %v2780_v15 = vshrl.u32 %v2641_v51, 16 }
 0x3a8   : > { %2981 = vmatpush.bf16.msra.mxu0 %v5429_v0  ;;  %v2749_v55 = vshll.u32 %v2627_v52, 16  ;;  %v2757_v59 = vshll.u32 %v2642_v37, 16  ;;  %v2761_v43 = vshrl.u32 %v2627_v52, 16 }
 0x3a9   : > { %3015 = vmatpush.bf16.msra.mxu1 %v5437_v1 }
 0x3aa   : > { %v2751_v0 = vrot.slane %v2749_v55, 1  ;;  %v2759_v1 = vrot.slane %v2757_v59, 1  ;;  %v3048_v55 = vld [vmem:[#allocation2 + $0x2a] sm:$0xff] }
 0x3ab   : > { %2948 = vmatpush.bf16.msra.mxu3 %v5420_v7  ;;  %v2769_v7 = vshrl.u32 %v2642_v37, 16 }
 0x3ac   : > { %2982 = vmatpush.bf16.msra.mxu0 %v5428_v8  ;;  %v2752_v2 = vsel %vm522_vm15, %v2747_v44, %v2751_v0  ;;  %v2760_v35 = vsel %vm522_vm15, %v2755_v56, %v2759_v1  ;;  %v2773_v8 = vshll.u32 %v2641_v51, 16  ;;  %v2763_v61 = vor.u32 %v2761_v43, %v2751_v0 }
 0x3ad   : > { %3016 = vmatpush.bf16.msra.mxu1 %v5436_v13  ;;  %v2771_v11 = vor.u32 %v2769_v7, %v2759_v1 }
 0x3ae   : > { %v2775_v12 = vrot.slane %v2773_v8, 1 }
 0x3af   : > { %2949 = vmatpush.bf16.msra.mxu3 %v5419_v53 }
 0x3b0   : > { %2983 = vmatpush.bf16.msra.mxu0 %v5427_v19  ;;  %v2776_v14 = vsel %vm522_vm15, %v2771_v11, %v2775_v12  ;;  %v2782_v53 = vor.u32 %v2780_v15, %v2775_v12 }
 0x3b1   : > { %3017 = vmatpush.bf16.msra.mxu1 %v5435_v22 }
 0x3b2   : > { %2950 = vmatmul.bf16.vlgmr.msra.gmra.mxu3 %v2704_v18 }
 0x3b3   : > { %2984 = vmatmul.bf16.vlgmr.msra.gmra.mxu0 %v2716_v26 }
 0x3b4   : > { %3018 = vmatmul.bf16.vlgmr.msra.gmra.mxu1 %v2728_v28 }
 0x3c2   : > { %2955 = vmatmul.bf16.gmra.mxu3 %v6471_v3  ;;  %v2630_v3 = vor.u32 %v2628_v4, %v2626_v5 }
 0x3c3   : > { %2989 = vmatmul.bf16.gmra.mxu0 %v2736_v48 }
 0x3c4   : > { %3023 = vmatmul.bf16.gmra.mxu1 %v2744_v31  ;;  %v2765_v6 = vshll.u32 %v2630_v3, 16  ;;  %v2777_v57 = vshrl.u32 %v2630_v3, 16  ;;  %v3047_v31 = vld [vmem:[#allocation2 + $0x22] sm:$0xff] }
 0x3c6   : > { %v2767_v63 = vrot.slane %v2765_v6, 1 }
 0x3c8   : > { %v2768_v13 = vsel %vm522_vm15, %v2763_v61, %v2767_v63  ;;  %v2779_v16 = vor.u32 %v2777_v57, %v2767_v63  ;;  %v3050_v61 = vld [vmem:[#allocation2 + $0x3a] sm:$0xff] }
 0x3d2   : > { %2960 = vmatmul.bf16.gmra.mxu3 %v2619_v9 }
 0x3d3   : > { %2994 = vmatmul.bf16.gmra.mxu0 %v2752_v2  ;;  %v3049_v2 = vld [vmem:[#allocation2 + $0x32] sm:$0xff] }
 0x3d4   : > { %3028 = vmatmul.bf16.gmra.mxu1 %v2760_v35 }
 0x3e2   : > { %2965 = vmatmul.bf16.gmra.mxu3 %v2627_v52 }
 0x3e3   : > { %2999 = vmatmul.bf16.gmra.mxu0 %v2768_v13 }
 0x3e4   : > { %3033 = vmatmul.bf16.gmra.mxu1 %v2776_v14 }
 0x3f2   : > { %2970 = vmatmul.bf16.gmra.mxu3 %v2630_v3 }
 0x3f3   : > { %3004 = vmatmul.bf16.gmra.mxu0 %v2779_v16  ;;  %v3051_v16 = vld [vmem:[#allocation2 + $0x42] sm:$0xff] }
 0x3f4   : > { %3038 = vmatmul.bf16.gmra.mxu1 %v2782_v53 }
 0x430   : > { %v2985_v19 = vpop.f32.mrf.mxu0 }
 0x431   : > { %v3019_v38 = vpop.f32.mrf.mxu1 }
 0x435   : > { %v2951_v21 = vpop.f32.mrf.mxu3 }
 0x436   : > { %v2952_v22 = vadd.f32 %v6513_v20, %v2951_v21 }
 0x438   : > { %v2987_v23 = vpop.f32.mrf.mxu0  ;;  %v2986_v24 = vadd.f32 %v2985_v19, %v2952_v22 }
 0x439   : > { %v3021_v33 = vpop.f32.mrf.mxu1 }
 0x43a   : > { %v3020_v18 = vadd.f32 %v3019_v38, %v2986_v24 }
 0x43c   : > { %v3054_v26 = vadd.f32 %v3044_v25, %v3020_v18 }
 0x43d   : > { %v2953_v28 = vpop.f32.mrf.mxu3 }
 0x43e   : > { %3064 = vst [vmem:[#allocation2 + $0xa] sm:$0xff] %v3054_v26  ;;  %v2954_v58 = vadd.f32 %v6513_v20, %v2953_v28 }
 0x440   : > { %v2990_v29 = vpop.f32.mrf.mxu0  ;;  %v2988_v30 = vadd.f32 %v2987_v23, %v2954_v58 }
 0x441   : > { %v3024_v32 = vpop.f32.mrf.mxu1 }
 0x442   : > { %v3022_v34 = vadd.f32 %v3021_v33, %v2988_v30  ;;  %v3052_v33 = vld [vmem:[#allocation2 + $0x4a] sm:$0xff] }
 0x444   : > { %v3055_v9 = vadd.f32 %v3045_v50, %v3022_v34 }
 0x445   : > { %v2956_v27 = vpop.f32.mrf.mxu3 }
 0x446   : > { %3065 = vst [vmem:[#allocation2 + $0x12] sm:$0xff] %v3055_v9  ;;  %v2957_v36 = vadd.f32 %v6513_v20, %v2956_v27 }
 0x448   : > { %v2992_v39 = vpop.f32.mrf.mxu0  ;;  %v2991_v10 = vadd.f32 %v2990_v29, %v2957_v36 }
 0x449   : > { %v3026_v62 = vpop.f32.mrf.mxu1 }
 0x44a   : > { %v3025_v41 = vadd.f32 %v3024_v32, %v2991_v10  ;;  %v3053_v32 = vld [vmem:[#allocation2 + $0x52] sm:$0xf] }
 0x44c   : > { %v3056_v17 = vadd.f32 %v3046_v40, %v3025_v41 }
 0x44d   : > { %v2958_v42 = vpop.f32.mrf.mxu3 }
 0x44e   : > { %3066 = vst [vmem:[#allocation2 + $0x1a] sm:$0xff] %v3056_v17  ;;  %v2959_v45 = vadd.f32 %v6513_v20, %v2958_v42 }
 0x450   : > { %v2995_v46 = vpop.f32.mrf.mxu0  ;;  %v2993_v47 = vadd.f32 %v2992_v39, %v2959_v45 }
 0x451   : > { %v3029_v48 = vpop.f32.mrf.mxu1 }
 0x452   : > { %v3027_v49 = vadd.f32 %v3026_v62, %v2993_v47 }
 0x454   : > { %v3057_v5 = vadd.f32 %v3047_v31, %v3027_v49 }
 0x455   : > { %v2961_v51 = vpop.f32.mrf.mxu3 }
 0x456   : > { %3067 = vst [vmem:[#allocation2 + $0x22] sm:$0xff] %v3057_v5  ;;  %v2962_v52 = vadd.f32 %v6513_v20, %v2961_v51 }
 0x458   : > { %v2997_v37 = vpop.f32.mrf.mxu0  ;;  %v2996_v54 = vadd.f32 %v2995_v46, %v2962_v52 }
 0x459   : > { %v3031_v60 = vpop.f32.mrf.mxu1 }
 0x45a   : > { %v3030_v59 = vadd.f32 %v3029_v48, %v2996_v54 }
 0x45c   : > { %v3058_v44 = vadd.f32 %v3048_v55, %v3030_v59 }
 0x45d   : > { %v2963_v0 = vpop.f32.mrf.mxu3 }
 0x45e   : > { %3068 = vst [vmem:[#allocation2 + $0x2a] sm:$0xff] %v3058_v44  ;;  %v2964_v56 = vadd.f32 %v6513_v20, %v2963_v0 }
 0x460   : > { %v2998_v1 = vadd.f32 %v2997_v37, %v2964_v56  ;;  %v3000_v4 = vpop.f32.mrf.mxu0 }
 0x461   : > { %v3034_v3 = vpop.f32.mrf.mxu1 }
 0x462   : > { %v3032_v35 = vadd.f32 %v3031_v60, %v2998_v1 }
 0x464   : > { %v3059_v43 = vadd.f32 %v3049_v2, %v3032_v35 }
 0x465   : > { %v2966_v6 = vpop.f32.mrf.mxu3 }
 0x466   : > { %3069 = vst [vmem:[#allocation2 + $0x32] sm:$0xff] %v3059_v43  ;;  %v2967_v7 = vadd.f32 %v6513_v20, %v2966_v6 }
 0x468   : > { %v3001_v8 = vadd.f32 %v3000_v4, %v2967_v7  ;;  %v3002_v11 = vpop.f32.mrf.mxu0 }
 0x469   : > { %v3036_v13 = vpop.f32.mrf.mxu1 }
 0x46a   : > { %v3035_v63 = vadd.f32 %v3034_v3, %v3001_v8 }
 0x46c   : > { %v3060_v12 = vadd.f32 %v3050_v61, %v3035_v63 }
 0x46d   : > { %v2968_v14 = vpop.f32.mrf.mxu3 }
 0x46e   : > { %3070 = vst [vmem:[#allocation2 + $0x3a] sm:$0xff] %v3060_v12  ;;  %v2969_v57 = vadd.f32 %v6513_v20, %v2968_v14 }
 0x470   : > { %v3003_v15 = vadd.f32 %v3002_v11, %v2969_v57  ;;  %v3005_v38 = vpop.f32.mrf.mxu0 }
 0x471   : > { %v3039_v23 = vpop.f32.mrf.mxu1 }
 0x472   : > { %v3037_v53 = vadd.f32 %v3036_v13, %v3003_v15 }
 0x474   : > { %v3061_v19 = vadd.f32 %v3051_v16, %v3037_v53 }
 0x475   : > { %v2971_v21 = vpop.f32.mrf.mxu3 }
 0x476   : > { %3071 = vst [vmem:[#allocation2 + $0x42] sm:$0xff] %v3061_v19  ;;  %v2972_v22 = vadd.f32 %v6513_v20, %v2971_v21 }
 0x478   : > { %v3006_v24 = vadd.f32 %v3005_v38, %v2972_v22  ;;  %v3007_v58 = vpop.f32.mrf.mxu0 }
 0x479   : > { %v3041_v30 = vpop.f32.mrf.mxu1 }
 0x47a   : > { %v3040_v25 = vadd.f32 %v3039_v23, %v3006_v24 }
 0x47c   : > { %v3062_v18 = vadd.f32 %v3052_v33, %v3040_v25 }
 0x47d   : > { %v2973_v26 = vpop.f32.mrf.mxu3 }
 0x47e   : > { %3072 = vst [vmem:[#allocation2 + $0x4a] sm:$0xff] %v3062_v18  ;;  %v2974_v28 = vadd.f32 %v6513_v20, %v2973_v26 }
 0x480   : > { %v3008_v29 = vadd.f32 %v3007_v58, %v2974_v28 }
 0x482   : > { %v3042_v50 = vadd.f32 %v3041_v30, %v3008_v29  ;;  %3076 = sbr.rel (%p4594_p8) target bundleno = 1161 (0x489), region = 72 }
 0x484   : > { %v3063_v34 = vadd.f32 %v3053_v32, %v3042_v50 }
 0x486   : > { %3073 = vst [vmem:[#allocation2 + $0x52] sm:$0xf] %v3063_v34 }
 0x487   : > { %v5746_v9 = vmov 0.0  }
 0x488   : > { %3077 = vst [vmem:[#allocation2 + $0xa] sm:$0x3f] %v5746_v9 }
 0x489 PF: > { %3080 = sbr.rel (%p4595_p9) target bundleno = 1168 (0x490), region = 76 }
 0x48e   : > { %v5747_v27 = vmov 0.0  }
 0x48f   : > { %3081 = vst [vmem:[#allocation2 + $0x50] sm:$0x3f] %v5747_v27 }
 0x490 PF: > { %v5450_v20 = vld [vmem:[%s6878_s2 + $0x1b8] sm:$0xff]  ;;  %v5449_v10 = vld [vmem:[%s6878_s2 + $0x1b0] sm:$0xff]  ;;  %v5448_v41 = vld [vmem:[%s6878_s2 + $0x1a8] sm:$0xff]  ;;  %vm3142_vm1 = vcmask 1044484  }
 0x491   : > { %v5458_v36 = vld [vmem:[%s6878_s2 + $0x1f8] sm:$0xff]  ;;  %3539 = vmatpush.bf16.msrb.mxu2 %v5450_v20  ;;  %v5457_v62 = vld [vmem:[%s6878_s2 + $0x1f0] sm:$0xff]  ;;  %v5456_v17 = vld [vmem:[%s6878_s2 + $0x1e8] sm:$0xff] }
 0x492   : > { %v5466_v39 = vld [vmem:[%s6878_s2 + $0x238] sm:$0xff]  ;;  %3572 = vmatpush.bf16.msrb.mxu3 %v5458_v36  ;;  %v5465_v40 = vld [vmem:[%s6878_s2 + $0x230] sm:$0xff]  ;;  %v5464_v42 = vld [vmem:[%s6878_s2 + $0x228] sm:$0xff] }
 0x493   : > { %3605 = vmatpush.bf16.msrb.mxu0 %v5466_v39  ;;  %v5447_v45 = vld [vmem:[%s6878_s2 + $0x1a0] sm:$0xff]  ;;  %v3082_v47 = vld [vmem:[#allocation2 + $0xa] sm:$0xff]  ;;  %v3083_v48 = vld [vmem:[#allocation2 + $0x12] sm:$0xff] }
 0x494   : > { %v5455_v46 = vld [vmem:[%s6878_s2 + $0x1e0] sm:$0xff]  ;;  %v3086_v51 = vld [vmem:[#allocation2 + $0x2a] sm:$0xff]  ;;  %vm3092_vm15 = vcmp.gt.f32.partialorder %v3082_v47, 0.0  ;;  %vm3093_vm0 = vcmp.gt.f32.partialorder %v3083_v48, 0.0  ;;  %v3102_v52 = vmul.f32 0.1, %v3082_v47  ;;  %vm6577_vm5 = vmor %vm2020_vm7, %vm3142_vm1 }
 0x495   : > { %3540 = vmatpush.bf16.msrb.mxu2 %v5449_v10  ;;  %v3084_v31 = vld [vmem:[#allocation2 + $0x1a] sm:$0xff]  ;;  %v3085_v5 = vld [vmem:[#allocation2 + $0x22] sm:$0xff]  ;;  %vm3096_vm12 = vcmp.gt.f32.partialorder %v3086_v51, 0.0  ;;  %v3103_v37 = vmul.f32 0.1, %v3083_v48  ;;  %v3087_v0 = vld [vmem:[#allocation2 + $0x32] sm:$0xff] }
 0x496   : > { %3573 = vmatpush.bf16.msrb.mxu3 %v5457_v62  ;;  %v5463_v49 = vld [vmem:[%s6878_s2 + $0x220] sm:$0xff]  ;;  %vm3094_vm3 = vcmp.gt.f32.partialorder %v3084_v31, 0.0  ;;  %vm3095_vm10 = vcmp.gt.f32.partialorder %v3085_v5, 0.0  ;;  %v3104_v54 = vmul.f32 0.1, %v3084_v31  ;;  %v3112_v59 = vsel %vm3092_vm15, %v3082_v47, %v3102_v52  ;;  %v5446_v3 = vld [vmem:[%s6878_s2 + $0x198] sm:$0xff] }
 0x497   : > { %3606 = vmatpush.bf16.msrb.mxu0 %v5465_v40  ;;  %v3105_v55 = vmul.f32 0.1, %v3085_v5  ;;  %v3106_v60 = vmul.f32 0.1, %v3086_v51  ;;  %v3113_v44 = vsel %vm3093_vm0, %v3083_v48, %v3103_v37  ;;  %v3088_v56 = vld [vmem:[#allocation2 + $0x3a] sm:$0xff]  ;;  %v3122_v35 = vpack.c.bf16 %v3112_v59, %v3112_v59  ;;  %v3089_v61 = vld [vmem:[#allocation2 + $0x42] sm:$0xff] }
 0x498   : > { %v3114_v1 = vsel %vm3094_vm3, %v3084_v31, %v3104_v54  ;;  %v5454_v43 = vld [vmem:[%s6878_s2 + $0x1d8] sm:$0xff]  ;;  %v3123_v6 = vpack.c.bf16 %v3113_v44, %v3113_v44  ;;  %vm3097_vm4 = vcmp.gt.f32.partialorder %v3087_v0, 0.0  ;;  %v3107_v13 = vmul.f32 0.1, %v3087_v0  ;;  %v5445_v22 = vld [vmem:[%s6878_s2 + $0x190] sm:$0xff]  ;;  %v5444_v62 = vld [vmem:[%s6878_s2 + $0x188] sm:$0xff] }
 0x499   : > { %3541 = vmatpush.bf16.msrb.mxu2 %v5448_v41  ;;  %v3115_v2 = vsel %vm3095_vm10, %v3085_v5, %v3105_v55  ;;  %v3116_v4 = vsel %vm3096_vm12, %v3086_v51, %v3106_v60  ;;  %v3124_v7 = vpack.c.bf16 %v3114_v1, %v3114_v1  ;;  %v5462_v63 = vld [vmem:[%s6878_s2 + $0x218] sm:$0xff]  ;;  %v3144_v12 = vrot.slane %v3122_v35, 7  ;;  %v5453_v23 = vld [vmem:[%s6878_s2 + $0x1d0] sm:$0xff]  ;;  %v5452_v40 = vld [vmem:[%s6878_s2 + $0x1c8] sm:$0xff] }
 0x49a   : > { %3574 = vmatpush.bf16.msrb.mxu3 %v5456_v17  ;;  %v3125_v8 = vpack.c.bf16 %v3115_v2, %v3115_v2  ;;  %v3126_v11 = vpack.c.bf16 %v3116_v4, %v3116_v4  ;;  %vm3098_vm8 = vcmp.gt.f32.partialorder %v3088_v56, 0.0  ;;  %v3146_v57 = vrot.slane %v3123_v6, 7  ;;  %v3090_v26 = vld [vmem:[#allocation2 + $0x4a] sm:$0xff]  ;;  %v3091_v20 = vld [vmem:[#allocation2 + $0x52] sm:$0xf]  ;;  %v5443_v37 = vld [vmem:[%s6878_s2 + $0x180] sm:$0xff] }
 0x49b   : > { %3607 = vmatpush.bf16.msrb.mxu0 %v5464_v42  ;;  %v3149_v15 = vrot.slane %v3124_v7, 7  ;;  %v3108_v53 = vmul.f32 0.1, %v3088_v56  ;;  %v3145_v19 = vrot.slane %v3144_v12, 4  ;;  %3182 = vst [vmem:[#allocation3 + $0x4] sm:$0xe] %v3144_v12  ;;  %v3117_v21 = vsel %vm3097_vm4, %v3087_v0, %v3107_v13 }
 0x49c   : > { %v3152_v16 = vrot.slane %v3125_v8, 7  ;;  %v3155_v38 = vrot.slane %v3126_v11, 7  ;;  %vm3099_vm11 = vcmp.gt.f32.partialorder %v3089_v61, 0.0  ;;  %v3148_v24 = vrot.slane %v3146_v57, 4  ;;  %v5461_v28 = vld [vmem:[%s6878_s2 + $0x210] sm:$0xff]  ;;  %v5460_v41 = vld [vmem:[%s6878_s2 + $0x208] sm:$0xff] }
 0x49d   : > { %3542 = vmatpush.bf16.msrb.mxu2 %v5447_v45  ;;  %v3151_v33 = vrot.slane %v3149_v15, 4  ;;  %v3127_v18 = vpack.c.bf16 %v3117_v21, %v3117_v21  ;;  %v3147_v58 = vsel %vm6577_vm5, %v3145_v19, %v3146_v57  ;;  %v3118_v30 = vsel %vm3098_vm8, %v3088_v56, %v3108_v53  ;;  %v5451_v54 = vld [vmem:[%s6878_s2 + $0x1c0] sm:$0xff] }
 0x49e   : > { %3575 = vmatpush.bf16.msrb.mxu3 %v5455_v46  ;;  %v3154_v25 = vrot.slane %v3152_v16, 4  ;;  %v3157_v29 = vrot.slane %v3155_v38, 4  ;;  %v3109_v32 = vmul.f32 0.1, %v3089_v61  ;;  %v3150_v50 = vsel %vm6577_vm5, %v3148_v24, %v3149_v15  ;;  %3183 = vst [vmem:[#allocation3 + $0x8] sm:$0xf] %v3147_v58 }
 0x49f   : > { %3608 = vmatpush.bf16.msrb.mxu0 %v5463_v49  ;;  %v3153_v34 = vsel %vm6577_vm5, %v3151_v33, %v3152_v16  ;;  %v3158_v27 = vrot.slane %v3127_v18, 7  ;;  %3184 = vst [vmem:[#allocation3 + $0xc] sm:$0xf] %v3150_v50  ;;  %v3128_v36 = vpack.c.bf16 %v3118_v30, %v3118_v30  ;;  %vm3100_vm15 = vcmp.gt.f32.partialorder %v3090_v26, 0.0  ;;  %v5459_v44 = vld [vmem:[%s6878_s2 + $0x200] sm:$0xff] }
 0x4a0   : > { %v3156_v9 = vsel %vm6577_vm5, %v3154_v25, %v3155_v38  ;;  %v3119_v39 = vsel %vm3099_vm11, %v3089_v61, %v3109_v32  ;;  %v3110_v10 = vmul.f32 0.1, %v3090_v26  ;;  %3185 = vst [vmem:[#allocation3 + $0x10] sm:$0xf] %v3153_v34  ;;  %vm3101_vm0 = vcmp.gt.f32.partialorder %v3091_v20, 0.0 }
 0x4a1   : > { %3543 = vmatpush.bf16.msrb.mxu2 %v5446_v3  ;;  %v3159_v17 = vsel %vm6577_vm5, %v3157_v29, %v3158_v27  ;;  %v3160_v42 = vrot.slane %v3158_v27, 4  ;;  %v3129_v45 = vpack.c.bf16 %v3119_v39, %v3119_v39  ;;  %3186 = vst [vmem:[#allocation3 + $0x14] sm:$0xf] %v3156_v9  ;;  %v3161_v46 = vrot.slane %v3128_v36, 7 }
 0x4a2   : > { %3576 = vmatpush.bf16.msrb.mxu3 %v5454_v43  ;;  %v3120_v47 = vsel %vm3100_vm15, %v3090_v26, %v3110_v10  ;;  %v3111_v48 = vmul.f32 0.1, %v3091_v20  ;;  %v3192_v31 = vld [vmem:[#allocation3 + $0x4] sm:$0xe]  ;;  %3187 = vst [vmem:[#allocation3 + $0x18] sm:$0xf] %v3159_v17 }
 0x4a3   : > { %3609 = vmatpush.bf16.msrb.mxu0 %v5462_v63  ;;  %v6612_v49 = vld [vmem:[#allocation3 + $0x4] sm:$0x8]  ;;  %v3130_v5 = vpack.c.bf16 %v3120_v47, %v3120_v47  ;;  %v3162_v51 = vsel %vm6577_vm5, %v3160_v42, %v3161_v46  ;;  %v3163_v52 = vrot.slane %v3161_v46, 4  ;;  %v3164_v55 = vrot.slane %v3129_v45, 7 }
 0x4a4   : > { %3188 = vst [vmem:[#allocation3 + $0x1c] sm:$0xf] %v3162_v51  ;;  %v3121_v59 = vsel %vm3101_vm0, %v3091_v20, %v3111_v48  ;;  %v3215_v0 = vunpack.c.l.b16 %v3192_v31  ;;  %v3232_v56 = vunpack.c.l.b16 %v6612_v49  ;;  %vm3775_vm3 = vsmask.f32 7950 }
 0x4a5   : > { %3544 = vmatpush.bf16.msrb.mxu2 %v5445_v22  ;;  %v3167_v60 = vrot.slane %v3130_v5, 7  ;;  %v3204_v1 = vld [vmem:[#allocation3 + $0x8] sm:$0xc]  ;;  %v3131_v2 = vpack.c.bf16 %v3121_v59, %v3121_v59  ;;  %v3165_v3 = vsel %vm6577_vm5, %v3163_v52, %v3164_v55  ;;  %v3166_v43 = vrot.slane %v3164_v55, 4 }
 0x4a6   : > { %3577 = vmatpush.bf16.msrb.mxu3 %v5453_v23  ;;  %v5563_v4 = vld [vmem:[#allocation3 + $0x8] sm:$0xff]   ;;  %v3283_v35 = vunpack.c.l.b16 %v3204_v1  ;;  %3189 = vst [vmem:[#allocation3 + $0x20] sm:$0xf] %v3165_v3  ;;  %vm3674_vm1 = vsmask.f32 7440 }
 0x4a7   : > { %3610 = vmatpush.bf16.msrb.mxu0 %v5461_v28  ;;  %v3169_v6 = vrot.slane %v3167_v60, 4  ;;  %v5509_v7 = vunpack.c.l.b16 %v5563_v4  ;;  %v5510_v8 = vunpack.c.h.b16 %v5563_v4  ;;  %v3170_v61 = vrot.slane %v3131_v2, 7  ;;  %vm6678_vm4 = vmor %vm2535_vm9, %vm3674_vm1 }
 0x4a8   : > { %v5564_v63 = vld [vmem:[#allocation3 + $0x10] sm:$0xff]   ;;  %v3168_v11 = vsel %vm6577_vm5, %v3166_v43, %v3167_v60 }
 0x4a9   : > { %3545 = vmatpush.bf16.msrb.mxu2 %v5444_v62  ;;  %v5513_v12 = vunpack.c.l.b16 %v5564_v63  ;;  %v3224_v13 = vpack.c.b16 %v5509_v7, %v3215_v0  ;;  %v3235_v57 = vpack.c.b16 %v5509_v7, %v3232_v56  ;;  %v6630_v15 = vld [vmem:[#allocation3 + $0x14] sm:$0xff]   ;;  %v3285_v16 = vpack.c.b16 %v5510_v8, %v3283_v35  ;;  %3190 = vst [vmem:[#allocation3 + $0x24] sm:$0xf] %v3168_v11 }
 0x4aa   : > { %3578 = vmatpush.bf16.msrb.mxu3 %v5452_v40  ;;  %v3291_v53 = vrot.slane %v5564_v63, 1  ;;  %v3171_v19 = vsel %vm6577_vm5, %v3169_v6, %v3170_v61  ;;  %v3255_v33 = vshrl.u32 %v6630_v15, 16  ;;  %v3258_v25 = vshll.u32 %v6630_v15, 16 }
 0x4ab   : > { %3611 = vmatpush.bf16.msrb.mxu0 %v5460_v41  ;;  %v3225_v38 = vpack.c.b16 %v5513_v12, %v5510_v8  ;;  %v3353_v21 = vrot.slane %v3224_v13, 1  ;;  %v3238_v22 = vshrl.u32 %v3235_v57, 16  ;;  %v3241_v23 = vshll.u32 %v3235_v57, 16  ;;  %v5565_v24 = vld [vmem:[#allocation3 + $0x18] sm:$0xff]   ;;  %3191 = vst [vmem:[#allocation3 + $0x28] sm:$0x7] %v3171_v19 }
 0x4ac   : > { %v3290_v18 = vrot.slane %v3285_v16, 1  ;;  %v3293_v26 = vrot.slane %v5565_v24, 1  ;;  %v3257_v50 = vrot.slane %v3255_v33, 2  ;;  %v3260_v14 = vrot.slane %v3258_v25, 3 }
 0x4ad   : > { %3546 = vmatpush.bf16.msrb.mxu2 %v5443_v37  ;;  %v3354_v28 = vrot.slane %v3225_v38, 1  ;;  %v3240_v58 = vrot.slane %v3238_v22, 2  ;;  %v3243_v29 = vrot.slane %v3241_v23, 3  ;;  %v3246_v30 = vshrl.u32 %v3225_v38, 16  ;;  %v6637_v9 = vld [vmem:[#allocation3 + $0x1c] sm:$0xff]  }
 0x4ae   : > { %3579 = vmatpush.bf16.msrb.mxu3 %v5451_v54  ;;  %v3249_v32 = vshll.u32 %v3225_v38, 16  ;;  %v3292_v34 = vsel %vm573_vm13, %v3290_v18, %v3291_v53  ;;  %v3294_v39 = vsel %vm573_vm13, %v3291_v53, %v3293_v26  ;;  %v3261_v62 = vor.u32 %v3260_v14, %v3257_v50 }
 0x4af   : > { %3612 = vmatpush.bf16.msrb.mxu0 %v5459_v44  ;;  %v3355_v27 = vsel %vm573_vm13, %v3353_v21, %v3354_v28  ;;  %v3244_v20 = vor.u32 %v3243_v29, %v3240_v58  ;;  %v3248_v36 = vrot.slane %v3246_v30, 2  ;;  %v3359_v40 = vrot.slane %v3292_v34, 1  ;;  %v6665_v34 = vld [vmem:[%s6879_s3 + $0x2] ss:$0 sm:$0xff] }
 0x4b0   : > { %3547 = vmatmul.bf16.vlgmr.msrb.gmra.mxu2 %v3355_v27  ;;  %v3251_v10 = vrot.slane %v3249_v32, 3  ;;  %v3360_v41 = vrot.slane %v3294_v39, 1  ;;  %v3264_v45 = vshrl.u32 %v6637_v9, 16  ;;  %v3267_v46 = vshll.u32 %v6637_v9, 16  ;;  %v5566_v47 = vld [vmem:[#allocation3 + $0x20] sm:$0xff]  }
 0x4b1   : > { %v3295_v52 = vrot.slane %v5566_v47, 1  ;;  %v3362_v60 = vrot.slane %v6630_v15, 1  ;;  %v5632_v56 = vld [vmem:[#allocation3 + $0x24] sm:$0xf]  ;;  %v3368_v15 = vrot.slane %v6637_v9, 1 }
 0x4b2   : > { %v3252_v17 = vor.u32 %v3251_v10, %v3248_v36  ;;  %v3361_v42 = vsel %vm573_vm13, %v3359_v40, %v3360_v41  ;;  %v3266_v37 = vrot.slane %v3264_v45, 2  ;;  %v3269_v54 = vrot.slane %v3267_v46, 3  ;;  %v3205_v0 = vld [vmem:[#allocation3 + $0x28] sm:$0x7]  ;;  %v3200_v22 = vld [vmem:[#allocation3 + $0x24] sm:$0x3] }
 0x4b3   : > { %3613 = vmatmul.bf16.vlgmr.msrb.gmra.mxu0 %v3361_v42  ;;  %v3296_v59 = vsel %vm573_vm13, %v3293_v26, %v3295_v52  ;;  %v5634_v1 = vld [vmem:[#allocation3 + $0x24] sm:$0x10]  ;;  %v3363_v4 = vsel %vm573_vm13, %v3354_v28, %v3362_v60  ;;  %v3284_v35 = vunpack.c.l.b16 %v3205_v0  ;;  %v3369_v38 = vsel %vm573_vm13, %v3362_v60, %v3368_v15 }
 0x4b4   : > { %v3253_v48 = vsel %vm1311_vm2, %v3244_v20, %v3252_v17  ;;  %v3262_v31 = vsel %vm1311_vm2, %v3252_v17, %v3261_v62  ;;  %v3270_v44 = vor.u32 %v3269_v54, %v3266_v37  ;;  %v3366_v2 = vrot.slane %v3296_v59, 1 }
 0x4b5   : > { %v3356_v5 = vrot.slane %v3253_v48, 1  ;;  %v3357_v51 = vrot.slane %v3262_v31, 1  ;;  %v5593_v43 = vor.u32 %v5634_v1, %v5632_v56  ;;  %v3289_v8 = vpack.c.b16 %v3284_v35, %v3284_v35 }
 0x4b6   : > { %v3271_v3 = vsel %vm1311_vm2, %v3261_v62, %v3270_v44  ;;  %v3367_v6 = vsel %vm573_vm13, %v3360_v41, %v3366_v2  ;;  %v3223_v33 = vunpack.c.l.b16 %v3200_v22 }
 0x4b7   : > { %v3358_v55 = vsel %vm573_vm13, %v3356_v5, %v3357_v51  ;;  %v3364_v7 = vrot.slane %v3271_v3, 1  ;;  %v3273_v61 = vshrl.u32 %v5593_v43, 16  ;;  %v3276_v63 = vshll.u32 %v5593_v43, 16 }
 0x4b8   : > { %3580 = vmatmul.bf16.vlgmr.msrb.gmra.mxu3 %v3358_v55  ;;  %v3297_v12 = vrot.slane %v3289_v8, 1  ;;  %v3228_v18 = vpack.c.b16 %v3223_v33, %v3223_v33 }
 0x4b9   : > { %v3365_v11 = vsel %vm573_vm13, %v3357_v51, %v3364_v7  ;;  %v3275_v13 = vrot.slane %v3273_v61, 2  ;;  %v3278_v57 = vrot.slane %v3276_v63, 3 }
 0x4ba   : > { %v3298_v16 = vsel %vm573_vm13, %v3295_v52, %v3297_v12  ;;  %v3374_v26 = vrot.slane %v3228_v18, 1  ;;  %v3378_v28 = vrot.slane %v3297_v12, 1 }
 0x4bb   : > { %v3279_v53 = vor.u32 %v3278_v57, %v3275_v13  ;;  %v3372_v19 = vrot.slane %v3298_v16, 1 }
 0x4bc   : > { %v3375_v58 = vsel %vm573_vm13, %v3368_v15, %v3374_v26 }
 0x4bd   : > { %v3280_v21 = vsel %vm1311_vm2, %v3270_v44, %v3279_v53  ;;  %v3373_v23 = vsel %vm573_vm13, %v3366_v2, %v3372_v19  ;;  %v3379_v29 = vsel %vm573_vm13, %v3372_v19, %v3378_v28  ;;  %v3376_v30 = vrot.slane %v3279_v53, 1 }
 0x4be   : > { %v3370_v24 = vrot.slane %v3280_v21, 1 }
 0x4c0   : > { %3552 = vmatmul.bf16.gmra.mxu2 %v3363_v4  ;;  %v3371_v25 = vsel %vm573_vm13, %v3364_v7, %v3370_v24  ;;  %v3377_v32 = vsel %vm573_vm13, %v3370_v24, %v3376_v30  ;;  %vm3774_vm13 = vcmask 1043459  }
 0x4c1   : > { %vm6669_vm10 = vmand %vm3774_vm13, %vm3775_vm3 }
 0x4c2   : > { %vm6704_vm3 = vmand %vm2020_vm7, %vm2421_vm6 }
 0x4c3   : > { %3618 = vmatmul.bf16.gmra.mxu0 %v3367_v6 }
 0x4c8   : > { %3585 = vmatmul.bf16.gmra.mxu3 %v3365_v11 }
 0x4d0   : > { %3557 = vmatmul.bf16.gmra.mxu2 %v3369_v38 }
 0x4d3   : > { %3623 = vmatmul.bf16.gmra.mxu0 %v3373_v23 }
 0x4d8   : > { %3590 = vmatmul.bf16.gmra.mxu3 %v3371_v25 }
 0x4e0   : > { %3562 = vmatmul.bf16.gmra.mxu2 %v3375_v58 }
 0x4e3   : > { %3628 = vmatmul.bf16.gmra.mxu0 %v3379_v29 }
 0x4e8   : > { %3595 = vmatmul.bf16.gmra.mxu3 %v3377_v32 }
 0x4f0   : > { %3567 = vmatmul.bf16.gmra.mxu2 %v3374_v26 }
 0x4f3   : > { %3633 = vmatmul.bf16.gmra.mxu0 %v3378_v28 }
 0x4f8   : > { %3600 = vmatmul.bf16.gmra.mxu3 %v3376_v30 }
 0x530   : > { %v3614_v50 = vpop.f32.mrf.mxu0 }
 0x533   : > { %v3548_v14 = vpop.f32.mrf.mxu2 }
 0x534   : > { %v3549_v9 = vadd.f32 %v6665_v34, %v3548_v14 }
 0x538   : > { %v3616_v27 = vpop.f32.mrf.mxu0 }
 0x53b   : > { %v3581_v20 = vpop.f32.mrf.mxu3  ;;  %v3550_v36 = vpop.f32.mrf.mxu2 }
 0x53c   : > { %v3582_v39 = vadd.f32 %v3581_v20, %v3549_v9  ;;  %v3551_v40 = vadd.f32 %v6665_v34, %v3550_v36 }
 0x53e   : > { %v3615_v10 = vadd.f32 %v3614_v50, %v3582_v39 }
 0x540   : > { %vm3638_vm2 = vcmp.gt.f32.partialorder %v3615_v10, 0.0  ;;  %v3647_v62 = vmul.f32 0.1, %v3615_v10  ;;  %v3619_v41 = vpop.f32.mrf.mxu0 }
 0x542   : > { %v3656_v17 = vsel %vm3638_vm2, %v3615_v10, %v3647_v62 }
 0x543   : > { %v3665_v42 = vpack.c.bf16 %v3656_v17, %v3656_v17  ;;  %v3583_v45 = vpop.f32.mrf.mxu3  ;;  %v3553_v46 = vpop.f32.mrf.mxu2 }
 0x544   : > { %v3584_v47 = vadd.f32 %v3583_v45, %v3551_v40  ;;  %v3554_v55 = vadd.f32 %v6665_v34, %v3553_v46 }
 0x545   : > { %v3677_v48 = vshll.u32 %v3665_v42, 16  ;;  %v3680_v31 = vshrl.u32 %v3665_v42, 16 }
 0x546   : > { %v3617_v51 = vadd.f32 %v3616_v27, %v3584_v47 }
 0x547   : > { %v3679_v52 = vrot.slane %v3677_v48, 5  ;;  %v3682_v37 = vrot.slane %v3680_v31, 4 }
 0x548   : > { %vm3639_vm12 = vcmp.gt.f32.partialorder %v3617_v51, 0.0  ;;  %v3648_v54 = vmul.f32 0.1, %v3617_v51  ;;  %v3621_v60 = vpop.f32.mrf.mxu0 }
 0x549   : > { %v3777_v59 = vsel %vm6669_vm10, %v3679_v52, %v6612_v49  ;;  %v3683_v0 = vor.u32 %v3682_v37, %v3679_v52 }
 0x54a   : > { %3778 = vst [vmem:[#allocation3 + $0x4] sm:$0x8] %v3777_v59  ;;  %v3657_v44 = vsel %vm3639_vm12, %v3617_v51, %v3648_v54 }
 0x54b   : > { %v3666_v56 = vpack.c.bf16 %v3657_v44, %v3657_v44  ;;  %v3586_v1 = vpop.f32.mrf.mxu3  ;;  %v3555_v2 = vpop.f32.mrf.mxu2  ;;  %v3684_v7 = vrot.slane %v3683_v0, 4 }
 0x54c   : > { %v3587_v4 = vadd.f32 %v3586_v1, %v3554_v55  ;;  %v3556_v63 = vadd.f32 %v6665_v34, %v3555_v2 }
 0x54d   : > { %v3686_v35 = vshll.u32 %v3666_v56, 16  ;;  %v3690_v3 = vshrl.u32 %v3666_v56, 16 }
 0x54e   : > { %v3620_v6 = vadd.f32 %v3619_v41, %v3587_v4 }
 0x54f   : > { %v3688_v8 = vrot.slane %v3686_v35, 5  ;;  %v3692_v61 = vrot.slane %v3690_v3, 4 }
 0x550   : > { %vm3640_vm8 = vcmp.gt.f32.partialorder %v3620_v6, 0.0  ;;  %v3649_v49 = vmul.f32 0.1, %v3620_v6  ;;  %v3624_v11 = vpop.f32.mrf.mxu0 }
 0x551   : > { %v3689_v12 = vsel %vm6678_vm4, %v3684_v7, %v3688_v8  ;;  %v3693_v57 = vor.u32 %v3692_v61, %v3688_v8 }
 0x552   : > { %3779 = vst [vmem:[#allocation3 + $0x8] sm:$0xf] %v3689_v12  ;;  %v3658_v13 = vsel %vm3640_vm8, %v3620_v6, %v3649_v49 }
 0x553   : > { %v3667_v15 = vpack.c.bf16 %v3658_v13, %v3658_v13  ;;  %v3588_v16 = vpop.f32.mrf.mxu3  ;;  %v3558_v53 = vpop.f32.mrf.mxu2  ;;  %v3694_v23 = vrot.slane %v3693_v57, 4 }
 0x554   : > { %v3589_v19 = vadd.f32 %v3588_v16, %v3556_v63  ;;  %v3559_v18 = vadd.f32 %v6665_v34, %v3558_v53 }
 0x555   : > { %v3696_v38 = vshll.u32 %v3667_v15, 16  ;;  %v3700_v21 = vshrl.u32 %v3667_v15, 16 }
 0x556   : > { %v3622_v22 = vadd.f32 %v3621_v60, %v3589_v19 }
 0x557   : > { %v3698_v24 = vrot.slane %v3696_v38, 5  ;;  %v3702_v33 = vrot.slane %v3700_v21, 4 }
 0x558   : > { %vm3641_vm5 = vcmp.gt.f32.partialorder %v3622_v22, 0.0  ;;  %v3650_v25 = vmul.f32 0.1, %v3622_v22  ;;  %v3626_v26 = vpop.f32.mrf.mxu0 }
 0x559   : > { %v3699_v28 = vsel %vm6678_vm4, %v3694_v23, %v3698_v24  ;;  %v3703_v29 = vor.u32 %v3702_v33, %v3698_v24 }
 0x55a   : > { %3780 = vst [vmem:[#allocation3 + $0xc] sm:$0xf] %v3699_v28  ;;  %v3659_v58 = vsel %vm3641_vm5, %v3622_v22, %v3650_v25 }
 0x55b   : > { %v3668_v30 = vpack.c.bf16 %v3659_v58, %v3659_v58  ;;  %v3591_v32 = vpop.f32.mrf.mxu3  ;;  %v3560_v50 = vpop.f32.mrf.mxu2  ;;  %v3704_v36 = vrot.slane %v3703_v29, 4 }
 0x55c   : > { %v3592_v14 = vadd.f32 %v3591_v32, %v3559_v18  ;;  %v3561_v40 = vadd.f32 %v6665_v34, %v3560_v50 }
 0x55d   : > { %v3706_v9 = vshll.u32 %v3668_v30, 16  ;;  %v3710_v27 = vshrl.u32 %v3668_v30, 16 }
 0x55e   : > { %v3625_v20 = vadd.f32 %v3624_v11, %v3592_v14 }
 0x55f   : > { %v3708_v39 = vrot.slane %v3706_v9, 5  ;;  %v3712_v10 = vrot.slane %v3710_v27, 4 }
 0x560   : > { %vm3642_vm11 = vcmp.gt.f32.partialorder %v3625_v20, 0.0  ;;  %v3651_v62 = vmul.f32 0.1, %v3625_v20  ;;  %v3629_v41 = vpop.f32.mrf.mxu0 }
 0x561   : > { %v3709_v17 = vsel %vm6678_vm4, %v3704_v36, %v3708_v39  ;;  %v3713_v45 = vor.u32 %v3712_v10, %v3708_v39 }
 0x562   : > { %3781 = vst [vmem:[#allocation3 + $0x10] sm:$0xf] %v3709_v17  ;;  %v3660_v42 = vsel %vm3642_vm11, %v3625_v20, %v3651_v62 }
 0x563   : > { %v3669_v46 = vpack.c.bf16 %v3660_v42, %v3660_v42  ;;  %v3593_v47 = vpop.f32.mrf.mxu3  ;;  %v3563_v48 = vpop.f32.mrf.mxu2  ;;  %v3714_v54 = vrot.slane %v3713_v45, 4 }
 0x564   : > { %v3594_v31 = vadd.f32 %v3593_v47, %v3561_v40  ;;  %v3564_v44 = vadd.f32 %v6665_v34, %v3563_v48 }
 0x565   : > { %v3716_v51 = vshll.u32 %v3669_v46, 16  ;;  %v3720_v52 = vshrl.u32 %v3669_v46, 16 }
 0x566   : > { %v3627_v37 = vadd.f32 %v3626_v26, %v3594_v31  ;;  %v3788_v31 = vld [vmem:[#allocation3 + $0x28] sm:$0x1] }
 0x567   : > { %v3718_v55 = vrot.slane %v3716_v51, 5  ;;  %v3722_v60 = vrot.slane %v3720_v52, 4 }
 0x568   : > { %vm3643_vm15 = vcmp.gt.f32.partialorder %v3627_v37, 0.0  ;;  %v3652_v59 = vmul.f32 0.1, %v3627_v37  ;;  %v3631_v0 = vpop.f32.mrf.mxu0 }
 0x569   : > { %v3719_v56 = vsel %vm6678_vm4, %v3714_v54, %v3718_v55  ;;  %v3723_v2 = vor.u32 %v3722_v60, %v3718_v55 }
 0x56a   : > { %3782 = vst [vmem:[#allocation3 + $0x14] sm:$0xf] %v3719_v56  ;;  %v3661_v1 = vsel %vm3643_vm15, %v3627_v37, %v3652_v59 }
 0x56b   : > { %v3670_v4 = vpack.c.bf16 %v3661_v1, %v3661_v1  ;;  %v3596_v35 = vpop.f32.mrf.mxu3  ;;  %v3565_v3 = vpop.f32.mrf.mxu2  ;;  %v3724_v49 = vrot.slane %v3723_v2, 4 }
 0x56c   : > { %v3597_v6 = vadd.f32 %v3596_v35, %v3564_v44  ;;  %v3566_v13 = vadd.f32 %v6665_v34, %v3565_v3 }
 0x56d   : > { %v3726_v7 = vshll.u32 %v3670_v4, 16  ;;  %v3730_v8 = vshrl.u32 %v3670_v4, 16 }
 0x56e   : > { %v3630_v61 = vadd.f32 %v3629_v41, %v3597_v6 }
 0x56f   : > { %v3728_v63 = vrot.slane %v3726_v7, 5  ;;  %v3732_v11 = vrot.slane %v3730_v8, 4 }
 0x570   : > { %vm3644_vm0 = vcmp.gt.f32.partialorder %v3630_v61, 0.0  ;;  %v3653_v12 = vmul.f32 0.1, %v3630_v61  ;;  %v3634_v57 = vpop.f32.mrf.mxu0 }
 0x571   : > { %v3729_v15 = vsel %vm6678_vm4, %v3724_v49, %v3728_v63  ;;  %v3733_v53 = vor.u32 %v3732_v11, %v3728_v63 }
 0x572   : > { %3783 = vst [vmem:[#allocation3 + $0x18] sm:$0xf] %v3729_v15  ;;  %v3662_v16 = vsel %vm3644_vm0, %v3630_v61, %v3653_v12 }
 0x573   : > { %v3671_v19 = vpack.c.bf16 %v3662_v16, %v3662_v16  ;;  %v3598_v38 = vpop.f32.mrf.mxu3  ;;  %v3568_v21 = vpop.f32.mrf.mxu2  ;;  %v3734_v25 = vrot.slane %v3733_v53, 4 }
 0x574   : > { %v3599_v22 = vadd.f32 %v3598_v38, %v3566_v13  ;;  %v3569_v58 = vadd.f32 %v6665_v34, %v3568_v21 }
 0x575   : > { %v3736_v23 = vshll.u32 %v3671_v19, 16  ;;  %v3740_v24 = vshrl.u32 %v3671_v19, 16 }
 0x576   : > { %v3632_v33 = vadd.f32 %v3631_v0, %v3599_v22 }
 0x577   : > { %v3738_v18 = vrot.slane %v3736_v23, 5  ;;  %v3742_v26 = vrot.slane %v3740_v24, 4 }
 0x578   : > { %vm3645_vm2 = vcmp.gt.f32.partialorder %v3632_v33, 0.0  ;;  %v3654_v28 = vmul.f32 0.1, %v3632_v33  ;;  %v3636_v29 = vpop.f32.mrf.mxu0 }
 0x579   : > { %v3739_v30 = vsel %vm6678_vm4, %v3734_v25, %v3738_v18  ;;  %v3743_v50 = vor.u32 %v3742_v26, %v3738_v18 }
 0x57a   : > { %3784 = vst [vmem:[#allocation3 + $0x1c] sm:$0xf] %v3739_v30  ;;  %v3663_v32 = vsel %vm3645_vm2, %v3632_v33, %v3654_v28 }
 0x57b   : > { %v3672_v14 = vpack.c.bf16 %v3663_v32, %v3663_v32  ;;  %v3601_v9 = vpop.f32.mrf.mxu3  ;;  %v3570_v27 = vpop.f32.mrf.mxu2  ;;  %v3744_v62 = vrot.slane %v3743_v50, 4 }
 0x57c   : > { %v3602_v20 = vadd.f32 %v3601_v9, %v3569_v58 }
 0x57d   : > { %v3746_v36 = vshll.u32 %v3672_v14, 16  ;;  %v3750_v39 = vshrl.u32 %v3672_v14, 16 }
 0x57e   : > { %v3635_v10 = vadd.f32 %v3634_v57, %v3602_v20 }
 0x57f   : > { %v3748_v40 = vrot.slane %v3746_v36, 5  ;;  %v3752_v41 = vrot.slane %v3750_v39, 4 }
 0x580   : > { %vm3646_vm13 = vcmp.gt.f32.partialorder %v3635_v10, 0.0  ;;  %v3655_v17 = vmul.f32 0.1, %v3635_v10 }
 0x581   : > { %v3749_v34 = vsel %vm6678_vm4, %v3744_v62, %v3748_v40  ;;  %v3753_v45 = vor.u32 %v3752_v41, %v3748_v40 }
 0x582   : > { %3785 = vst [vmem:[#allocation3 + $0x20] sm:$0xf] %v3749_v34  ;;  %v3664_v42 = vsel %vm3646_vm13, %v3635_v10, %v3655_v17 }
 0x583   : > { %v3673_v46 = vpack.c.bf16 %v3664_v42, %v3664_v42  ;;  %v3603_v47 = vpop.f32.mrf.mxu3  ;;  %v3754_v37 = vrot.slane %v3753_v45, 4 }
 0x585   : > { %v3756_v51 = vshll.u32 %v3673_v46, 16  ;;  %v3760_v52 = vshrl.u32 %v3673_v46, 16 }
 0x586   : > { %3793 = sbr.rel (%p4594_p8) target bundleno = 1422 (0x58e), region = 80 }
 0x587   : > { %v3758_v54 = vrot.slane %v3756_v51, 5  ;;  %v3789_v55 = vsel %vm6704_vm3, %v3760_v52, %v3788_v31 }
 0x588   : > { %3790 = vst [vmem:[#allocation3 + $0x28] sm:$0x1] %v3789_v55 }
 0x589   : > { %v3759_v60 = vsel %vm6678_vm4, %v3754_v37, %v3758_v54 }
 0x58a   : > { %3786 = vst [vmem:[#allocation3 + $0x24] sm:$0xf] %v3759_v60 }
 0x58b   : > { %v3794_v59 = vld [vmem:[#allocation3 + $0x4] sm:$0x8] }
 0x58c   : > { %v3795_v44 = vsel %vm6669_vm10, 0, %v3794_v59 }
 0x58d   : > { %3796 = vst [vmem:[#allocation3 + $0x4] sm:$0x8] %v3795_v44 }
 0x58e PF: > { %3799 = sbr.rel (%p4595_p9) target bundleno = 1430 (0x596), region = 84 }
 0x593   : > { %v3800_v0 = vld [vmem:[#allocation3 + $0x28] sm:$0x1] }
 0x594   : > { %v3801_v56 = vsel %vm6704_vm3, 0, %v3800_v0 }
 0x595   : > { %3802 = vst [vmem:[#allocation3 + $0x28] sm:$0x1] %v3801_v56 }
 0x596 PF: > { %v5474_v43 = vld [vmem:[%s6880_s4 + $0x1b8] sm:$0xff]  ;;  %v5473_v5 = vld [vmem:[%s6880_s4 + $0x1b0] sm:$0xff]  ;;  %v5472_v2 = vld [vmem:[%s6880_s4 + $0x1a8] sm:$0xff]  ;;  %vm3941_vm7 = vsmask.f32 4352 }
 0x597   : > { %4230 = vmatpush.bf16.msrb.mxu1 %v5474_v43  ;;  %5613 = vmatpush.bf16.msra.mxu3 %v5474_v43  ;;  %v5490_v1 = vld [vmem:[%s6880_s4 + $0x238] sm:$0xff]  ;;  %v5489_v4 = vld [vmem:[%s6880_s4 + $0x230] sm:$0xff]  ;;  %v5471_v35 = vld [vmem:[%s6880_s4 + $0x1a0] sm:$0xff] }
 0x598   : > { %4288 = vmatpush.bf16.msra.mxu0 %v5490_v1  ;;  %5621 = vmatpush.bf16.msra.mxu2 %v5490_v1  ;;  %v5488_v3 = vld [vmem:[%s6880_s4 + $0x228] sm:$0xff]  ;;  %v5596_v6 = vld [vmem:[#allocation3 + $0x4] sm:$0x8]  ;;  %v5470_v8 = vld [vmem:[%s6880_s4 + $0x198] sm:$0xff] }
 0x599   : > { %v5636_v7 = vld [vmem:[#allocation3 + $0x4] sm:$0xf0]   ;;  %v5638_v61 = vld [vmem:[#allocation3 + $0xc] sm:$0xff]   ;;  %v5487_v63 = vld [vmem:[%s6880_s4 + $0x220] sm:$0xff] }
 0x59a   : > { %v5597_v49 = vor.u32 %v5636_v7, %v5596_v6  ;;  %v5469_v11 = vld [vmem:[%s6880_s4 + $0x190] sm:$0xff]  ;;  %v3951_v57 = vshrl.u32 %v5638_v61, 16  ;;  %v3954_v15 = vshll.u32 %v5638_v61, 16  ;;  %v5486_v16 = vld [vmem:[%s6880_s4 + $0x218] sm:$0xff]  ;;  %v5468_v53 = vld [vmem:[%s6880_s4 + $0x188] sm:$0xff] }
 0x59b   : > { %4231 = vmatpush.bf16.msrb.mxu1 %v5473_v5  ;;  %5614 = vmatpush.bf16.msra.mxu3 %v5473_v5  ;;  %v5485_v23 = vld [vmem:[%s6880_s4 + $0x210] sm:$0xff]  ;;  %v6759_v33 = vld [vmem:[#allocation3 + $0x8] sm:$0xff]   ;;  %v5467_v28 = vld [vmem:[%s6880_s4 + $0x180] sm:$0xff] }
 0x59c   : > { %4289 = vmatpush.bf16.msra.mxu0 %v5489_v4  ;;  %5622 = vmatpush.bf16.msra.mxu2 %v5489_v4  ;;  %v3943_v12 = vshrl.u32 %v5597_v49, 16  ;;  %v3946_v13 = vshll.u32 %v5597_v49, 16  ;;  %v3953_v21 = vrot.slane %v3951_v57, 3  ;;  %v3956_v22 = vrot.slane %v3954_v15, 4  ;;  %v5640_v24 = vld [vmem:[#allocation3 + $0x14] sm:$0xff]   ;;  %v5484_v30 = vld [vmem:[%s6880_s4 + $0x208] sm:$0xff] }
 0x59d   : > { %v6761_v25 = vld [vmem:[#allocation3 + $0x10] sm:$0xff]   ;;  %v3878_v18 = vrot.slane %v6759_v33, 5  ;;  %v6773_v32 = vld [vmem:[#allocation3 + $0x18] sm:$0xff]   ;;  %v3994_v27 = vshrl.u32 %v5640_v24, 16  ;;  %v3997_v20 = vshll.u32 %v5640_v24, 16  ;;  %v5483_v41 = vld [vmem:[%s6880_s4 + $0x200] sm:$0xff] }
 0x59e   : > { %v3945_v19 = vrot.slane %v3943_v12, 3  ;;  %v3948_v38 = vrot.slane %v3946_v13, 4  ;;  %v3879_v26 = vrot.slane %v6761_v25, 5  ;;  %v6768_v29 = vor.u32 %v3956_v22, %v3953_v21  ;;  %v5482_v50 = vld [vmem:[%s6880_s4 + $0x1f8] sm:$0xff]  ;;  %v5481_v34 = vld [vmem:[%s6880_s4 + $0x1f0] sm:$0xff]  ;;  %v5480_v43 = vld [vmem:[%s6880_s4 + $0x1e8] sm:$0xff] }
 0x59f   : > { %4232 = vmatpush.bf16.msrb.mxu1 %v5472_v2  ;;  %5615 = vmatpush.bf16.msra.mxu3 %v5472_v2  ;;  %v3881_v9 = vrot.slane %v6773_v32, 5  ;;  %v3977_v36 = vshrl.u32 %v3878_v18, 16  ;;  %v3980_v39 = vshll.u32 %v3878_v18, 16  ;;  %v3996_v48 = vrot.slane %v3994_v27, 3  ;;  %v5641_v60 = vld [vmem:[#allocation3 + $0x1c] sm:$0xff]   ;;  %v5476_v27 = vld [vmem:[%s6880_s4 + $0x1c8] sm:$0xff] }
 0x5a0   : > { %4290 = vmatpush.bf16.msra.mxu0 %v5488_v3  ;;  %5623 = vmatpush.bf16.msra.mxu2 %v5488_v3  ;;  %v3949_v58 = vor.u32 %v3948_v38, %v3945_v19  ;;  %v3880_v14 = vsel %vm1831_vm14, %v3878_v18, %v3879_v26  ;;  %v3999_v52 = vrot.slane %v3997_v20, 4  ;;  %v3841_v37 = vshrl.u32 %v6759_v33, 16  ;;  %v5479_v49 = vld [vmem:[%s6880_s4 + $0x1e0] sm:$0xff] }
 0x5a1   : > { %v3985_v10 = vshrl.u32 %v3880_v14, 16  ;;  %v3988_v62 = vshll.u32 %v3880_v14, 16  ;;  %v3882_v17 = vsel %vm1831_vm14, %v3879_v26, %v3881_v9  ;;  %v3979_v42 = vrot.slane %v3977_v36, 3  ;;  %v6804_v15 = vld [vmem:[#allocation3 + $0x20] sm:$0xff]  }
 0x5a2   : > { %v3958_v40 = vsel %vm3941_vm7, %v3949_v58, %v6768_v29  ;;  %v3982_v45 = vrot.slane %v3980_v39, 4  ;;  %v4012_v31 = vshrl.u32 %v3882_v17, 16  ;;  %v4015_v51 = vshll.u32 %v3882_v17, 16 }
 0x5a3   : > { %4233 = vmatpush.bf16.msrb.mxu1 %v5471_v35  ;;  %5616 = vmatpush.bf16.msra.mxu3 %v5471_v35  ;;  %v3987_v46 = vrot.slane %v3985_v10, 3  ;;  %v3990_v47 = vrot.slane %v3988_v62, 4  ;;  %v3844_v59 = vshll.u32 %v6759_v33, 16  ;;  %v3849_v44 = vshrl.u32 %v6761_v25, 16  ;;  %v5477_v33 = vld [vmem:[%s6880_s4 + $0x1d0] sm:$0xff] }
 0x5a4   : > { %4291 = vmatpush.bf16.msra.mxu0 %v5487_v63  ;;  %5624 = vmatpush.bf16.msra.mxu2 %v5487_v63  ;;  %v3983_v54 = vor.u32 %v3982_v45, %v3979_v42  ;;  %v4014_v0 = vrot.slane %v4012_v31, 3  ;;  %v4017_v56 = vrot.slane %v4015_v51, 4  ;;  %v3852_v5 = vshll.u32 %v6761_v25, 16  ;;  %v3812_v45 = vld [vmem:[#allocation3 + $0x28] sm:$0x1] }
 0x5a5   : > { %v3991_v55 = vor.u32 %v3990_v47, %v3987_v46  ;;  %v4021_v2 = vshrl.u32 %v5641_v60, 16  ;;  %v4024_v4 = vshll.u32 %v5641_v60, 16  ;;  %v4000_v7 = vor.u32 %v3999_v52, %v3996_v48  ;;  %v5475_v46 = vld [vmem:[%s6880_s4 + $0x1c0] sm:$0xff] }
 0x5a6   : > { %v4018_v35 = vor.u32 %v4017_v56, %v4014_v0  ;;  %v3846_v63 = vrot.slane %v3844_v59, 5  ;;  %v3854_v12 = vrot.slane %v3852_v5, 5  ;;  %v3883_v38 = vrot.slane %v6804_v15, 5 }
 0x5a7   : > { %4234 = vmatpush.bf16.msrb.mxu1 %v5470_v8  ;;  %5617 = vmatpush.bf16.msra.mxu3 %v5470_v8  ;;  %v3992_v1 = vsel %vm3941_vm7, %v3983_v54, %v3991_v55  ;;  %v4023_v3 = vrot.slane %v4021_v2, 3  ;;  %v4026_v6 = vrot.slane %v4024_v4, 4  ;;  %v3843_v8 = vrot.slane %v3841_v37, 4 }
 0x5a8   : > { %4292 = vmatpush.bf16.msra.mxu0 %v5486_v16  ;;  %5625 = vmatpush.bf16.msra.mxu2 %v5486_v16  ;;  %v4019_v61 = vsel %vm3941_vm7, %v3991_v55, %v4018_v35  ;;  %v5478_v16 = vld [vmem:[%s6880_s4 + $0x1d8] sm:$0xff]  ;;  %v3884_v21 = vsel %vm1831_vm14, %v3881_v9, %v3883_v38  ;;  %v4001_v22 = vsel %vm3941_vm7, %v6768_v29, %v4000_v7  ;;  %v3858_v29 = vshrl.u32 %v6773_v32, 16 }
 0x5a9   : > { %v4027_v13 = vor.u32 %v4026_v6, %v4023_v3  ;;  %v4042_v24 = vshll.u32 %v3884_v21, 16  ;;  %v3861_v20 = vshll.u32 %v6773_v32, 16  ;;  %v3876_v31 = vunpack.c.l.b16 %v3812_v45 }
 0x5aa   : > { %v3860_v42 = vrot.slane %v3858_v29, 4  ;;  %v3867_v6 = vshrl.u32 %v6804_v15, 16 }
 0x5ab   : > { %4235 = vmatpush.bf16.msrb.mxu1 %v5469_v11  ;;  %5618 = vmatpush.bf16.msra.mxu3 %v5469_v11  ;;  %v3851_v11 = vrot.slane %v3849_v44, 4  ;;  %v4028_v57 = vsel %vm3941_vm7, %v4000_v7, %v4027_v13  ;;  %v4044_v26 = vrot.slane %v4042_v24, 4  ;;  %v3863_v47 = vrot.slane %v3861_v20, 5 }
 0x5ac   : > { %4293 = vmatpush.bf16.msra.mxu0 %v5485_v23  ;;  %5626 = vmatpush.bf16.msra.mxu2 %v5485_v23  ;;  %v4039_v23 = vshrl.u32 %v3884_v21, 16  ;;  %v3877_v52 = vpack.c.b16 %v3876_v31, %v3876_v31  ;;  %v3870_v7 = vshll.u32 %v6804_v15, 16  ;;  %v4319_v31 = vld [vmem:[#allocation2 + $0x20] sm:$0xff] }
 0x5ad   : > { %v3855_v19 = vor.u32 %v3854_v12, %v3851_v11  ;;  %v3864_v55 = vor.u32 %v3863_v47, %v3860_v42  ;;  %v4318_v42 = vld [vmem:[#allocation2 + $0x18] sm:$0xff] }
 0x5ae   : > { %v4041_v18 = vrot.slane %v4039_v23, 3  ;;  %v3885_v59 = vrot.slane %v3877_v52, 5  ;;  %v3872_v11 = vrot.slane %v3870_v7, 5 }
 0x5af   : > { %4236 = vmatpush.bf16.msrb.mxu1 %v5468_v53  ;;  %5619 = vmatpush.bf16.msra.mxu3 %v5468_v53  ;;  %v3847_v53 = vor.u32 %v3846_v63, %v3843_v8  ;;  %v3865_v5 = vsel %vm2535_vm9, %v3855_v19, %v3864_v55  ;;  %v3869_v63 = vrot.slane %v3867_v6, 4 }
 0x5b0   : > { %4294 = vmatpush.bf16.msra.mxu0 %v5484_v30  ;;  %5627 = vmatpush.bf16.msra.mxu2 %v5484_v30  ;;  %v5538_v30 = vunpack.c.h.b16 %v6804_v15  ;;  %v4045_v9 = vor.u32 %v4044_v26, %v4041_v18  ;;  %v3886_v44 = vsel %vm1831_vm14, %v3883_v38, %v3885_v59  ;;  %v4003_v4 = vshrl.u32 %v3865_v5, 16 }
 0x5b1   : > { %v3856_v25 = vsel %vm2535_vm9, %v3847_v53, %v3855_v19  ;;  %v3963_v58 = vshll.u32 %v3847_v53, 16  ;;  %v4066_v56 = vshrl.u32 %v3886_v44, 16 }
 0x5b2   : > { %v3971_v14 = vshll.u32 %v3856_v25, 16  ;;  %v3835_v36 = vpack.c.b16 %v5538_v30, %v5538_v30  ;;  %v4046_v39 = vsel %vm3941_vm7, %v4018_v35, %v4045_v9  ;;  %v4006_v35 = vshll.u32 %v3865_v5, 16 }
 0x5b3   : > { %4237 = vmatpush.bf16.msrb.mxu1 %v5467_v28  ;;  %5620 = vmatpush.bf16.msra.mxu3 %v5467_v28  ;;  %v3960_v28 = vshrl.u32 %v3847_v53, 16 }
 0x5b4   : > { %4295 = vmatpush.bf16.msra.mxu0 %v5483_v41  ;;  %5628 = vmatpush.bf16.msra.mxu2 %v5483_v41  ;;  %v4048_v62 = vshrl.u32 %v3835_v36, 16  ;;  %v3965_v41 = vrot.slane %v3963_v58, 4 }
 0x5b5   : > { %v3962_v10 = vrot.slane %v3960_v28, 3 }
 0x5b6   : > { %4238 = vmatmul.bf16.vlgmr.msrb.gmra.mxu1 %v3958_v40  ;;  %4248 = vmatmul.bf16.vlgmr.msra.gmra.mxu3 %v4028_v57  ;;  %v4051_v40 = vshll.u32 %v3835_v36, 16  ;;  %v4050_v48 = vrot.slane %v4048_v62, 3  ;;  %v4317_v36 = vld [vmem:[#allocation2 + $0x10] sm:$0xff] }
 0x5b7   : > { %4259 = vmatpush.bf16.msra.mxu1 %v5482_v50  ;;  %4296 = vmatmul.bf16.vlgmr.msra.gmra.mxu0 %v3992_v1  ;;  %v3968_v50 = vshrl.u32 %v3856_v25, 16  ;;  %v3966_v37 = vor.u32 %v3965_v41, %v3962_v10  ;;  %v4068_v1 = vrot.slane %v4066_v56, 3 }
 0x5b8   : > { %4301 = vmatmul.bf16.vlgmr.msra.gmra.mxu2 %v4019_v61  ;;  %v4053_v32 = vrot.slane %v4051_v40, 4  ;;  %v4005_v61 = vrot.slane %v4003_v4, 3 }
 0x5b9   : > { %v3970_v17 = vrot.slane %v3968_v50, 3 }
 0x5ba   : > { %v4054_v51 = vor.u32 %v4053_v32, %v4050_v48 }
 0x5bb   : > { %4260 = vmatpush.bf16.msra.mxu1 %v5481_v34  ;;  %v3973_v34 = vrot.slane %v3971_v14, 4  ;;  %v6843_v14 = vld [vmem:[%s6881_s5 + $0x2] ss:$0 sm:$0xff] }
 0x5bc   : > { %v4055_v60 = vsel %vm3941_vm7, %v4027_v13, %v4054_v51  ;;  %v3873_v13 = vor.u32 %v3872_v11, %v3869_v63  ;;  %v4322_v11 = vld [vmem:[#allocation2 + $0x38] sm:$0xff] }
 0x5bd   : > { %v3974_v54 = vor.u32 %v3973_v34, %v3970_v17 }
 0x5be   : > { %v4057_v23 = vshrl.u32 %v3873_v13, 16  ;;  %v4060_v24 = vshll.u32 %v3873_v13, 16 }
 0x5bf   : > { %4261 = vmatpush.bf16.msra.mxu1 %v5480_v43  ;;  %v3975_v0 = vsel %vm3941_vm7, %v3966_v37, %v3974_v54  ;;  %v4069_v43 = vshll.u32 %v3886_v44, 16  ;;  %v4320_v44 = vld [vmem:[#allocation2 + $0x28] sm:$0xff] }
 0x5c0   : > { %v4062_v25 = vrot.slane %v4060_v24, 4 }
 0x5c1   : > { %v4071_v2 = vrot.slane %v4069_v43, 4 }
 0x5c3   : > { %4262 = vmatpush.bf16.msra.mxu1 %v5479_v49  ;;  %v4072_v3 = vor.u32 %v4071_v2, %v4068_v1  ;;  %v4008_v49 = vrot.slane %v4006_v35, 4  ;;  %v4321_v35 = vld [vmem:[#allocation2 + $0x30] sm:$0xff] }
 0x5c5   : > { %v4073_v8 = vsel %vm3941_vm7, %v4045_v9, %v4072_v3  ;;  %v4009_v12 = vor.u32 %v4008_v49, %v4005_v61 }
 0x5c6   : > { %4243 = vmatmul.bf16.gmra.mxu1 %v4001_v22  ;;  %4253 = vmatmul.bf16.gmra.mxu3 %v4055_v60 }
 0x5c7   : > { %4263 = vmatpush.bf16.msra.mxu1 %v5478_v16  ;;  %v4010_v57 = vsel %vm3941_vm7, %v3974_v54, %v4009_v12  ;;  %v3874_v16 = vsel %vm2535_vm9, %v3864_v55, %v3873_v13 }
 0x5c8   : > { %4306 = vmatmul.bf16.gmra.mxu2 %v4046_v39  ;;  %v4030_v53 = vshrl.u32 %v3874_v16, 16  ;;  %v4033_v19 = vshll.u32 %v3874_v16, 16 }
 0x5ca   : > { %v4032_v38 = vrot.slane %v4030_v53, 3  ;;  %v4035_v21 = vrot.slane %v4033_v19, 4 }
 0x5cb   : > { %4264 = vmatpush.bf16.msra.mxu1 %v5477_v33  ;;  %v4059_v33 = vrot.slane %v4057_v23, 3 }
 0x5cc   : > { %v4036_v22 = vor.u32 %v4035_v21, %v4032_v38  ;;  %v4323_v38 = vld [vmem:[#allocation2 + $0x40] sm:$0xff] }
 0x5cd   : > { %v4063_v18 = vor.u32 %v4062_v25, %v4059_v33 }
 0x5ce   : > { %v4037_v15 = vsel %vm3941_vm7, %v4009_v12, %v4036_v22 }
 0x5cf   : > { %4265 = vmatpush.bf16.msra.mxu1 %v5476_v27  ;;  %v4064_v26 = vsel %vm3941_vm7, %v4036_v22, %v4063_v18  ;;  %v4324_v18 = vld [vmem:[#allocation2 + $0x48] sm:$0xff] }
 0x5d3   : > { %4266 = vmatpush.bf16.msra.mxu1 %v5475_v46 }
 0x5d6   : > { %4267 = vmatmul.bf16.vlgmr.msra.gmra.mxu1 %v3975_v0 }
 0x5d8   : > { %4311 = vmatmul.bf16.gmra.mxu2 %v4073_v8 }
 0x5e6   : > { %4272 = vmatmul.bf16.gmra.mxu1 %v4010_v57 }
 0x5f6   : > { %4277 = vmatmul.bf16.gmra.mxu1 %v4037_v15 }
 0x606   : > { %4282 = vmatmul.bf16.gmra.mxu1 %v4064_v26 }
 0x633   : > { %v4239_v28 = vpop.f32.mrf.mxu1 }
 0x634   : > { %v4297_v29 = vpop.f32.mrf.mxu0  ;;  %v4240_v9 = vadd.f32 %v6843_v14, %v4239_v28 }
 0x639   : > { %v4249_v54 = vpop.f32.mrf.mxu3 }
 0x63a   : > { %v4250_v43 = vadd.f32 %v6843_v14, %v4249_v54 }
 0x63b   : > { %v4241_v58 = vpop.f32.mrf.mxu1  ;;  %v4302_v17 = vpop.f32.mrf.mxu2 }
 0x63c   : > { %v4242_v62 = vadd.f32 %v6843_v14, %v4241_v58  ;;  %v4299_v40 = vpop.f32.mrf.mxu0 }
 0x641   : > { %v4251_v1 = vpop.f32.mrf.mxu3 }
 0x642   : > { %v4252_v8 = vadd.f32 %v6843_v14, %v4251_v1 }
 0x643   : > { %v4244_v30 = vpop.f32.mrf.mxu1  ;;  %v4304_v51 = vpop.f32.mrf.mxu2 }
 0x644   : > { %v4245_v47 = vadd.f32 %v6843_v14, %v4244_v30 }
 0x649   : > { %v4254_v63 = vpop.f32.mrf.mxu3 }
 0x64a   : > { %v4255_v13 = vadd.f32 %v6843_v14, %v4254_v63 }
 0x64b   : > { %v4246_v50 = vpop.f32.mrf.mxu1  ;;  %v4307_v56 = vpop.f32.mrf.mxu2 }
 0x64c   : > { %v4247_v55 = vadd.f32 %v6843_v14, %v4246_v50 }
 0x651   : > { %v4256_v22 = vpop.f32.mrf.mxu3 }
 0x652   : > { %v4257_v23 = vadd.f32 %v6843_v14, %v4256_v22 }
 0x653   : > { %v4268_v27 = vpop.f32.mrf.mxu1  ;;  %v4309_v7 = vpop.f32.mrf.mxu2 }
 0x654   : > { %v4269_v20 = vadd.f32 %v4268_v27, %v4240_v9 }
 0x656   : > { %v4298_v39 = vadd.f32 %v4297_v29, %v4269_v20 }
 0x658   : > { %v4325_v10 = vadd.f32 %v4317_v36, %v4298_v39 }
 0x65a   : > { %4333 = vst [vmem:[#allocation2 + $0x10] sm:$0xff] %v4325_v10 }
 0x65b   : > { %4349 = vst [vmem:[%s5856_s15] sm:$0xff] %v4325_v10  ;;  %v4270_v41 = vpop.f32.mrf.mxu1  ;;  %v4312_v16 = vpop.f32.mrf.mxu2 }
 0x65c   : > { %v4271_v34 = vadd.f32 %v4270_v41, %v4242_v62 }
 0x65e   : > { %v4300_v45 = vadd.f32 %v4299_v40, %v4271_v34 }
 0x660   : > { %v4326_v46 = vadd.f32 %v4318_v42, %v4300_v45 }
 0x662   : > { %4334 = vst [vmem:[#allocation2 + $0x18] sm:$0xff] %v4326_v46 }
 0x663   : > { %4350 = vst [vmem:[%s5856_s15 + $0x8] sm:$0xff] %v4326_v46  ;;  %v4273_v48 = vpop.f32.mrf.mxu1  ;;  %v4314_v25 = vpop.f32.mrf.mxu2 }
 0x664   : > { %v4274_v32 = vadd.f32 %v4273_v48, %v4245_v47 }
 0x666   : > { %v4303_v52 = vadd.f32 %v4302_v17, %v4274_v32 }
 0x668   : > { %v4327_v37 = vadd.f32 %v4319_v31, %v4303_v52 }
 0x66a   : > { %4335 = vst [vmem:[#allocation2 + $0x20] sm:$0xff] %v4327_v37 }
 0x66b   : > { %4351 = vst [vmem:[%s5856_s15 + $0x10] sm:$0xff] %v4327_v37  ;;  %v4275_v60 = vpop.f32.mrf.mxu1 }
 0x66c   : > { %v4276_v59 = vadd.f32 %v4275_v60, %v4247_v55 }
 0x66e   : > { %v4305_v0 = vadd.f32 %v4304_v51, %v4276_v59 }
 0x670   : > { %v4328_v5 = vadd.f32 %v4320_v44, %v4305_v0 }
 0x672   : > { %4336 = vst [vmem:[#allocation2 + $0x28] sm:$0xff] %v4328_v5 }
 0x673   : > { %4352 = vst [vmem:[%s5856_s15 + $0x18] sm:$0xff] %v4328_v5  ;;  %v4278_v2 = vpop.f32.mrf.mxu1 }
 0x674   : > { %v4279_v4 = vadd.f32 %v4278_v2, %v4250_v43 }
 0x676   : > { %v4308_v3 = vadd.f32 %v4307_v56, %v4279_v4 }
 0x678   : > { %v4329_v6 = vadd.f32 %v4321_v35, %v4308_v3 }
 0x67a   : > { %4337 = vst [vmem:[#allocation2 + $0x30] sm:$0xff] %v4329_v6 }
 0x67b   : > { %4353 = vst [vmem:[%s5856_s15 + $0x20] sm:$0xff] %v4329_v6  ;;  %v4280_v61 = vpop.f32.mrf.mxu1 }
 0x67c   : > { %v4281_v49 = vadd.f32 %v4280_v61, %v4252_v8 }
 0x67e   : > { %v4310_v12 = vadd.f32 %v4309_v7, %v4281_v49 }
 0x680   : > { %v4330_v57 = vadd.f32 %v4322_v11, %v4310_v12 }
 0x682   : > { %4338 = vst [vmem:[#allocation2 + $0x38] sm:$0xff] %v4330_v57 }
 0x683   : > { %4354 = vst [vmem:[%s5856_s15 + $0x28] sm:$0xff] %v4330_v57  ;;  %v4283_v53 = vpop.f32.mrf.mxu1 }
 0x684   : > { %v4284_v19 = vadd.f32 %v4283_v53, %v4255_v13 }
 0x686   : > { %v4313_v21 = vadd.f32 %v4312_v16, %v4284_v19 }
 0x688   : > { %v4331_v15 = vadd.f32 %v4323_v38, %v4313_v21 }
 0x68a   : > { %4339 = vst [vmem:[#allocation2 + $0x40] sm:$0xff] %v4331_v15 }
 0x68b   : > { %4355 = vst [vmem:[%s5856_s15 + $0x30] sm:$0xff] %v4331_v15  ;;  %v4285_v24 = vpop.f32.mrf.mxu1 }
 0x68c   : > { %v4286_v33 = vadd.f32 %v4285_v24, %v4257_v23 }
 0x68e   : > { %v4315_v26 = vadd.f32 %v4314_v25, %v4286_v33 }
 0x690   : > { %v4332_v28 = vadd.f32 %v4324_v18, %v4315_v26 }
 0x692   : > { %4340 = vst [vmem:[#allocation2 + $0x48] sm:$0xff] %v4332_v28 }
 0x693   : > { %4356 = vst [vmem:[%s5856_s15 + $0x38] sm:$0xff] %v4332_v28 }
 0x694 PF: > { %s16_s25 = sadd.s32 1, %s5740_s25   ;;  %s6905_s21 = smov %s5732_s23 }
 0x695   : > { %p13_p10 = scmp.ge.s32.totalorder %s16_s25, 10   ;;  %s6906_s22 = smov %s5736_s24 }
 0x696   : > { %s6907_s23 = smov %s6910_s26  ;;  %s6908_s24 = smov %s6914_s27 }
 0x697   :  { %15 = sbr.rel (!%p13_p10) target bundleno = 3 (0x3), region = 125 }

</bundles_post_ra>
